<compile_context>
chip_gen: v7x
topology: tpu7x:2x2x1
jax: 0.10.0
libtpu: 0.0.40
codegen_flags: <defaults>
</compile_context>

<pallas_src>
import functools
import math

import jax
import jax.numpy as jnp
from jax import lax
from jax.experimental import pallas as pl
from jax.experimental.pallas import tpu as pltpu

_LN_EPS = 1e-5


def _layernorm(x, gamma, beta, eps):
    xf = x.astype(jnp.float32)
    mu = jnp.mean(xf, axis=-1, keepdims=True)
    xc = xf - mu
    var = jnp.mean(xc * xc, axis=-1, keepdims=True)
    return xc * lax.rsqrt(var + eps) * gamma + beta


def _gelu_tanh(x):
    # TODO(synk): PyTorch nn.GELU() is the exact erf form; the tanh
    # approximation is used in-kernel (EUP tanh), max abs deviation ~1e-3,
    # covered by the test tolerance.
    c = math.sqrt(2.0 / math.pi)
    return 0.5 * x * (1.0 + jnp.tanh(c * (x + 0.044715 * x * x * x)))


def _vmem_limit_bytes():
    """Per-generation VMEM limit: ~3/4 of physical (96 MiB v5e/v6e, 48 MiB v7x)."""
    cap = 128 * 1024 * 1024
    try:
        info = pltpu.get_tpu_info()
        cap = int(getattr(info, "vmem_capacity_bytes", cap))
    except Exception:
        pass
    return min(cap * 3 // 4, 100 * 1024 * 1024)


# -----------------------------------------------------------------------------
# Kernel 1: reassociated Linformer K/V compression
#   x_c = proj_k^T @ LN(x)   (k, D)   accumulated over sequence tiles
#   x_v = proj_v^T @ LN(x)   (k, D)
#   keys^T = Wk @ x_c^T      (H*dh, k)   written on the last tile
#   vals^T = Wv @ x_v^T      (H*dh, k)
# -----------------------------------------------------------------------------
def _kv_compress_kernel(x_ref, g_ref, b_ref, pk_ref, pv_ref, wk_ref, wv_ref,
                        keys_ref, vals_ref, xc_acc, xv_acc, *, eps):
    ni = pl.program_id(1)

    @pl.when(ni == 0)
    def _():
        xc_acc[...] = jnp.zeros_like(xc_acc)
        xv_acc[...] = jnp.zeros_like(xv_acc)

    xn = _layernorm(x_ref[...], g_ref[...], b_ref[...], eps).astype(jnp.bfloat16)
    # Plain matmuls (proj stored pre-transposed (k, N) -> no trans_a/XLU).
    xc_acc[...] += jnp.dot(pk_ref[...], xn, preferred_element_type=jnp.float32)
    xv_acc[...] += jnp.dot(pv_ref[...], xn, preferred_element_type=jnp.float32)

    @pl.when(ni == pl.num_programs(1) - 1)
    def _():
        dn_tb = (((1,), (1,)), ((), ()))  # contract dim 1 of both: A @ B^T
        keys_ref[...] = lax.dot_general(
            wk_ref[...], xc_acc[...].astype(jnp.bfloat16), dn_tb,
            preferred_element_type=jnp.float32).astype(keys_ref.dtype)
        vals_ref[...] = lax.dot_general(
            wv_ref[...], xv_acc[...].astype(jnp.bfloat16), dn_tb,
            preferred_element_type=jnp.float32).astype(vals_ref.dtype)


# -----------------------------------------------------------------------------
# Kernel 2: fused residual layer on a (tq, D) tile
#   PreNorm -> LinformerSelfAttention (vs precomputed compressed K/V) -> to_out
#   -> +residual -> PreNorm -> FeedForward (mlp chunked) -> +residual
# -----------------------------------------------------------------------------
def _attn_ff_kernel(x_ref, g1_ref, b1_ref, wqt_ref, keys_ref, vals_ref,
                    wo_ref, bo_ref, g2_ref, b2_ref, w1_ref, bf1_ref,
                    w2_ref, bf2_ref, o_ref,
                    *, heads, dim_head, m_chunk, eps, kv_dtype):
    dn_tb = (((1,), (1,)), ((), ()))  # contract dim 1 of both operands

    # ---- attention -----------------------------------------------------------
    x_res = x_ref[...]                                             # (tq, D) f32
    xn = _layernorm(x_res, g1_ref[...], b1_ref[...], eps).astype(jnp.bfloat16)
    # Full-depth Q projection; 1/sqrt(dh) already folded into wq_t.
    q_all = jnp.dot(xn, wqt_ref[...], preferred_element_type=jnp.float32)

    ctx = []
    for h in range(heads):
        rows = slice(h * dim_head, (h + 1) * dim_head)
        q_h = q_all[:, rows].astype(kv_dtype)                      # (tq, dh)
        # scores = q_h @ keys_h : keys stored transposed -> plain matmul.
        scores = jnp.dot(q_h, keys_ref[rows, :],
                         preferred_element_type=jnp.float32)       # (tq, K)
        m = jnp.max(scores, axis=-1, keepdims=True)
        e = jnp.exp(scores - m)
        p = e * pl.reciprocal(jnp.sum(e, axis=-1, keepdims=True), approx=True)
        # TODO(synk): attention dropout is identity in eval mode.
        ctx.append(lax.dot_general(p.astype(kv_dtype), vals_ref[rows, :], dn_tb,
                                   preferred_element_type=jnp.float32))
    ctx_all = jnp.concatenate(ctx, axis=-1).astype(jnp.bfloat16)   # (tq, H*dh)
    # Single full-depth output projection + to_out bias + residual.
    y = x_res + bo_ref[...] + jnp.dot(ctx_all, wo_ref[...],
                                      preferred_element_type=jnp.float32)

    # ---- feed-forward (mlp_dim chunked) --------------------------------------
    xn2 = _layernorm(y, g2_ref[...], b2_ref[...], eps).astype(jnp.bfloat16)
    acc = y + bf2_ref[...]
    n_chunks = w1_ref.shape[1] // m_chunk
    for c in range(n_chunks):
        cols = slice(c * m_chunk, (c + 1) * m_chunk)
        hid = jnp.dot(xn2, w1_ref[:, cols],
                      preferred_element_type=jnp.float32) + bf1_ref[:, cols]
        hid = _gelu_tanh(hid).astype(jnp.bfloat16)
        # TODO(synk): FeedForward dropout is identity in eval mode.
        acc = acc + jnp.dot(hid, w2_ref[cols, :],
                            preferred_element_type=jnp.float32)

    o_ref[...] = acc.astype(o_ref.dtype)


# -----------------------------------------------------------------------------
# Wrappers
# -----------------------------------------------------------------------------
def _rep_spec(arr):
    """Full-array block, constant index (fetched once)."""
    nd = arr.ndim
    return pl.BlockSpec(arr.shape, lambda i, j, _nd=nd: (0,) * _nd)


def _compress_kv(x, p, *, heads, dim_head, tn, kv_dtype):
    b, n, d = x.shape
    hdh = heads * dim_head
    k = p["pk_t"].shape[0]
    # Tiling along N tiles the lane dim of proj^T -> needs 128-multiples.
    if tn is None or n % tn != 0 or (tn != n and tn % 128 != 0):
        tn = n
    kernel = functools.partial(_kv_compress_kernel, eps=_LN_EPS)
    return pl.pallas_call(
        kernel,
        out_shape=(jax.ShapeDtypeStruct((b, hdh, k), kv_dtype),
                   jax.ShapeDtypeStruct((b, hdh, k), kv_dtype)),
        grid_spec=pltpu.PrefetchScalarGridSpec(
            num_scalar_prefetch=0,
            grid=(b, n // tn),
            in_specs=[
                pl.BlockSpec((None, tn, d), lambda bi, ni: (bi, ni, 0)),
                _rep_spec(p["ln1_g"]), _rep_spec(p["ln1_b"]),
                pl.BlockSpec((k, tn), lambda bi, ni: (0, ni)),
                pl.BlockSpec((k, tn), lambda bi, ni: (0, ni)),
                _rep_spec(p["wk"]), _rep_spec(p["wv"]),
            ],
            out_specs=[pl.BlockSpec((None, hdh, k), lambda bi, ni: (bi, 0, 0)),
                       pl.BlockSpec((None, hdh, k), lambda bi, ni: (bi, 0, 0))],
            scratch_shapes=[pltpu.VMEM((k, d), jnp.float32),
                            pltpu.VMEM((k, d), jnp.float32)],
        ),
        compiler_params=pltpu.CompilerParams(
            dimension_semantics=("parallel", "arbitrary"),
            vmem_limit_bytes=_vmem_limit_bytes(),
        ),
    )(x, p["ln1_g"], p["ln1_b"], p["pk_t"], p["pv_t"], p["wk"], p["wv"])


def _attn_ff_block(x, keys_t, vals_t, p, *, heads, dim_head, tq, m_chunk,
                   kv_dtype):
    b, n, d = x.shape
    hdh = heads * dim_head
    k = keys_t.shape[-1]
    mlp_dim = p["w1"].shape[1]
    if tq is None or n % tq != 0 or tq % 8 != 0:
        tq = n
    if m_chunk is None or mlp_dim % m_chunk != 0:
        m_chunk = mlp_dim
    kernel = functools.partial(_attn_ff_kernel, heads=heads, dim_head=dim_head,
                               m_chunk=m_chunk, eps=_LN_EPS, kv_dtype=kv_dtype)
    return pl.pallas_call(
        kernel,
        out_shape=jax.ShapeDtypeStruct((b, n, d), x.dtype),
        grid_spec=pltpu.PrefetchScalarGridSpec(
            num_scalar_prefetch=0,
            grid=(b, n // tq),
            in_specs=[
                pl.BlockSpec((None, tq, d), lambda bi, qi: (bi, qi, 0)),
                _rep_spec(p["ln1_g"]), _rep_spec(p["ln1_b"]),
                _rep_spec(p["wq_t"]),
                pl.BlockSpec((None, hdh, k), lambda bi, qi: (bi, 0, 0)),
                pl.BlockSpec((None, hdh, k), lambda bi, qi: (bi, 0, 0)),
                _rep_spec(p["wo"]), _rep_spec(p["bo"]),
                _rep_spec(p["ln2_g"]), _rep_spec(p["ln2_b"]),
                _rep_spec(p["w1"]), _rep_spec(p["b1"]),
                _rep_spec(p["w2"]), _rep_spec(p["b2"]),
            ],
            out_specs=pl.BlockSpec((None, tq, d), lambda bi, qi: (bi, qi, 0)),
        ),
        compiler_params=pltpu.CompilerParams(
            dimension_semantics=("parallel", "parallel"),
            vmem_limit_bytes=_vmem_limit_bytes(),
        ),
    )(x, p["ln1_g"], p["ln1_b"], p["wq_t"], keys_t, vals_t, p["wo"], p["bo"],
      p["ln2_g"], p["ln2_b"], p["w1"], p["b1"], p["w2"], p["b2"])


def linformer_forward(x, layer_params, *, heads, dim_head, tq=256, tn=512,
                      m_chunk=None):
    # bf16 compressed K/V only when per-head slices are sublane-pack aligned.
    kv_dtype = jnp.bfloat16 if dim_head % 16 == 0 else jnp.float32
    for p in layer_params:
        keys_t, vals_t = _compress_kv(x, p, heads=heads, dim_head=dim_head,
                                      tn=tn, kv_dtype=kv_dtype)
        x = _attn_ff_block(x, keys_t, vals_t, p, heads=heads, dim_head=dim_head,
                           tq=tq, m_chunk=m_chunk, kv_dtype=kv_dtype)
    return x


# -----------------------------------------------------------------------------
# Parameters (f32 master params matching the PyTorch init, eval mode)
# -----------------------------------------------------------------------------
def init_linformer_params(key, *, dim, depth, heads, dim_head, mlp_dim,
                          seq_len, k):
    hdh = heads * dim_head
    u = lambda kk, shape, bound: jax.random.uniform(
        kk, shape, jnp.float32, minval=-bound, maxval=bound)
    layers = []
    for _ in range(depth):
        key, *ks = jax.random.split(key, 12)
        layers.append(dict(
            ln1_g=jnp.ones((dim,), jnp.float32),
            ln1_b=jnp.zeros((dim,), jnp.float32),
            wq=u(ks[0], (hdh, dim), 1.0 / math.sqrt(dim)),      # nn.Linear (out,in)
            wk=u(ks[1], (hdh, dim), 1.0 / math.sqrt(dim)),
            wv=u(ks[2], (hdh, dim), 1.0 / math.sqrt(dim)),
            proj_k=u(ks[3], (seq_len, k), 1.0 / math.sqrt(k)),  # init_()
            proj_v=u(ks[4], (seq_len, k), 1.0 / math.sqrt(k)),
            wo=u(ks[5], (dim, hdh), 1.0 / math.sqrt(hdh)),
            bo=u(ks[6], (dim,), 1.0 / math.sqrt(hdh)),
            ln2_g=jnp.ones((dim,), jnp.float32),
            ln2_b=jnp.zeros((dim,), jnp.float32),
            w1=u(ks[7], (mlp_dim, dim), 1.0 / math.sqrt(dim)),
            b1=u(ks[8], (mlp_dim,), 1.0 / math.sqrt(dim)),
            w2=u(ks[9], (dim, mlp_dim), 1.0 / math.sqrt(mlp_dim)),
            b2=u(ks[10], (dim,), 1.0 / math.sqrt(mlp_dim)),
        ))
    return layers


def prep_kernel_params(layers, *, dim_head):
    """Kernel-side layouts: bf16 matmul weights, transposed where needed,
    1/sqrt(dim_head) folded into wq."""
    scale = dim_head ** -0.5
    out = []
    for lp in layers:
        out.append(dict(
            ln1_g=lp["ln1_g"].reshape(1, -1), ln1_b=lp["ln1_b"].reshape(1, -1),
            wq_t=(lp["wq"] * scale).T.astype(jnp.bfloat16),   # (D, H*dh)
            wk=lp["wk"].astype(jnp.bfloat16),                 # (H*dh, D)
            wv=lp["wv"].astype(jnp.bfloat16),
            pk_t=lp["proj_k"].T.astype(jnp.bfloat16),         # (k, N)
            pv_t=lp["proj_v"].T.astype(jnp.bfloat16),
            wo=lp["wo"].T.astype(jnp.bfloat16),               # (H*dh, D)=(in,out)
            bo=lp["bo"].reshape(1, -1),
            ln2_g=lp["ln2_g"].reshape(1, -1), ln2_b=lp["ln2_b"].reshape(1, -1),
            w1=lp["w1"].T.astype(jnp.bfloat16),               # (D, M)
            b1=lp["b1"].reshape(1, -1),
            w2=lp["w2"].T.astype(jnp.bfloat16),               # (M, D)
            b2=lp["b2"].reshape(1, -1),
        ))
    return out


def quantize_master(layers):
    """bf16-round the matmul weights (what the kernel consumes) for the f32 ref."""
    rnd = lambda w: w.astype(jnp.bfloat16).astype(jnp.float32)
    out = []
    for lp in layers:
        q = dict(lp)
        for name in ("wq", "wk", "wv", "proj_k", "proj_v", "wo", "w1", "w2"):
            q[name] = rnd(lp[name])
        out.append(q)
    return out


# -----------------------------------------------------------------------------
# Pure-JAX reference mirroring the PyTorch module (eval mode, f32 math)
# -----------------------------------------------------------------------------
def _ln_ref(x, g, b, eps=_LN_EPS):
    mu = jnp.mean(x, -1, keepdims=True)
    var = jnp.mean((x - mu) ** 2, -1, keepdims=True)
    return (x - mu) * lax.rsqrt(var + eps) * g + b


def _attn_ref(x, lp, heads, dim_head):
    b, n, d = x.shape
    q = jnp.einsum("bnd,ed->bne", x, lp["wq"])
    kf = jnp.einsum("bnd,ed->bne", x, lp["wk"])
    vf = jnp.einsum("bnd,ed->bne", x, lp["wv"])
    keys = jnp.einsum("bne,nk->bke", kf, lp["proj_k"])
    vals = jnp.einsum("bne,nk->bke", vf, lp["proj_v"])
    qh = q.reshape(b, n, heads, dim_head).transpose(0, 2, 1, 3)
    kh = keys.reshape(b, -1, heads, dim_head).transpose(0, 2, 1, 3)
    vh = vals.reshape(b, -1, heads, dim_head).transpose(0, 2, 1, 3)
    dots = jnp.einsum("bhnd,bhkd->bhnk", qh, kh) * dim_head ** -0.5
    attn = jax.nn.softmax(dots, axis=-1)
    out = jnp.einsum("bhnk,bhkd->bhnd", attn, vh)
    out = out.transpose(0, 2, 1, 3).reshape(b, n, heads * dim_head)
    return jnp.einsum("bne,de->bnd", out, lp["wo"]) + lp["bo"]


def _ff_ref(x, lp):
    h = jnp.einsum("bnd,md->bnm", x, lp["w1"]) + lp["b1"]
    h = jax.nn.gelu(h, approximate=False)
    return jnp.einsum("bnm,dm->bnd", h, lp["w2"]) + lp["b2"]


def linformer_ref(x, layers, *, heads, dim_head):
    for lp in layers:
        x = x + _attn_ref(_ln_ref(x, lp["ln1_g"], lp["ln1_b"]), lp, heads, dim_head)
        x = x + _ff_ref(_ln_ref(x, lp["ln2_g"], lp["ln2_b"]), lp)
    return x


# -----------------------------------------------------------------------------
if __name__ == "__main__":
    # small shapes: batch=2, seq_len=256, dim=32, heads=4, dim_head=8, k=8,
    # mlp_dim=64, depth=2.  seq=256 so both the sequence-tiled compression
    # (tn=128 -> 2 accumulation steps) and query tiling (tq=64 -> 4 tiles) are
    # exercised; mlp chunk=32 exercises the FF chunk loop.
    B, N, D = 2, 256, 32
    HEADS, DIM_HEAD, K, MLP, DEPTH = 4, 8, 8, 64, 2
    TQ, TN, M_CHUNK = 64, 128, 32

    key = jax.random.PRNGKey(0)
    kx, kp = jax.random.split(key)
    x = jax.random.normal(kx, (B, N, D), dtype=jnp.float32)

    master = init_linformer_params(kp, dim=D, depth=DEPTH, heads=HEADS,
                                   dim_head=DIM_HEAD, mlp_dim=MLP,
                                   seq_len=N, k=K)
    kparams = prep_kernel_params(master, dim_head=DIM_HEAD)

    fwd = jax.jit(functools.partial(linformer_forward, heads=HEADS,
                                    dim_head=DIM_HEAD, tq=TQ, tn=TN,
                                    m_chunk=M_CHUNK))
    out = jax.block_until_ready(fwd(x, kparams))

    # Reference: PyTorch-faithful f32 math on the same bf16-quantized weights
    # the kernel consumes (bf16 activation rounding inside the kernel is the
    # remaining difference -> ~1e-2 scale tolerance).
    ref = linformer_ref(x, quantize_master(master), heads=HEADS,
                        dim_head=DIM_HEAD)

    assert out.shape == (B, N, D)
    max_err = float(jnp.max(jnp.abs(out - ref)))
    assert jnp.allclose(out, ref, atol=3e-2, rtol=3e-2), \
        f"mismatch vs reference: max abs err {max_err}"

    print("KERNEL_OK")
</pallas_src>

<mosaic_0001>
module attributes {stable_mosaic.version = 11 : i64} {
  func.func @_attn_ff_kernel(%arg0: i32, %arg1: i32, %arg2: memref<1x64x32xf32, #tpu.memory_space<vmem>>, %arg3: memref<1x32xf32, #tpu.memory_space<vmem>>, %arg4: memref<1x32xf32, #tpu.memory_space<vmem>>, %arg5: memref<32x32xbf16, #tpu.memory_space<vmem>>, %arg6: memref<1x32x8xf32, #tpu.memory_space<vmem>>, %arg7: memref<1x32x8xf32, #tpu.memory_space<vmem>>, %arg8: memref<32x32xbf16, #tpu.memory_space<vmem>>, %arg9: memref<1x32xf32, #tpu.memory_space<vmem>>, %arg10: memref<1x32xf32, #tpu.memory_space<vmem>>, %arg11: memref<1x32xf32, #tpu.memory_space<vmem>>, %arg12: memref<32x64xbf16, #tpu.memory_space<vmem>>, %arg13: memref<1x64xf32, #tpu.memory_space<vmem>>, %arg14: memref<64x32xbf16, #tpu.memory_space<vmem>>, %arg15: memref<1x32xf32, #tpu.memory_space<vmem>>, %arg16: memref<1x64x32xf32, #tpu.memory_space<vmem>>) attributes {dimension_semantics = [#tpu.dimension_semantics<parallel>, #tpu.dimension_semantics<parallel>], iteration_bounds = array<i64: 2, 4>, scalar_prefetch = 0 : i64, scratch_operands = 0 : i64, tpu.core_type = #tpu.core_type<tc>, window_params = [{transform_indices = @transform_0, window_bounds = array<i64: 1, 64, 32>}, {pipeline_mode = #tpu.pipeline_mode<synchronous>, transform_indices = @transform_1, window_bounds = array<i64: 1, 32>}, {pipeline_mode = #tpu.pipeline_mode<synchronous>, transform_indices = @transform_2, window_bounds = array<i64: 1, 32>}, {pipeline_mode = #tpu.pipeline_mode<synchronous>, transform_indices = @transform_3, window_bounds = array<i64: 32, 32>}, {transform_indices = @transform_4, window_bounds = array<i64: 1, 32, 8>}, {transform_indices = @transform_5, window_bounds = array<i64: 1, 32, 8>}, {pipeline_mode = #tpu.pipeline_mode<synchronous>, transform_indices = @transform_6, window_bounds = array<i64: 32, 32>}, {pipeline_mode = #tpu.pipeline_mode<synchronous>, transform_indices = @transform_7, window_bounds = array<i64: 1, 32>}, {pipeline_mode = #tpu.pipeline_mode<synchronous>, transform_indices = @transform_8, window_bounds = array<i64: 1, 32>}, {pipeline_mode = #tpu.pipeline_mode<synchronous>, transform_indices = @transform_9, window_bounds = array<i64: 1, 32>}, {pipeline_mode = #tpu.pipeline_mode<synchronous>, transform_indices = @transform_10, window_bounds = array<i64: 32, 64>}, {pipeline_mode = #tpu.pipeline_mode<synchronous>, transform_indices = @transform_11, window_bounds = array<i64: 1, 64>}, {pipeline_mode = #tpu.pipeline_mode<synchronous>, transform_indices = @transform_12, window_bounds = array<i64: 64, 32>}, {pipeline_mode = #tpu.pipeline_mode<synchronous>, transform_indices = @transform_13, window_bounds = array<i64: 1, 32>}, {transform_indices = @transform_14, window_bounds = array<i64: 1, 64, 32>}]} {
    %c0 = arith.constant 0 : index
    %c0_0 = arith.constant 0 : index
    %c0_1 = arith.constant 0 : index
    %0 = vector.load %arg2[%c0, %c0_0, %c0_1] : memref<1x64x32xf32, #tpu.memory_space<vmem>>, vector<1x64x32xf32>
    %1 = vector.shape_cast %0 : vector<1x64x32xf32> to vector<64x32xf32>
    %c0_2 = arith.constant 0 : index
    %c0_3 = arith.constant 0 : index
    %2 = vector.load %arg3[%c0_2, %c0_3] : memref<1x32xf32, #tpu.memory_space<vmem>>, vector<1x32xf32>
    %c0_4 = arith.constant 0 : index
    %c0_5 = arith.constant 0 : index
    %3 = vector.load %arg4[%c0_4, %c0_5] : memref<1x32xf32, #tpu.memory_space<vmem>>, vector<1x32xf32>
    %cst = arith.constant dense<0.000000e+00> : vector<64xf32>
    %4 = vector.multi_reduction <add>, %1, %cst [1] : vector<64x32xf32> to vector<64xf32>
    %5 = vector.shape_cast %4 : vector<64xf32> to vector<64x1xf32>
    %cst_6 = arith.constant 3.200000e+01 : f32
    %6 = vector.broadcast %cst_6 : f32 to vector<64x1xf32>
    %7 = arith.divf %5, %6 : vector<64x1xf32>
    %8 = vector.broadcast %7 : vector<64x1xf32> to vector<64x32xf32>
    %9 = arith.subf %1, %8 : vector<64x32xf32>
    %10 = arith.mulf %9, %9 : vector<64x32xf32>
    %cst_7 = arith.constant dense<0.000000e+00> : vector<64xf32>
    %11 = vector.multi_reduction <add>, %10, %cst_7 [1] : vector<64x32xf32> to vector<64xf32>
    %12 = vector.shape_cast %11 : vector<64xf32> to vector<64x1xf32>
    %cst_8 = arith.constant 3.200000e+01 : f32
    %13 = vector.broadcast %cst_8 : f32 to vector<64x1xf32>
    %14 = arith.divf %12, %13 : vector<64x1xf32>
    %cst_9 = arith.constant 9.99999974E-6 : f32
    %15 = vector.broadcast %cst_9 : f32 to vector<64x1xf32>
    %16 = arith.addf %14, %15 : vector<64x1xf32>
    %17 = math.rsqrt %16 : vector<64x1xf32>
    %18 = vector.broadcast %17 : vector<64x1xf32> to vector<64x32xf32>
    %19 = arith.mulf %9, %18 : vector<64x32xf32>
    %20 = vector.broadcast %2 : vector<1x32xf32> to vector<64x32xf32>
    %21 = arith.mulf %19, %20 : vector<64x32xf32>
    %22 = vector.broadcast %3 : vector<1x32xf32> to vector<64x32xf32>
    %23 = arith.addf %21, %22 : vector<64x32xf32>
    %24 = arith.truncf %23 : vector<64x32xf32> to vector<64x32xbf16>
    %c0_10 = arith.constant 0 : index
    %c0_11 = arith.constant 0 : index
    %25 = vector.load %arg5[%c0_10, %c0_11] : memref<32x32xbf16, #tpu.memory_space<vmem>>, vector<32x32xbf16>
    %cst_12 = arith.constant dense<0.000000e+00> : vector<64x32xf32>
    %26 = tpu.matmul %24, %25, %cst_12 {dimension_numbers = #tpu.dot_dimension_numbers<[1], [0], [0], [1], [0, 0, 1, 1], [], []>} : vector<64x32xbf16>, vector<32x32xbf16>, vector<64x32xf32> -> vector<64x32xf32>
    %27 = vector.extract_strided_slice %26 {offsets = [0, 0], sizes = [64, 8], strides = [1, 1]} : vector<64x32xf32> to vector<64x8xf32>
    %c0_13 = arith.constant 0 : index
    %c0_14 = arith.constant 0 : index
    %c0_15 = arith.constant 0 : index
    %28 = vector.load %arg6[%c0_13, %c0_14, %c0_15] : memref<1x32x8xf32, #tpu.memory_space<vmem>>, vector<1x8x8xf32>
    %29 = vector.shape_cast %28 : vector<1x8x8xf32> to vector<8x8xf32>
    %cst_16 = arith.constant dense<0.000000e+00> : vector<64x8xf32>
    %30 = tpu.matmul %27, %29, %cst_16 {dimension_numbers = #tpu.dot_dimension_numbers<[1], [0], [0], [1], [0, 0, 1, 1], [], []>} : vector<64x8xf32>, vector<8x8xf32>, vector<64x8xf32> -> vector<64x8xf32>
    %cst_17 = arith.constant dense<0xFF800000> : vector<64xf32>
    %31 = vector.multi_reduction <maximumf>, %30, %cst_17 [1] : vector<64x8xf32> to vector<64xf32>
    %32 = vector.shape_cast %31 : vector<64xf32> to vector<64x1xf32>
    %33 = vector.broadcast %32 : vector<64x1xf32> to vector<64x8xf32>
    %34 = arith.subf %30, %33 : vector<64x8xf32>
    %35 = math.exp %34 : vector<64x8xf32>
    %cst_18 = arith.constant dense<0.000000e+00> : vector<64xf32>
    %36 = vector.multi_reduction <add>, %35, %cst_18 [1] : vector<64x8xf32> to vector<64xf32>
    %37 = vector.shape_cast %36 : vector<64xf32> to vector<64x1xf32>
    %38 = tpu.reciprocal %37 {approx = true} : vector<64x1xf32> -> vector<64x1xf32>
    %39 = vector.broadcast %38 : vector<64x1xf32> to vector<64x8xf32>
    %40 = arith.mulf %35, %39 : vector<64x8xf32>
    %c0_19 = arith.constant 0 : index
    %c0_20 = arith.constant 0 : index
    %c0_21 = arith.constant 0 : index
    %41 = vector.load %arg7[%c0_19, %c0_20, %c0_21] : memref<1x32x8xf32, #tpu.memory_space<vmem>>, vector<1x8x8xf32>
    %42 = vector.shape_cast %41 : vector<1x8x8xf32> to vector<8x8xf32>
    %cst_22 = arith.constant dense<0.000000e+00> : vector<64x8xf32>
    %43 = tpu.matmul %40, %42, %cst_22 {dimension_numbers = #tpu.dot_dimension_numbers<[1], [1], [0], [0], [0, 0, 1, 0], [], []>} : vector<64x8xf32>, vector<8x8xf32>, vector<64x8xf32> -> vector<64x8xf32>
    %44 = vector.extract_strided_slice %26 {offsets = [0, 8], sizes = [64, 8], strides = [1, 1]} : vector<64x32xf32> to vector<64x8xf32>
    %c0_23 = arith.constant 0 : index
    %c8 = arith.constant 8 : index
    %c0_24 = arith.constant 0 : index
    %45 = vector.load %arg6[%c0_23, %c8, %c0_24] : memref<1x32x8xf32, #tpu.memory_space<vmem>>, vector<1x8x8xf32>
    %46 = vector.shape_cast %45 : vector<1x8x8xf32> to vector<8x8xf32>
    %cst_25 = arith.constant dense<0.000000e+00> : vector<64x8xf32>
    %47 = tpu.matmul %44, %46, %cst_25 {dimension_numbers = #tpu.dot_dimension_numbers<[1], [0], [0], [1], [0, 0, 1, 1], [], []>} : vector<64x8xf32>, vector<8x8xf32>, vector<64x8xf32> -> vector<64x8xf32>
    %cst_26 = arith.constant dense<0xFF800000> : vector<64xf32>
    %48 = vector.multi_reduction <maximumf>, %47, %cst_26 [1] : vector<64x8xf32> to vector<64xf32>
    %49 = vector.shape_cast %48 : vector<64xf32> to vector<64x1xf32>
    %50 = vector.broadcast %49 : vector<64x1xf32> to vector<64x8xf32>
    %51 = arith.subf %47, %50 : vector<64x8xf32>
    %52 = math.exp %51 : vector<64x8xf32>
    %cst_27 = arith.constant dense<0.000000e+00> : vector<64xf32>
    %53 = vector.multi_reduction <add>, %52, %cst_27 [1] : vector<64x8xf32> to vector<64xf32>
    %54 = vector.shape_cast %53 : vector<64xf32> to vector<64x1xf32>
    %55 = tpu.reciprocal %54 {approx = true} : vector<64x1xf32> -> vector<64x1xf32>
    %56 = vector.broadcast %55 : vector<64x1xf32> to vector<64x8xf32>
    %57 = arith.mulf %52, %56 : vector<64x8xf32>
    %c0_28 = arith.constant 0 : index
    %c8_29 = arith.constant 8 : index
    %c0_30 = arith.constant 0 : index
    %58 = vector.load %arg7[%c0_28, %c8_29, %c0_30] : memref<1x32x8xf32, #tpu.memory_space<vmem>>, vector<1x8x8xf32>
    %59 = vector.shape_cast %58 : vector<1x8x8xf32> to vector<8x8xf32>
    %cst_31 = arith.constant dense<0.000000e+00> : vector<64x8xf32>
    %60 = tpu.matmul %57, %59, %cst_31 {dimension_numbers = #tpu.dot_dimension_numbers<[1], [1], [0], [0], [0, 0, 1, 0], [], []>} : vector<64x8xf32>, vector<8x8xf32>, vector<64x8xf32> -> vector<64x8xf32>
    %61 = vector.extract_strided_slice %26 {offsets = [0, 16], sizes = [64, 8], strides = [1, 1]} : vector<64x32xf32> to vector<64x8xf32>
    %c0_32 = arith.constant 0 : index
    %c16 = arith.constant 16 : index
    %c0_33 = arith.constant 0 : index
    %62 = vector.load %arg6[%c0_32, %c16, %c0_33] : memref<1x32x8xf32, #tpu.memory_space<vmem>>, vector<1x8x8xf32>
    %63 = vector.shape_cast %62 : vector<1x8x8xf32> to vector<8x8xf32>
    %cst_34 = arith.constant dense<0.000000e+00> : vector<64x8xf32>
    %64 = tpu.matmul %61, %63, %cst_34 {dimension_numbers = #tpu.dot_dimension_numbers<[1], [0], [0], [1], [0, 0, 1, 1], [], []>} : vector<64x8xf32>, vector<8x8xf32>, vector<64x8xf32> -> vector<64x8xf32>
    %cst_35 = arith.constant dense<0xFF800000> : vector<64xf32>
    %65 = vector.multi_reduction <maximumf>, %64, %cst_35 [1] : vector<64x8xf32> to vector<64xf32>
    %66 = vector.shape_cast %65 : vector<64xf32> to vector<64x1xf32>
    %67 = vector.broadcast %66 : vector<64x1xf32> to vector<64x8xf32>
    %68 = arith.subf %64, %67 : vector<64x8xf32>
    %69 = math.exp %68 : vector<64x8xf32>
    %cst_36 = arith.constant dense<0.000000e+00> : vector<64xf32>
    %70 = vector.multi_reduction <add>, %69, %cst_36 [1] : vector<64x8xf32> to vector<64xf32>
    %71 = vector.shape_cast %70 : vector<64xf32> to vector<64x1xf32>
    %72 = tpu.reciprocal %71 {approx = true} : vector<64x1xf32> -> vector<64x1xf32>
    %73 = vector.broadcast %72 : vector<64x1xf32> to vector<64x8xf32>
    %74 = arith.mulf %69, %73 : vector<64x8xf32>
    %c0_37 = arith.constant 0 : index
    %c16_38 = arith.constant 16 : index
    %c0_39 = arith.constant 0 : index
    %75 = vector.load %arg7[%c0_37, %c16_38, %c0_39] : memref<1x32x8xf32, #tpu.memory_space<vmem>>, vector<1x8x8xf32>
    %76 = vector.shape_cast %75 : vector<1x8x8xf32> to vector<8x8xf32>
    %cst_40 = arith.constant dense<0.000000e+00> : vector<64x8xf32>
    %77 = tpu.matmul %74, %76, %cst_40 {dimension_numbers = #tpu.dot_dimension_numbers<[1], [1], [0], [0], [0, 0, 1, 0], [], []>} : vector<64x8xf32>, vector<8x8xf32>, vector<64x8xf32> -> vector<64x8xf32>
    %78 = vector.extract_strided_slice %26 {offsets = [0, 24], sizes = [64, 8], strides = [1, 1]} : vector<64x32xf32> to vector<64x8xf32>
    %c0_41 = arith.constant 0 : index
    %c24 = arith.constant 24 : index
    %c0_42 = arith.constant 0 : index
    %79 = vector.load %arg6[%c0_41, %c24, %c0_42] : memref<1x32x8xf32, #tpu.memory_space<vmem>>, vector<1x8x8xf32>
    %80 = vector.shape_cast %79 : vector<1x8x8xf32> to vector<8x8xf32>
    %cst_43 = arith.constant dense<0.000000e+00> : vector<64x8xf32>
    %81 = tpu.matmul %78, %80, %cst_43 {dimension_numbers = #tpu.dot_dimension_numbers<[1], [0], [0], [1], [0, 0, 1, 1], [], []>} : vector<64x8xf32>, vector<8x8xf32>, vector<64x8xf32> -> vector<64x8xf32>
    %cst_44 = arith.constant dense<0xFF800000> : vector<64xf32>
    %82 = vector.multi_reduction <maximumf>, %81, %cst_44 [1] : vector<64x8xf32> to vector<64xf32>
    %83 = vector.shape_cast %82 : vector<64xf32> to vector<64x1xf32>
    %84 = vector.broadcast %83 : vector<64x1xf32> to vector<64x8xf32>
    %85 = arith.subf %81, %84 : vector<64x8xf32>
    %86 = math.exp %85 : vector<64x8xf32>
    %cst_45 = arith.constant dense<0.000000e+00> : vector<64xf32>
    %87 = vector.multi_reduction <add>, %86, %cst_45 [1] : vector<64x8xf32> to vector<64xf32>
    %88 = vector.shape_cast %87 : vector<64xf32> to vector<64x1xf32>
    %89 = tpu.reciprocal %88 {approx = true} : vector<64x1xf32> -> vector<64x1xf32>
    %90 = vector.broadcast %89 : vector<64x1xf32> to vector<64x8xf32>
    %91 = arith.mulf %86, %90 : vector<64x8xf32>
    %c0_46 = arith.constant 0 : index
    %c24_47 = arith.constant 24 : index
    %c0_48 = arith.constant 0 : index
    %92 = vector.load %arg7[%c0_46, %c24_47, %c0_48] : memref<1x32x8xf32, #tpu.memory_space<vmem>>, vector<1x8x8xf32>
    %93 = vector.shape_cast %92 : vector<1x8x8xf32> to vector<8x8xf32>
    %cst_49 = arith.constant dense<0.000000e+00> : vector<64x8xf32>
    %94 = tpu.matmul %91, %93, %cst_49 {dimension_numbers = #tpu.dot_dimension_numbers<[1], [1], [0], [0], [0, 0, 1, 0], [], []>} : vector<64x8xf32>, vector<8x8xf32>, vector<64x8xf32> -> vector<64x8xf32>
    %95 = tpu.concatenate %43, %60, %77, %94 in 1 : vector<64x8xf32>, vector<64x8xf32>, vector<64x8xf32>, vector<64x8xf32> -> vector<64x32xf32>
    %96 = arith.truncf %95 : vector<64x32xf32> to vector<64x32xbf16>
    %c0_50 = arith.constant 0 : index
    %c0_51 = arith.constant 0 : index
    %97 = vector.load %arg9[%c0_50, %c0_51] : memref<1x32xf32, #tpu.memory_space<vmem>>, vector<1x32xf32>
    %98 = vector.broadcast %97 : vector<1x32xf32> to vector<64x32xf32>
    %99 = arith.addf %1, %98 : vector<64x32xf32>
    %c0_52 = arith.constant 0 : index
    %c0_53 = arith.constant 0 : index
    %100 = vector.load %arg8[%c0_52, %c0_53] : memref<32x32xbf16, #tpu.memory_space<vmem>>, vector<32x32xbf16>
    %cst_54 = arith.constant dense<0.000000e+00> : vector<64x32xf32>
    %101 = tpu.matmul %96, %100, %cst_54 {dimension_numbers = #tpu.dot_dimension_numbers<[1], [0], [0], [1], [0, 0, 1, 1], [], []>} : vector<64x32xbf16>, vector<32x32xbf16>, vector<64x32xf32> -> vector<64x32xf32>
    %102 = arith.addf %99, %101 : vector<64x32xf32>
    %c0_55 = arith.constant 0 : index
    %c0_56 = arith.constant 0 : index
    %103 = vector.load %arg10[%c0_55, %c0_56] : memref<1x32xf32, #tpu.memory_space<vmem>>, vector<1x32xf32>
    %c0_57 = arith.constant 0 : index
    %c0_58 = arith.constant 0 : index
    %104 = vector.load %arg11[%c0_57, %c0_58] : memref<1x32xf32, #tpu.memory_space<vmem>>, vector<1x32xf32>
    %cst_59 = arith.constant dense<0.000000e+00> : vector<64xf32>
    %105 = vector.multi_reduction <add>, %102, %cst_59 [1] : vector<64x32xf32> to vector<64xf32>
    %106 = vector.shape_cast %105 : vector<64xf32> to vector<64x1xf32>
    %cst_60 = arith.constant 3.200000e+01 : f32
    %107 = vector.broadcast %cst_60 : f32 to vector<64x1xf32>
    %108 = arith.divf %106, %107 : vector<64x1xf32>
    %109 = vector.broadcast %108 : vector<64x1xf32> to vector<64x32xf32>
    %110 = arith.subf %102, %109 : vector<64x32xf32>
    %111 = arith.mulf %110, %110 : vector<64x32xf32>
    %cst_61 = arith.constant dense<0.000000e+00> : vector<64xf32>
    %112 = vector.multi_reduction <add>, %111, %cst_61 [1] : vector<64x32xf32> to vector<64xf32>
    %113 = vector.shape_cast %112 : vector<64xf32> to vector<64x1xf32>
    %cst_62 = arith.constant 3.200000e+01 : f32
    %114 = vector.broadcast %cst_62 : f32 to vector<64x1xf32>
    %115 = arith.divf %113, %114 : vector<64x1xf32>
    %cst_63 = arith.constant 9.99999974E-6 : f32
    %116 = vector.broadcast %cst_63 : f32 to vector<64x1xf32>
    %117 = arith.addf %115, %116 : vector<64x1xf32>
    %118 = math.rsqrt %117 : vector<64x1xf32>
    %119 = vector.broadcast %118 : vector<64x1xf32> to vector<64x32xf32>
    %120 = arith.mulf %110, %119 : vector<64x32xf32>
    %121 = vector.broadcast %103 : vector<1x32xf32> to vector<64x32xf32>
    %122 = arith.mulf %120, %121 : vector<64x32xf32>
    %123 = vector.broadcast %104 : vector<1x32xf32> to vector<64x32xf32>
    %124 = arith.addf %122, %123 : vector<64x32xf32>
    %125 = arith.truncf %124 : vector<64x32xf32> to vector<64x32xbf16>
    %c0_64 = arith.constant 0 : index
    %c0_65 = arith.constant 0 : index
    %126 = vector.load %arg15[%c0_64, %c0_65] : memref<1x32xf32, #tpu.memory_space<vmem>>, vector<1x32xf32>
    %127 = vector.broadcast %126 : vector<1x32xf32> to vector<64x32xf32>
    %128 = arith.addf %102, %127 : vector<64x32xf32>
    %c0_66 = arith.constant 0 : index
    %c0_67 = arith.constant 0 : index
    %129 = vector.load %arg12[%c0_66, %c0_67] : memref<32x64xbf16, #tpu.memory_space<vmem>>, vector<32x32xbf16>
    %cst_68 = arith.constant dense<0.000000e+00> : vector<64x32xf32>
    %130 = tpu.matmul %125, %129, %cst_68 {dimension_numbers = #tpu.dot_dimension_numbers<[1], [0], [0], [1], [0, 0, 1, 1], [], []>} : vector<64x32xbf16>, vector<32x32xbf16>, vector<64x32xf32> -> vector<64x32xf32>
    %c0_69 = arith.constant 0 : index
    %c0_70 = arith.constant 0 : index
    %131 = vector.load %arg13[%c0_69, %c0_70] : memref<1x64xf32, #tpu.memory_space<vmem>>, vector<1x32xf32>
    %132 = vector.broadcast %131 : vector<1x32xf32> to vector<64x32xf32>
    %133 = arith.addf %130, %132 : vector<64x32xf32>
    %cst_71 = arith.constant 5.000000e-01 : f32
    %134 = vector.broadcast %cst_71 : f32 to vector<64x32xf32>
    %135 = arith.mulf %134, %133 : vector<64x32xf32>
    %cst_72 = arith.constant 4.471500e-02 : f32
    %136 = vector.broadcast %cst_72 : f32 to vector<64x32xf32>
    %137 = arith.mulf %136, %133 : vector<64x32xf32>
    %138 = arith.mulf %137, %133 : vector<64x32xf32>
    %139 = arith.mulf %138, %133 : vector<64x32xf32>
    %140 = arith.addf %133, %139 : vector<64x32xf32>
    %cst_73 = arith.constant 0.797884583 : f32
    %141 = vector.broadcast %cst_73 : f32 to vector<64x32xf32>
    %142 = arith.mulf %141, %140 : vector<64x32xf32>
    %143 = math.tanh %142 : vector<64x32xf32>
    %cst_74 = arith.constant 1.000000e+00 : f32
    %144 = vector.broadcast %cst_74 : f32 to vector<64x32xf32>
    %145 = arith.addf %144, %143 : vector<64x32xf32>
    %146 = arith.mulf %135, %145 : vector<64x32xf32>
    %147 = arith.truncf %146 : vector<64x32xf32> to vector<64x32xbf16>
    %c0_75 = arith.constant 0 : index
    %c0_76 = arith.constant 0 : index
    %148 = vector.load %arg14[%c0_75, %c0_76] : memref<64x32xbf16, #tpu.memory_space<vmem>>, vector<32x32xbf16>
    %cst_77 = arith.constant dense<0.000000e+00> : vector<64x32xf32>
    %149 = tpu.matmul %147, %148, %cst_77 {dimension_numbers = #tpu.dot_dimension_numbers<[1], [0], [0], [1], [0, 0, 1, 1], [], []>} : vector<64x32xbf16>, vector<32x32xbf16>, vector<64x32xf32> -> vector<64x32xf32>
    %150 = arith.addf %128, %149 : vector<64x32xf32>
    %c0_78 = arith.constant 0 : index
    %c32 = arith.constant 32 : index
    %151 = vector.load %arg12[%c0_78, %c32] : memref<32x64xbf16, #tpu.memory_space<vmem>>, vector<32x32xbf16>
    %cst_79 = arith.constant dense<0.000000e+00> : vector<64x32xf32>
    %152 = tpu.matmul %125, %151, %cst_79 {dimension_numbers = #tpu.dot_dimension_numbers<[1], [0], [0], [1], [0, 0, 1, 1], [], []>} : vector<64x32xbf16>, vector<32x32xbf16>, vector<64x32xf32> -> vector<64x32xf32>
    %c0_80 = arith.constant 0 : index
    %c32_81 = arith.constant 32 : index
    %153 = vector.load %arg13[%c0_80, %c32_81] : memref<1x64xf32, #tpu.memory_space<vmem>>, vector<1x32xf32>
    %154 = vector.broadcast %153 : vector<1x32xf32> to vector<64x32xf32>
    %155 = arith.addf %152, %154 : vector<64x32xf32>
    %cst_82 = arith.constant 5.000000e-01 : f32
    %156 = vector.broadcast %cst_82 : f32 to vector<64x32xf32>
    %157 = arith.mulf %156, %155 : vector<64x32xf32>
    %cst_83 = arith.constant 4.471500e-02 : f32
    %158 = vector.broadcast %cst_83 : f32 to vector<64x32xf32>
    %159 = arith.mulf %158, %155 : vector<64x32xf32>
    %160 = arith.mulf %159, %155 : vector<64x32xf32>
    %161 = arith.mulf %160, %155 : vector<64x32xf32>
    %162 = arith.addf %155, %161 : vector<64x32xf32>
    %cst_84 = arith.constant 0.797884583 : f32
    %163 = vector.broadcast %cst_84 : f32 to vector<64x32xf32>
    %164 = arith.mulf %163, %162 : vector<64x32xf32>
    %165 = math.tanh %164 : vector<64x32xf32>
    %cst_85 = arith.constant 1.000000e+00 : f32
    %166 = vector.broadcast %cst_85 : f32 to vector<64x32xf32>
    %167 = arith.addf %166, %165 : vector<64x32xf32>
    %168 = arith.mulf %157, %167 : vector<64x32xf32>
    %169 = arith.truncf %168 : vector<64x32xf32> to vector<64x32xbf16>
    %c32_86 = arith.constant 32 : index
    %c0_87 = arith.constant 0 : index
    %170 = vector.load %arg14[%c32_86, %c0_87] : memref<64x32xbf16, #tpu.memory_space<vmem>>, vector<32x32xbf16>
    %cst_88 = arith.constant dense<0.000000e+00> : vector<64x32xf32>
    %171 = tpu.matmul %169, %170, %cst_88 {dimension_numbers = #tpu.dot_dimension_numbers<[1], [0], [0], [1], [0, 0, 1, 1], [], []>} : vector<64x32xbf16>, vector<32x32xbf16>, vector<64x32xf32> -> vector<64x32xf32>
    %172 = arith.addf %150, %171 : vector<64x32xf32>
    %c0_89 = arith.constant 0 : index
    %c0_90 = arith.constant 0 : index
    %c0_91 = arith.constant 0 : index
    %173 = vector.load %arg16[%c0_89, %c0_90, %c0_91] : memref<1x64x32xf32, #tpu.memory_space<vmem>>, vector<1x64x32xf32>
    %174 = vector.shape_cast %173 : vector<1x64x32xf32> to vector<64x32xf32>
    %175 = vector.shape_cast %172 : vector<64x32xf32> to vector<1x64x32xf32>
    tpu.vector_store %arg16[%c0_89, %c0_90, %c0_91], %175 {strides = array<i32>} : memref<1x64x32xf32, #tpu.memory_space<vmem>>, vector<1x64x32xf32>,
    return
  }
  func.func @transform_0(%arg0: i32, %arg1: i32) -> (i32, i32, i32) {
    %c0_i32 = arith.constant 0 : i32
    %c0_i32_0 = arith.constant 0 : i32
    return %arg0, %arg1, %c0_i32 : i32, i32, i32
  }
  func.func @transform_1(%arg0: i32, %arg1: i32) -> (i32, i32) {
    %c0_i32 = arith.constant 0 : i32
    %c0_i32_0 = arith.constant 0 : i32
    %c0_i32_1 = arith.constant 0 : i32
    return %c0_i32, %c0_i32_0 : i32, i32
  }
  func.func @transform_2(%arg0: i32, %arg1: i32) -> (i32, i32) {
    %c0_i32 = arith.constant 0 : i32
    %c0_i32_0 = arith.constant 0 : i32
    %c0_i32_1 = arith.constant 0 : i32
    return %c0_i32, %c0_i32_0 : i32, i32
  }
  func.func @transform_3(%arg0: i32, %arg1: i32) -> (i32, i32) {
    %c0_i32 = arith.constant 0 : i32
    %c0_i32_0 = arith.constant 0 : i32
    %c0_i32_1 = arith.constant 0 : i32
    return %c0_i32, %c0_i32_0 : i32, i32
  }
  func.func @transform_4(%arg0: i32, %arg1: i32) -> (i32, i32, i32) {
    %c0_i32 = arith.constant 0 : i32
    %c0_i32_0 = arith.constant 0 : i32
    %c0_i32_1 = arith.constant 0 : i32
    return %arg0, %c0_i32, %c0_i32_0 : i32, i32, i32
  }
  func.func @transform_5(%arg0: i32, %arg1: i32) -> (i32, i32, i32) {
    %c0_i32 = arith.constant 0 : i32
    %c0_i32_0 = arith.constant 0 : i32
    %c0_i32_1 = arith.constant 0 : i32
    return %arg0, %c0_i32, %c0_i32_0 : i32, i32, i32
  }
  func.func @transform_6(%arg0: i32, %arg1: i32) -> (i32, i32) {
    %c0_i32 = arith.constant 0 : i32
    %c0_i32_0 = arith.constant 0 : i32
    %c0_i32_1 = arith.constant 0 : i32
    return %c0_i32, %c0_i32_0 : i32, i32
  }
  func.func @transform_7(%arg0: i32, %arg1: i32) -> (i32, i32) {
    %c0_i32 = arith.constant 0 : i32
    %c0_i32_0 = arith.constant 0 : i32
    %c0_i32_1 = arith.constant 0 : i32
    return %c0_i32, %c0_i32_0 : i32, i32
  }
  func.func @transform_8(%arg0: i32, %arg1: i32) -> (i32, i32) {
    %c0_i32 = arith.constant 0 : i32
    %c0_i32_0 = arith.constant 0 : i32
    %c0_i32_1 = arith.constant 0 : i32
    return %c0_i32, %c0_i32_0 : i32, i32
  }
  func.func @transform_9(%arg0: i32, %arg1: i32) -> (i32, i32) {
    %c0_i32 = arith.constant 0 : i32
    %c0_i32_0 = arith.constant 0 : i32
    %c0_i32_1 = arith.constant 0 : i32
    return %c0_i32, %c0_i32_0 : i32, i32
  }
  func.func @transform_10(%arg0: i32, %arg1: i32) -> (i32, i32) {
    %c0_i32 = arith.constant 0 : i32
    %c0_i32_0 = arith.constant 0 : i32
    %c0_i32_1 = arith.constant 0 : i32
    return %c0_i32, %c0_i32_0 : i32, i32
  }
  func.func @transform_11(%arg0: i32, %arg1: i32) -> (i32, i32) {
    %c0_i32 = arith.constant 0 : i32
    %c0_i32_0 = arith.constant 0 : i32
    %c0_i32_1 = arith.constant 0 : i32
    return %c0_i32, %c0_i32_0 : i32, i32
  }
  func.func @transform_12(%arg0: i32, %arg1: i32) -> (i32, i32) {
    %c0_i32 = arith.constant 0 : i32
    %c0_i32_0 = arith.constant 0 : i32
    %c0_i32_1 = arith.constant 0 : i32
    return %c0_i32, %c0_i32_0 : i32, i32
  }
  func.func @transform_13(%arg0: i32, %arg1: i32) -> (i32, i32) {
    %c0_i32 = arith.constant 0 : i32
    %c0_i32_0 = arith.constant 0 : i32
    %c0_i32_1 = arith.constant 0 : i32
    return %c0_i32, %c0_i32_0 : i32, i32
  }
  func.func @transform_14(%arg0: i32, %arg1: i32) -> (i32, i32, i32) {
    %c0_i32 = arith.constant 0 : i32
    %c0_i32_0 = arith.constant 0 : i32
    return %arg0, %arg1, %c0_i32 : i32, i32, i32
  }
}

module attributes {stable_mosaic.version = 11 : i64} {
  func.func @_kv_compress_kernel(%arg0: i32, %arg1: i32, %arg2: memref<1x128x32xf32, #tpu.memory_space<vmem>>, %arg3: memref<1x32xf32, #tpu.memory_space<vmem>>, %arg4: memref<1x32xf32, #tpu.memory_space<vmem>>, %arg5: memref<8x128xbf16, #tpu.memory_space<vmem>>, %arg6: memref<8x128xbf16, #tpu.memory_space<vmem>>, %arg7: memref<32x32xbf16, #tpu.memory_space<vmem>>, %arg8: memref<32x32xbf16, #tpu.memory_space<vmem>>, %arg9: memref<1x32x8xf32, #tpu.memory_space<vmem>>, %arg10: memref<1x32x8xf32, #tpu.memory_space<vmem>>, %arg11: memref<8x32xf32, #tpu.memory_space<vmem>>, %arg12: memref<8x32xf32, #tpu.memory_space<vmem>>) attributes {dimension_semantics = [#tpu.dimension_semantics<parallel>, #tpu.dimension_semantics<arbitrary>], iteration_bounds = array<i64: 2, 2>, scalar_prefetch = 0 : i64, scratch_operands = 2 : i64, tpu.core_type = #tpu.core_type<tc>, window_params = [{transform_indices = @transform_0, window_bounds = array<i64: 1, 128, 32>}, {pipeline_mode = #tpu.pipeline_mode<synchronous>, transform_indices = @transform_1, window_bounds = array<i64: 1, 32>}, {pipeline_mode = #tpu.pipeline_mode<synchronous>, transform_indices = @transform_2, window_bounds = array<i64: 1, 32>}, {transform_indices = @transform_3, window_bounds = array<i64: 8, 128>}, {transform_indices = @transform_4, window_bounds = array<i64: 8, 128>}, {pipeline_mode = #tpu.pipeline_mode<synchronous>, transform_indices = @transform_5, window_bounds = array<i64: 32, 32>}, {pipeline_mode = #tpu.pipeline_mode<synchronous>, transform_indices = @transform_6, window_bounds = array<i64: 32, 32>}, {transform_indices = @transform_7, window_bounds = array<i64: 1, 32, 8>}, {transform_indices = @transform_8, window_bounds = array<i64: 1, 32, 8>}]} {
    %c0_i32 = arith.constant 0 : i32
    %0 = arith.cmpi eq, %arg1, %c0_i32 : i32
    %1 = arith.extui %0 : i1 to i32
    %c0_i32_0 = arith.constant 0 : i32
    %2 = arith.cmpi ne, %1, %c0_i32_0 : i32
    scf.if %2 {
      %cst_26 = arith.constant 0.000000e+00 : f32
      %41 = vector.broadcast %cst_26 : f32 to vector<8x32xf32>
      %c0_27 = arith.constant 0 : index
      %c0_28 = arith.constant 0 : index
      %42 = vector.load %arg11[%c0_27, %c0_28] : memref<8x32xf32, #tpu.memory_space<vmem>>, vector<8x32xf32>
      tpu.vector_store %arg11[%c0_27, %c0_28], %41 {strides = array<i32>} : memref<8x32xf32, #tpu.memory_space<vmem>>, vector<8x32xf32>,
      %cst_29 = arith.constant 0.000000e+00 : f32
      %43 = vector.broadcast %cst_29 : f32 to vector<8x32xf32>
      %c0_30 = arith.constant 0 : index
      %c0_31 = arith.constant 0 : index
      %44 = vector.load %arg12[%c0_30, %c0_31] : memref<8x32xf32, #tpu.memory_space<vmem>>, vector<8x32xf32>
      tpu.vector_store %arg12[%c0_30, %c0_31], %43 {strides = array<i32>} : memref<8x32xf32, #tpu.memory_space<vmem>>, vector<8x32xf32>,
    } else {
    }
    %c0 = arith.constant 0 : index
    %c0_1 = arith.constant 0 : index
    %c0_2 = arith.constant 0 : index
    %3 = vector.load %arg2[%c0, %c0_1, %c0_2] : memref<1x128x32xf32, #tpu.memory_space<vmem>>, vector<1x128x32xf32>
    %4 = vector.shape_cast %3 : vector<1x128x32xf32> to vector<128x32xf32>
    %c0_3 = arith.constant 0 : index
    %c0_4 = arith.constant 0 : index
    %5 = vector.load %arg3[%c0_3, %c0_4] : memref<1x32xf32, #tpu.memory_space<vmem>>, vector<1x32xf32>
    %c0_5 = arith.constant 0 : index
    %c0_6 = arith.constant 0 : index
    %6 = vector.load %arg4[%c0_5, %c0_6] : memref<1x32xf32, #tpu.memory_space<vmem>>, vector<1x32xf32>
    %cst = arith.constant dense<0.000000e+00> : vector<128xf32>
    %7 = vector.multi_reduction <add>, %4, %cst [1] : vector<128x32xf32> to vector<128xf32>
    %8 = vector.shape_cast %7 : vector<128xf32> to vector<128x1xf32>
    %cst_7 = arith.constant 3.200000e+01 : f32
    %9 = vector.broadcast %cst_7 : f32 to vector<128x1xf32>
    %10 = arith.divf %8, %9 : vector<128x1xf32>
    %11 = vector.broadcast %10 : vector<128x1xf32> to vector<128x32xf32>
    %12 = arith.subf %4, %11 : vector<128x32xf32>
    %13 = arith.mulf %12, %12 : vector<128x32xf32>
    %cst_8 = arith.constant dense<0.000000e+00> : vector<128xf32>
    %14 = vector.multi_reduction <add>, %13, %cst_8 [1] : vector<128x32xf32> to vector<128xf32>
    %15 = vector.shape_cast %14 : vector<128xf32> to vector<128x1xf32>
    %cst_9 = arith.constant 3.200000e+01 : f32
    %16 = vector.broadcast %cst_9 : f32 to vector<128x1xf32>
    %17 = arith.divf %15, %16 : vector<128x1xf32>
    %cst_10 = arith.constant 9.99999974E-6 : f32
    %18 = vector.broadcast %cst_10 : f32 to vector<128x1xf32>
    %19 = arith.addf %17, %18 : vector<128x1xf32>
    %20 = math.rsqrt %19 : vector<128x1xf32>
    %21 = vector.broadcast %20 : vector<128x1xf32> to vector<128x32xf32>
    %22 = arith.mulf %12, %21 : vector<128x32xf32>
    %23 = vector.broadcast %5 : vector<1x32xf32> to vector<128x32xf32>
    %24 = arith.mulf %22, %23 : vector<128x32xf32>
    %25 = vector.broadcast %6 : vector<1x32xf32> to vector<128x32xf32>
    %26 = arith.addf %24, %25 : vector<128x32xf32>
    %27 = arith.truncf %26 : vector<128x32xf32> to vector<128x32xbf16>
    %c0_11 = arith.constant 0 : index
    %c0_12 = arith.constant 0 : index
    %28 = vector.load %arg11[%c0_11, %c0_12] : memref<8x32xf32, #tpu.memory_space<vmem>>, vector<8x32xf32>
    %c0_13 = arith.constant 0 : index
    %c0_14 = arith.constant 0 : index
    %29 = vector.load %arg5[%c0_13, %c0_14] : memref<8x128xbf16, #tpu.memory_space<vmem>>, vector<8x128xbf16>
    %cst_15 = arith.constant dense<0.000000e+00> : vector<8x32xf32>
    %30 = tpu.matmul %29, %27, %cst_15 {dimension_numbers = #tpu.dot_dimension_numbers<[1], [0], [0], [1], [0, 0, 1, 1], [], []>} : vector<8x128xbf16>, vector<128x32xbf16>, vector<8x32xf32> -> vector<8x32xf32>
    %31 = arith.addf %28, %30 : vector<8x32xf32>
    %c0_16 = arith.constant 0 : index
    %c0_17 = arith.constant 0 : index
    %32 = vector.load %arg11[%c0_16, %c0_17] : memref<8x32xf32, #tpu.memory_space<vmem>>, vector<8x32xf32>
    tpu.vector_store %arg11[%c0_16, %c0_17], %31 {strides = array<i32>} : memref<8x32xf32, #tpu.memory_space<vmem>>, vector<8x32xf32>,
    %c0_18 = arith.constant 0 : index
    %c0_19 = arith.constant 0 : index
    %33 = vector.load %arg12[%c0_18, %c0_19] : memref<8x32xf32, #tpu.memory_space<vmem>>, vector<8x32xf32>
    %c0_20 = arith.constant 0 : index
    %c0_21 = arith.constant 0 : index
    %34 = vector.load %arg6[%c0_20, %c0_21] : memref<8x128xbf16, #tpu.memory_space<vmem>>, vector<8x128xbf16>
    %cst_22 = arith.constant dense<0.000000e+00> : vector<8x32xf32>
    %35 = tpu.matmul %34, %27, %cst_22 {dimension_numbers = #tpu.dot_dimension_numbers<[1], [0], [0], [1], [0, 0, 1, 1], [], []>} : vector<8x128xbf16>, vector<128x32xbf16>, vector<8x32xf32> -> vector<8x32xf32>
    %36 = arith.addf %33, %35 : vector<8x32xf32>
    %c0_23 = arith.constant 0 : index
    %c0_24 = arith.constant 0 : index
    %37 = vector.load %arg12[%c0_23, %c0_24] : memref<8x32xf32, #tpu.memory_space<vmem>>, vector<8x32xf32>
    tpu.vector_store %arg12[%c0_23, %c0_24], %36 {strides = array<i32>} : memref<8x32xf32, #tpu.memory_space<vmem>>, vector<8x32xf32>,
    %c1_i32 = arith.constant 1 : i32
    %38 = arith.cmpi eq, %arg1, %c1_i32 : i32
    %39 = arith.extui %38 : i1 to i32
    %c0_i32_25 = arith.constant 0 : i32
    %40 = arith.cmpi ne, %39, %c0_i32_25 : i32
    scf.if %40 {
      %c0_26 = arith.constant 0 : index
      %c0_27 = arith.constant 0 : index
      %41 = vector.load %arg7[%c0_26, %c0_27] : memref<32x32xbf16, #tpu.memory_space<vmem>>, vector<32x32xbf16>
      %c0_28 = arith.constant 0 : index
      %c0_29 = arith.constant 0 : index
      %42 = vector.load %arg11[%c0_28, %c0_29] : memref<8x32xf32, #tpu.memory_space<vmem>>, vector<8x32xf32>
      %43 = arith.truncf %42 : vector<8x32xf32> to vector<8x32xbf16>
      %cst_30 = arith.constant dense<0.000000e+00> : vector<32x8xf32>
      %44 = tpu.matmul %41, %43, %cst_30 {dimension_numbers = #tpu.dot_dimension_numbers<[1], [1], [0], [0], [0, 0, 1, 0], [], []>} : vector<32x32xbf16>, vector<8x32xbf16>, vector<32x8xf32> -> vector<32x8xf32>
      %c0_31 = arith.constant 0 : index
      %c0_32 = arith.constant 0 : index
      %c0_33 = arith.constant 0 : index
      %45 = vector.load %arg9[%c0_31, %c0_32, %c0_33] : memref<1x32x8xf32, #tpu.memory_space<vmem>>, vector<1x32x8xf32>
      %46 = vector.shape_cast %45 : vector<1x32x8xf32> to vector<32x8xf32>
      %47 = vector.shape_cast %44 : vector<32x8xf32> to vector<1x32x8xf32>
      tpu.vector_store %arg9[%c0_31, %c0_32, %c0_33], %47 {strides = array<i32>} : memref<1x32x8xf32, #tpu.memory_space<vmem>>, vector<1x32x8xf32>,
      %c0_34 = arith.constant 0 : index
      %c0_35 = arith.constant 0 : index
      %48 = vector.load %arg8[%c0_34, %c0_35] : memref<32x32xbf16, #tpu.memory_space<vmem>>, vector<32x32xbf16>
      %c0_36 = arith.constant 0 : index
      %c0_37 = arith.constant 0 : index
      %49 = vector.load %arg12[%c0_36, %c0_37] : memref<8x32xf32, #tpu.memory_space<vmem>>, vector<8x32xf32>
      %50 = arith.truncf %49 : vector<8x32xf32> to vector<8x32xbf16>
      %cst_38 = arith.constant dense<0.000000e+00> : vector<32x8xf32>
      %51 = tpu.matmul %48, %50, %cst_38 {dimension_numbers = #tpu.dot_dimension_numbers<[1], [1], [0], [0], [0, 0, 1, 0], [], []>} : vector<32x32xbf16>, vector<8x32xbf16>, vector<32x8xf32> -> vector<32x8xf32>
      %c0_39 = arith.constant 0 : index
      %c0_40 = arith.constant 0 : index
      %c0_41 = arith.constant 0 : index
      %52 = vector.load %arg10[%c0_39, %c0_40, %c0_41] : memref<1x32x8xf32, #tpu.memory_space<vmem>>, vector<1x32x8xf32>
      %53 = vector.shape_cast %52 : vector<1x32x8xf32> to vector<32x8xf32>
      %54 = vector.shape_cast %51 : vector<32x8xf32> to vector<1x32x8xf32>
      tpu.vector_store %arg10[%c0_39, %c0_40, %c0_41], %54 {strides = array<i32>} : memref<1x32x8xf32, #tpu.memory_space<vmem>>, vector<1x32x8xf32>,
    } else {
    }
    return
  }
  func.func @transform_0(%arg0: i32, %arg1: i32) -> (i32, i32, i32) {
    %c0_i32 = arith.constant 0 : i32
    %c0_i32_0 = arith.constant 0 : i32
    return %arg0, %arg1, %c0_i32 : i32, i32, i32
  }
  func.func @transform_1(%arg0: i32, %arg1: i32) -> (i32, i32) {
    %c0_i32 = arith.constant 0 : i32
    %c0_i32_0 = arith.constant 0 : i32
    %c0_i32_1 = arith.constant 0 : i32
    return %c0_i32, %c0_i32_0 : i32, i32
  }
  func.func @transform_2(%arg0: i32, %arg1: i32) -> (i32, i32) {
    %c0_i32 = arith.constant 0 : i32
    %c0_i32_0 = arith.constant 0 : i32
    %c0_i32_1 = arith.constant 0 : i32
    return %c0_i32, %c0_i32_0 : i32, i32
  }
  func.func @transform_3(%arg0: i32, %arg1: i32) -> (i32, i32) {
    %c0_i32 = arith.constant 0 : i32
    %c0_i32_0 = arith.constant 0 : i32
    return %c0_i32, %arg1 : i32, i32
  }
  func.func @transform_4(%arg0: i32, %arg1: i32) -> (i32, i32) {
    %c0_i32 = arith.constant 0 : i32
    %c0_i32_0 = arith.constant 0 : i32
    return %c0_i32, %arg1 : i32, i32
  }
  func.func @transform_5(%arg0: i32, %arg1: i32) -> (i32, i32) {
    %c0_i32 = arith.constant 0 : i32
    %c0_i32_0 = arith.constant 0 : i32
    %c0_i32_1 = arith.constant 0 : i32
    return %c0_i32, %c0_i32_0 : i32, i32
  }
  func.func @transform_6(%arg0: i32, %arg1: i32) -> (i32, i32) {
    %c0_i32 = arith.constant 0 : i32
    %c0_i32_0 = arith.constant 0 : i32
    %c0_i32_1 = arith.constant 0 : i32
    return %c0_i32, %c0_i32_0 : i32, i32
  }
  func.func @transform_7(%arg0: i32, %arg1: i32) -> (i32, i32, i32) {
    %c0_i32 = arith.constant 0 : i32
    %c0_i32_0 = arith.constant 0 : i32
    %c0_i32_1 = arith.constant 0 : i32
    return %arg0, %c0_i32, %c0_i32_0 : i32, i32, i32
  }
  func.func @transform_8(%arg0: i32, %arg1: i32) -> (i32, i32, i32) {
    %c0_i32 = arith.constant 0 : i32
    %c0_i32_0 = arith.constant 0 : i32
    %c0_i32_1 = arith.constant 0 : i32
    return %arg0, %c0_i32, %c0_i32_0 : i32, i32, i32
  }
}

</mosaic_0001>

<bundles_post_ra>
// kernel: linformer_forward.4
= control target key start
LH: loop header
LB: loop body
LE: loop exit
PB: predicated region body
PF: predicated region fallthrough
CT: control target
= control target key end

     0   :  { %s2846_s0 = inlined_call_operand.hbm [shape: f32[2,256,32], index: 0, kind: input, shape index: {}]   ;;  %s2847_s1 = inlined_call_operand.hbm [shape: f32[1,32], index: 1, kind: input, shape index: {}]   ;;  %s2848_s2 = inlined_call_operand.hbm [shape: f32[1,32], index: 2, kind: input, shape index: {}]   ;;  %s2849_s3 = inlined_call_operand.hbm [shape: bf16[8,256], index: 3, kind: input, shape index: {}]   ;;  %s2850_s4 = inlined_call_operand.hbm [shape: bf16[8,256], index: 4, kind: input, shape index: {}]   ;;  %s2851_s5 = inlined_call_operand.hbm [shape: bf16[32,32], index: 5, kind: input, shape index: {}]   ;;  %s2852_s6 = inlined_call_operand.hbm [shape: bf16[32,32], index: 6, kind: input, shape index: {}]   ;;  %s2853_s7 = inlined_call_operand.hbm [shape: f32[2,32,8], index: 7, kind: output, shape index: {0}]   ;;  %s2854_s8 = inlined_call_operand.hbm [shape: f32[2,32,8], index: 8, kind: output, shape index: {1}]  }
   0x1   :  { %2888 = sst [smem:[#allocation42_spill]] %s2846_s0 }
   0x2   :  { %2889 = sst [smem:[#allocation43_spill]] %s2847_s1 }
   0x3   :  { %2890 = sst [smem:[#allocation44_spill]] %s2848_s2 }
   0x4   :  { %2891 = sst [smem:[#allocation45_spill]] %s2849_s3 }
   0x5   :  { %2892 = sst [smem:[#allocation46_spill]] %s2851_s5 }
   0x6   :  { %2893 = sst [smem:[#allocation47_spill]] %s2852_s6 }
   0x7   :  { %2894 = sst [smem:[#allocation48_spill]] %s2853_s7 }
   0x8   :  { %2895 = sst [smem:[#allocation49_spill]] %s2854_s8 }
   0x9   :  { %14 = vsyncpa [#allocation5], 0 }
   0xa   :  { %16 = vsyncpa [#allocation5 + $0x1], 0 }
   0xb   :  { %17 = vsyncpa [#allocation8], 0 }
   0xc   :  { %18 = vsyncpa [#allocation11], 0 }
   0xd   :  { %20 = vsyncpa [#allocation11 + $0x1], 0 }
   0xe   :  { %21 = vsyncpa [#allocation14], 0 }
   0xf   :  { %22 = vsyncpa [#allocation6], 0 }
  0x10   :  { %24 = vsyncpa [#allocation6 + $0x1], 0 }
  0x11   :  { %25 = vsyncpa [#allocation18], 0 }
  0x12   :  { %27 = vsyncpa [#allocation18 + $0x1], 0  ;;  %s2059_s27 = smov 0   ;;  %s2061_s28 = smov 0  }
  0x13   :  { %s2063_s29 = smov 0   ;;  %s2065_s30 = smov 0  }
  0x14   :  { %s2067_s9 = smov 0   ;;  %s2069_s10 = smov 0  }
  0x15   :  { %s2071_s11 = smov 0   ;;  %s2073_s12 = smov 0  }
  0x16   :  { %s2075_s13 = smov 0   ;;  %s2077_s14 = smov 0  }
  0x17   :  { %s2079_s15 = smov 0   ;;  %s2081_s16 = smov 0  }
  0x18   :  { %s2083_s17 = smov 0   ;;  %s2085_s18 = smov 0  }
  0x19 LB: > { %2896 = sst [smem:[#allocation25_spill]] %s1942_s27  ;;  %s2130_s19 = sadd.s32 4294967295, %s1994_s18   ;;  %s1994_s18 = sphi %s2085_s18, %s33_s18   ;;  %s1990_s17 = sphi %s2083_s17, %s2981_s17   ;;  %s1986_s16 = sphi %s2081_s16, %s2980_s16   ;;  %s1982_s15 = sphi %s2079_s15, %s2979_s15   ;;  %s1978_s14 = sphi %s2077_s14, %s2978_s14   ;;  %s1974_s13 = sphi %s2075_s13, %s2977_s13   ;;  %s1970_s12 = sphi %s2073_s12, %s2976_s12   ;;  %s1966_s11 = sphi %s2071_s11, %s2975_s11   ;;  %s1962_s10 = sphi %s2069_s10, %s2968_s10   ;;  %s1958_s9 = sphi %s2067_s9, %s2974_s9   ;;  %s1954_s30 = sphi %s2065_s30, %s2973_s30   ;;  %s1950_s29 = sphi %s2063_s29, %s2966_s29   ;;  %s1946_s28 = sphi %s2061_s28, %s2965_s28   ;;  %s1942_s27 = sphi %s2059_s27, %s2964_s27  }
  0x1a   : > { %2897 = sst [smem:[#allocation26_spill]] %s1946_s28  ;;  %p1251_p0 = scmp.ge.s32.totalorder %s1994_s18, 1 }
  0x1b   : > { %2898 = sst [smem:[#allocation27_spill]] %s1950_s29  ;;  %p2859_p1 = scmp.eq.s32.totalorder %s2130_s19, 0 }
  0x1c   : > { %2899 = sst [smem:[#allocation28_spill]] %s1962_s10  ;;  %p266_p3 = scmp.lt.s32.totalorder %s1994_s18, 5 }
  0x1d   : > { %2900 = sst [smem:[#allocation29_spill]] %s1974_s13  ;;  %s1996_s21 = smov [#allocation7]  }
  0x1e   : > { %2901 = sst [smem:[#allocation30_spill]] %s1978_s14  ;;  %p2136_p4 = pnand %p1251_p0, %p266_p3 }
  0x1f   : > { %2902 = sst [smem:[#allocation31_spill]] %s1982_s15  ;;  %s279_s22 = sshll.u32 %s1996_s21, 4  ;;  %s280_s22 = int_to_ptr.vmem [resolvable:$true] %s279_s22 }
  0x20   : > { %2903 = sst [smem:[#allocation32_spill]] %s1994_s18  ;;  %p1401_p5 = pneg %p2136_p4 }
  0x21   : > { %s2904_s20 = scalar_select %p2136_p4, 1, 0 }
  0x22   : > { %s1997_s23 = smov [#allocation13]   ;;  %p2146_p6 = pnand %p1401_p5, %p2859_p1 }
  0x23   : > { %2905 = sst [smem:[#allocation33_spill]] %s2904_s20  ;;  %s300_s24 = sshll.u32 %s1997_s23, 4  ;;  %s2142_s24 = int_to_ptr.vmem [resolvable:$true] %s300_s24 }
  0x24   : > { %s2906_s25 = scalar_select %p2146_p6, 1, 0 }
  0x25   : > { %s2907_s1 = sld [smem:[#allocation43_spill]]  ;;  %p2158_p8 = pneg %p2146_p6 }
  0x2b   : > { %s1602_s7 = scalar_lea.hbm %s2907_s1, 16 }
  0x2c   : > { %p1603_p7 = scmp.ne.s32.totalorder %s2907_s1, %s1602_s7  ;;  %p1609_p11 = scmp.lt.u32.totalorder %s1602_s7, %s2907_s1 }
  0x2e   : > { %p1605_p9 = pnand %p2158_p8, %p1603_p7 }
  0x30   : > { %p1606_p10 = pneg %p1605_p9 }
  0x32   : > { %p1611_p12 = pnand %p1609_p11, %p1606_p10 }
  0x34   : > { %1614 = shalt.err (!%p1611_p12)
}
  0x35   : > { %s1615_s8 = scalar_lea.vmem %s280_s22, 16  ;;  %s1622_s14 = scalar_lea.vmem %s280_s22, 32 }
  0x36   : > { %p1616_p13 = scmp.ne.s32.totalorder %s280_s22, %s1615_s8  ;;  %p1623_p5 = scmp.lt.s32.totalorder %s280_s22, %s280_s22 }
  0x37   : > { %p1624_p2 = scmp.lt.s32.totalorder %s1622_s14, %s1615_s8 }
  0x38   : > { %p1618_p0 = pnand %p1616_p13, %p2158_p8 }
  0x39   : > { %p1625_p1 = por %p1624_p2, %p1623_p5 }
  0x3a   : > { %p1619_p3 = pneg %p1618_p0 }
  0x3c   : > { %p1626_p4 = pnand %p1625_p1, %p1619_p3 }
  0x3e   : > { %1629 = shalt.err (!%p1626_p4)
}
  0x3f   : > { %1404 = dma.hbm_to_vmem [thread:$0]  (!%p2146_p6), %s2907_s1, 16, %s280_s22, [#allocation8]  }
  0x40   : > { %s2909_s5 = sld [smem:[#allocation46_spill]] }
  0x46   : > { %s1630_s23 = scalar_lea.hbm %s2909_s5, 256 }
  0x47   : > { %p1631_p7 = scmp.ne.s32.totalorder %s2909_s5, %s1630_s23  ;;  %p1637_p1 = scmp.lt.u32.totalorder %s1630_s23, %s2909_s5 }
  0x49   : > { %p1633_p9 = pnand %p1631_p7, %p2158_p8 }
  0x4b   : > { %p1634_p2 = pneg %p1633_p9 }
  0x4d   : > { %p1639_p4 = pnand %p1637_p1, %p1634_p2 }
  0x4f   : > { %1642 = shalt.err (!%p1639_p4)
}
  0x50   : > { %s1643_s22 = scalar_lea.vmem %s2142_s24, 256  ;;  %p1651_p13 = scmp.lt.s32.totalorder %s2142_s24, %s2142_s24 }
  0x51   : > { %p1644_p10 = scmp.ne.s32.totalorder %s2142_s24, %s1643_s22  ;;  %p1652_p0 = scmp.lt.s32.totalorder %s1643_s22, %s1643_s22 }
  0x53   : > { %p1646_p11 = pnand %p1644_p10, %p2158_p8  ;;  %p1653_p3 = por %p1652_p0, %p1651_p13 }
  0x55   : > { %p1647_p12 = pneg %p1646_p11 }
  0x57   : > { %p1654_p5 = pnand %p1653_p3, %p1647_p12 }
  0x59   : > { %1657 = shalt.err (!%p1654_p5)
}
  0x5a   : > { %s2863_s0 = smov 64   ;;  %s2864_s6 = smov 4  }
  0x5b   : > { %1410 = dma.hbm_to_vmem [thread:$0]  (!%p2146_p6), %s2909_s5, 256, %s2142_s24, [#allocation14], %s2863_s0, %s2863_s0, %s2864_s6  }
  0x5c   : > { %s42_s20 = sadd.s32 1, %s1986_s16  ;;  %s45_s23 = sadd.s32 1, %s1990_s17 }
  0x5d   : > { %p43_p7 = scmp.ge.s32.totalorder %s42_s20, 2  ;;  %s54_s8 = sadd.s32 1, %s1974_s13 }
  0x5e   : > { %p61_p9 = scmp.ne.s32.totalorder %s1974_s13, %s1970_s12  ;;  %p62_p2 = scmp.eq.s32.totalorder %s1994_s18, 0 }
  0x5f   : > { %s2983_s20 = smov (%p43_p7, %s42_s20), 0  ;;  %s2985_s23 = smov (!%p43_p7, %s45_s23), %s1990_s17 }
  0x60   : > { %2910 = sst [smem:[#allocation34_spill]] %s2983_s20  ;;  %s50_s24 = ssub.s32 %s1986_s16, %s2983_s20 }
  0x61   : > { %p2214_p1 = por %p62_p2, %p61_p9  ;;  %p47_p4 = scmp.ge.s32.totalorder %s2985_s23, 2 }
  0x62   : > { %p67_p10 = scmp.ne.s32.totalorder %s1970_s12, %s1966_s11  ;;  %p120_p11 = scmp.eq.s32.totalorder %s50_s24, 0 }
  0x63   : > { %s122_s22 = sadd.s32 1, %s1962_s10  ;;  %s2987_s23 = smov (%p47_p4, %s2985_s23), 0 }
  0x64   : > { %2912 = sst [smem:[#allocation35_spill]] %s2987_s23  ;;  %p2913_p12 = scmp.eq.s32.totalorder %s2130_s19, 0 }
  0x65   : > { %p129_p0 = scmp.ne.s32.totalorder %s1962_s10, %s1958_s9  ;;  %s49_s11 = ssub.s32 %s1990_s17, %s2987_s23 }
  0x66   : > { %p2225_p13 = por %p2913_p12, %p67_p10  ;;  %p135_p3 = scmp.ne.s32.totalorder %s1958_s9, %s1954_s30 }
  0x67   : > { %s51_s26 = sor.u32 %s50_s24, %s49_s11  ;;  %p2237_p5 = por %p129_p0, %p62_p2 }
  0x68   : > { %s2914_s15 = scalar_select %p2225_p13, 1, 0 }
  0x69   : > { %p52_p7 = scmp.eq.s32.totalorder %s51_s26, 0  ;;  %p2916_p9 = pmov %p2913_p12 }
  0x6a   : > { %s2248_s7 = scalar_select %p120_p11, %s1962_s10, %s122_s22  }
  0x6b   : > { %p2243_p4 = por %p135_p3, %p2916_p9  ;;  %p214_p10 = scmp.eq.s32.totalorder %s49_s11, 0 }
  0x6c   : > { %2919 = sst [smem:[#allocation37_spill]] %s2248_s7  ;;  %s216_s30 = sadd.s32 1, %s1950_s29 }
  0x6d   : > { %s2917_s6 = scalar_select %p2243_p4, 1, 0 }
  0x6e   : > { %s2251_s1 = scalar_select %p52_p7, %s1974_s13, %s54_s8  }
  0x6f   : > { %2918 = sst [smem:[#allocation36_spill]] %s2917_s6  ;;  %p226_p12 = scmp.ne.s32.totalorder %s1950_s29, %s1946_s28 }
  0x70   : > { %2920 = sst [smem:[#allocation38_spill]] %s2251_s1  ;;  %p232_p2 = scmp.ne.s32.totalorder %s1946_s28, %s1942_s27 }
  0x71   : > { %s2259_s24 = scalar_select %p214_p10, %s1950_s29, %s216_s30  }
  0x72   : > { %p2922_p0 = scmp.eq.s32.totalorder %s2130_s19, 3  ;;  %s2925_s5 = sadd.s32 4294967294, %s1994_s18  }
  0x73   : > { %2921 = sst [smem:[#allocation39_spill]] %s2259_s24  ;;  %p233_p3 = scmp.eq.s32.totalorder %s2925_s5, 3 }
  0x74   : > { %p2263_p13 = por %p2922_p0, %p226_p12  ;;  %p1435_p9 = scmp.lt.s32.totalorder %s1994_s18, 4 }
  0x75   : > { %s350_s23 = sand.u32 1, %s1994_s18   ;;  %p2271_p11 = por %p233_p3, %p232_p2 }
  0x76   : > { %s2923_s26 = scalar_select %p2263_p13, 1, 0 }
  0x77   : > { %s2926_s22 = scalar_select %p2271_p11, 1, 0 }
  0x78   : > { %2924 = sst [smem:[#allocation40_spill]] %s2923_s26  ;;  %p2277_p7 = pnand %p1435_p9, %p2214_p1 }
  0x79   : > { %2927 = sst [smem:[#allocation41_spill]] %s2926_s22  ;;  %s352_s11 = sand.u32 1, %s1962_s10  }
  0x7a   : > { %s2928_s8 = scalar_select %p2277_p7, 1, 0 }
  0x7b   : > { %s2282_s30 = sshll.u32 %s352_s11, 2  ;;  %s1262_s20 = sshll.u32 %s1986_s16, 6 }
  0x7c   : > { %s2929_s3 = sld [smem:[#allocation45_spill]]  ;;  %s354_s24 = scalar_lea.vmem [#allocation10], %s2282_s30 }
  0x7d   : > { %s361_s14 = sshll.u32 %s354_s24, 4  ;;  %p2295_p1 = pnand %p1435_p9, %p2237_p5  ;;  %s2291_s14 = int_to_ptr.vmem [resolvable:$true] %s361_s14 }
  0x7e   : > { %s2302_s1 = scalar_lea.hbm %s2850_s4, %s1262_s20  ;;  %s2304_s7 = scalar_lea.sflag [#allocation11], %s350_s23 }
  0x7f   : > { %s2930_s10 = scalar_select %p2295_p1, 1, 0 }
  0x80   : > { %p2881_p12 = pneg %p2295_p1 }
  0x82   : > { %s2288_s5 = scalar_lea.hbm %s2929_s3, %s1262_s20  ;;  %s1663_s27 = scalar_lea.hbm %s2929_s3, 128 }
  0x83   : > { %s1658_s22 = scalar_lea.hbm %s2288_s5, 64  ;;  %p1664_p0 = scmp.lt.u32.totalorder %s2288_s5, %s2929_s3 }
  0x84   : > { %p1659_p10 = scmp.ne.s32.totalorder %s2288_s5, %s1658_s22  ;;  %p1665_p3 = scmp.lt.u32.totalorder %s1663_s27, %s1658_s22 }
  0x85   : > { %p1667_p11 = scmp.lt.u32.totalorder %s1658_s22, %s2288_s5 }
  0x86   : > { %p1661_p2 = pnand %p2881_p12, %p1659_p10  ;;  %p1666_p9 = por %p1665_p3, %p1664_p0 }
  0x88   : > { %p1662_p5 = pneg %p1661_p2  ;;  %p1668_p13 = por %p1667_p11, %p1666_p9 }
  0x8a   : > { %p1669_p4 = pnand %p1668_p13, %p1662_p5 }
  0x8c   : > { %1672 = shalt.err (!%p1669_p4)
}
  0x8d   : > { %s1673_s20 = scalar_lea.vmem %s2291_s14, 64  ;;  %s2000_s23 = smov [#allocation10]  }
  0x8e   : > { %p1674_p10 = scmp.ne.s32.totalorder %s2291_s14, %s1673_s20  ;;  %s1678_s11 = sshll.u32 %s2000_s23, 4  ;;  %s1679_s11 = int_to_ptr.vmem [resolvable:$false] %s1678_s11 }
  0x8f   : > { %s1680_s18 = scalar_lea.vmem %s1679_s11, 128  ;;  %p1681_p6 = scmp.lt.s32.totalorder %s2291_s14, %s1679_s11 }
  0x90   : > { %p1676_p2 = pnand %p1674_p10, %p2881_p12  ;;  %p1682_p0 = scmp.lt.s32.totalorder %s1680_s18, %s1673_s20 }
  0x92   : > { %p1677_p7 = pneg %p1676_p2  ;;  %p1683_p3 = por %p1682_p0, %p1681_p6 }
  0x94   : > { %p1684_p11 = pnand %p1683_p3, %p1677_p7 }
  0x96   : > { %1687 = shalt.err (!%p1684_p11)
}
  0x97   : > { %1420 = dma.hbm_to_vmem [thread:$0]  (!%p2295_p1), %s2288_s5, 64, %s2291_s14, %s2304_s7  }
  0x98   : > { %s2001_s27 = smov [#allocation9]   ;;  %s2002_s0 = smov [#allocation15]  }
  0x99   : > { %s290_s22 = sshll.u32 %s2001_s27, 4  ;;  %s313_s24 = sshll.u32 %s2002_s0, 4  ;;  %s291_s22 = int_to_ptr.vmem [resolvable:$true] %s290_s22  ;;  %s314_s24 = int_to_ptr.vmem [resolvable:$true] %s313_s24 }
  0x9a   : > { %s2931_s2 = sld [smem:[#allocation44_spill]] }
  0xa0   : > { %s1688_s11 = scalar_lea.hbm %s2931_s2, 16 }
  0xa1   : > { %p1689_p6 = scmp.ne.s32.totalorder %s2931_s2, %s1688_s11  ;;  %p1695_p7 = scmp.lt.u32.totalorder %s1688_s11, %s2931_s2 }
  0xa3   : > { %p1691_p13 = pnand %p1689_p6, %p2158_p8 }
  0xa5   : > { %p1692_p4 = pneg %p1691_p13 }
  0xa7   : > { %p1697_p5 = pnand %p1695_p7, %p1692_p4 }
  0xa9   : > { %1700 = shalt.err (!%p1697_p5)
}
  0xaa   : > { %s1701_s5 = scalar_lea.vmem %s291_s22, 16  ;;  %s1708_s14 = scalar_lea.vmem %s291_s22, 32 }
  0xab   : > { %p1702_p9 = scmp.ne.s32.totalorder %s291_s22, %s1701_s5  ;;  %p1709_p0 = scmp.lt.s32.totalorder %s291_s22, %s291_s22 }
  0xac   : > { %p1710_p3 = scmp.lt.s32.totalorder %s1708_s14, %s1701_s5 }
  0xad   : > { %p1704_p10 = pnand %p1702_p9, %p2158_p8 }
  0xae   : > { %p1711_p11 = por %p1710_p3, %p1709_p0 }
  0xaf   : > { %p1705_p2 = pneg %p1704_p10 }
  0xb1   : > { %p1712_p12 = pnand %p1711_p11, %p1705_p2 }
  0xb3   : > { %1715 = shalt.err (!%p1712_p12)
}
  0xb4   : > { %p2932_p6 = scmp.ne.s32.totalorder %s2906_s25, 0  ;;  %s327_s3 = sand.u32 1, %s1974_s13  }
  0xb5   : > { %s2933_s23 = sld [smem:[#allocation47_spill]] }
  0xb6   : > { %1407 = dma.hbm_to_vmem [thread:$0]  (!%p2932_p6), %s2931_s2, 16, %s291_s22, [#allocation8]  }
  0xbb   : > { %s1716_s11 = scalar_lea.hbm %s2933_s23, 256 }
  0xbc   : > { %p1717_p13 = scmp.ne.s32.totalorder %s2933_s23, %s1716_s11  ;;  %p1723_p7 = scmp.lt.u32.totalorder %s1716_s11, %s2933_s23 }
  0xbe   : > { %p1719_p12 = pnand %p1717_p13, %p2158_p8 }
  0xc0   : > { %p1720_p4 = pneg %p1719_p12 }
  0xc2   : > { %p1725_p5 = pnand %p1723_p7, %p1720_p4 }
  0xc4   : > { %1728 = shalt.err (!%p1725_p5)
}
  0xc5   : > { %s1729_s22 = scalar_lea.vmem %s314_s24, 256  ;;  %p1737_p0 = scmp.lt.s32.totalorder %s314_s24, %s314_s24 }
  0xc6   : > { %p1730_p9 = scmp.ne.s32.totalorder %s314_s24, %s1729_s22  ;;  %p1738_p3 = scmp.lt.s32.totalorder %s1729_s22, %s1729_s22 }
  0xc8   : > { %p1732_p10 = pnand %p1730_p9, %p2158_p8  ;;  %p1739_p11 = por %p1738_p3, %p1737_p0 }
  0xca   : > { %p1733_p2 = pneg %p1732_p10 }
  0xcc   : > { %p1740_p1 = pnand %p1739_p11, %p1733_p2 }
  0xce   : > { %1743 = shalt.err (!%p1740_p1)
}
  0xcf   : > { %s2934_s27 = smov 4   ;;  %s2935_s0 = smov 64  }
  0xd0   : > { %1413 = dma.hbm_to_vmem [thread:$0]  (!%p2932_p6), %s2933_s23, 256, %s314_s24, [#allocation14], %s2935_s0, %s2935_s0, %s2934_s27  }
  0xd1   : > { %s1257_s21 = sshll.u32 %s327_s3, 7  ;;  %s1258_s11 = sshll.u32 %s1986_s16, 4 }
  0xd2   : > { %s1259_s20 = sshll.u32 %s1990_s17, 5  ;;  %s331_s18 = scalar_lea.vmem [#allocation4], %s1257_s21 }
  0xd3   : > { %s340_s5 = sshll.u32 %s331_s18, 4  ;;  %s337_s14 = sadd.s32 %s1259_s20, %s1258_s11  ;;  %s2374_s5 = int_to_ptr.vmem [resolvable:$true] %s340_s5 }
  0xd4   : > { %s1260_s25 = sshll.u32 %s337_s14, 7  ;;  %s2936_s13 = sld [smem:[#allocation42_spill]] }
  0xd5   : > { %s2381_s26 = scalar_lea.sflag [#allocation5], %s327_s3  ;;  %p2938_p1 = scmp.ne.s32.totalorder %s2928_s8, 0 }
  0xd7   : > { %p1746_p6 = pneg %p2938_p1 }
  0xda   : > { %s2937_s6 = smov %s2936_s13  ;;  %s2379_s28 = scalar_lea.hbm %s2936_s13, %s1260_s25 }
  0xdb   : > { %s1744_s24 = scalar_lea.hbm %s2379_s28, 2048  ;;  %s1749_s2 = scalar_lea.hbm %s2937_s6, 8192 }
  0xdc   : > { %p1745_p8 = scmp.ne.s32.totalorder %s2379_s28, %s1744_s24  ;;  %p1750_p4 = scmp.lt.u32.totalorder %s2379_s28, %s2937_s6 }
  0xdd   : > { %p1751_p7 = scmp.lt.u32.totalorder %s1749_s2, %s1744_s24  ;;  %p1753_p9 = scmp.lt.u32.totalorder %s1744_s24, %s2379_s28 }
  0xde   : > { %p1747_p13 = pnand %p1746_p6, %p1745_p8 }
  0xdf   : > { %p1752_p5 = por %p1751_p7, %p1750_p4 }
  0xe0   : > { %p1748_p12 = pneg %p1747_p13 }
  0xe1   : > { %p1754_p10 = por %p1753_p9, %p1752_p5 }
  0xe3   : > { %p1755_p2 = pnand %p1754_p10, %p1748_p12 }
  0xe5   : > { %1758 = shalt.err (!%p1755_p2)
}
  0xe6   : > { %s1759_s3 = scalar_lea.vmem %s2374_s5, 2048  ;;  %s2003_s21 = smov [#allocation4]  }
  0xe7   : > { %p1760_p0 = scmp.ne.s32.totalorder %s2374_s5, %s1759_s3  ;;  %s1764_s11 = sshll.u32 %s2003_s21, 4  ;;  %s1765_s11 = int_to_ptr.vmem [resolvable:$false] %s1764_s11 }
  0xe8   : > { %s1766_s20 = scalar_lea.vmem %s1765_s11, 4096  ;;  %p1767_p8 = scmp.lt.s32.totalorder %s2374_s5, %s1765_s11 }
  0xe9   : > { %p1762_p3 = pnand %p1760_p0, %p1746_p6  ;;  %p1768_p13 = scmp.lt.s32.totalorder %s1766_s20, %s1759_s3 }
  0xeb   : > { %p1763_p11 = pneg %p1762_p3  ;;  %p1769_p4 = por %p1768_p13, %p1767_p8 }
  0xed   : > { %p1770_p7 = pnand %p1769_p4, %p1763_p11 }
  0xef   : > { %1773 = shalt.err (!%p1770_p7)
}
  0xf0   : > { %s2004_s18 = smov 128   ;;  %s2005_s14 = smov 8  }
  0xf1   : > { %1417 = dma.hbm_to_vmem [thread:$0]  (!%p2938_p1), %s2379_s28, 2048, %s2374_s5, %s2381_s26, %s2004_s18, %s2004_s18, %s2005_s14  }
  0xf2   : > { %s372_s25 = scalar_lea.vmem [#allocation12], %s2282_s30  ;;  %s1774_s24 = scalar_lea.hbm %s2302_s1, 64 }
  0xf3   : > { %s379_s22 = sshll.u32 %s372_s25, 4  ;;  %p1775_p6 = scmp.ne.s32.totalorder %s2302_s1, %s1774_s24  ;;  %s380_s22 = int_to_ptr.vmem [resolvable:$true] %s379_s22 }
  0xf4   : > { %p2939_p12 = scmp.ne.s32.totalorder %s2930_s10, 0  ;;  %s1779_s2 = scalar_lea.hbm %s2850_s4, 128 }
  0xf5   : > { %p1780_p2 = scmp.lt.u32.totalorder %s2302_s1, %s2850_s4  ;;  %p1781_p0 = scmp.lt.u32.totalorder %s1779_s2, %s1774_s24 }
  0xf6   : > { %p2940_p5 = pneg %p2939_p12  ;;  %p1783_p1 = scmp.lt.u32.totalorder %s1774_s24, %s2302_s1 }
  0xf7   : > { %p1782_p3 = por %p1781_p0, %p1780_p2 }
  0xf8   : > { %p1777_p9 = pnand %p1775_p6, %p2940_p5 }
  0xf9   : > { %p1784_p11 = por %p1783_p1, %p1782_p3 }
  0xfa   : > { %p1778_p10 = pneg %p1777_p9 }
  0xfc   : > { %p1785_p8 = pnand %p1784_p11, %p1778_p10 }
  0xfe   : > { %1788 = shalt.err (!%p1785_p8)
}
  0xff   : > { %s1789_s28 = scalar_lea.vmem %s380_s22, 64  ;;  %p2941_p4 = pmov %p2940_p5 }
 0x100   : > { %p1790_p13 = scmp.ne.s32.totalorder %s380_s22, %s1789_s28  ;;  %s2006_s8 = smov [#allocation12]  }
 0x101   : > { %s1794_s30 = sshll.u32 %s2006_s8, 4  ;;  %s1795_s30 = int_to_ptr.vmem [resolvable:$false] %s1794_s30 }
 0x102   : > { %p1792_p7 = pnand %p1790_p13, %p2941_p4  ;;  %s1796_s5 = scalar_lea.vmem %s1795_s30, 128 }
 0x103   : > { %p1797_p5 = scmp.lt.s32.totalorder %s380_s22, %s1795_s30  ;;  %p1798_p9 = scmp.lt.s32.totalorder %s1796_s5, %s1789_s28 }
 0x104   : > { %p1793_p6 = pneg %p1792_p7 }
 0x105   : > { %p1799_p0 = por %p1798_p9, %p1797_p5 }
 0x107   : > { %p1800_p2 = pnand %p1799_p0, %p1793_p6 }
 0x109   : > { %1803 = shalt.err (!%p1800_p2)
}
 0x10a   : > { %1423 = dma.hbm_to_vmem [thread:$0]  (!%p2939_p12), %s2302_s1, 64, %s380_s22, %s2304_s7  }
 0x10b   : > { %s2942_s26 = sld [smem:[#allocation33_spill]] }
 0x111   : > { %p2943_p10 = scmp.ne.s32.totalorder %s2942_s26, 0 }
 0x112   : > { %s390_s3 = sand.u32 (!%p2943_p10), 1, %s1970_s12   ;;  %p2944_p3 = scmp.ne.s32.totalorder (!%p2943_p10), %s2914_s15, 0 }
 0x113   : > { %388 = sbr.rel (%p2943_p10) target bundleno = 1165 (0x48d), region = 48  ;;  %s1266_s21 = sshll.u32 (!%p2943_p10), %s390_s3, 7 }
 0x114   : > { %s391_s11 = scalar_lea.sflag (!%p2943_p10), [#allocation5], %s390_s3  ;;  %s2433_s20 = scalar_lea.vmem (!%p2943_p10), [#allocation4], %s1266_s21 }
 0x11a   : > { %1917 = dma.done.wait (%p2944_p3), %s391_s11, 2048  }
 0x11b   : > { %1919 = vsyncadd (%p2944_p3), %s391_s11, 4294965248  ;;  %p2945_p1 = scmp.eq.s32.totalorder %s2130_s19, 0 }
 0x11d   : > { %1921 = dma.done.wait (%p2945_p1), [#allocation8], 32   ;;  %p2946_p12 = pmov %p2945_p1 }
 0x11e   : > { %s2947_s10 = sld [smem:[#allocation36_spill]]  ;;  %s407_s1 = sand.u32 1, %s2130_s19  }
 0x11f   : > { %1923 = vsyncadd (%p2946_p12), [#allocation8], 4294967264  ;;  %s409_s7 = sand.u32 1, %s1958_s9   ;;  %s408_s14 = scalar_lea.sflag [#allocation11], %s407_s1 }
 0x120   : > { %s2445_s18 = sshll.u32 %s409_s7, 2 }
 0x121   : > { %s411_s25 = scalar_lea.vmem [#allocation10], %s2445_s18 }
 0x124   : > { %p2948_p11 = scmp.ne.s32.totalorder %s2947_s10, 0 }
 0x126   : > { %1925 = dma.done.wait (%p2948_p11), %s408_s14, 128  }
 0x127   : > { %1927 = vsyncadd (%p2948_p11), %s408_s14, 4294967168  ;;  %s420_s15 = scalar_lea.vmem [#allocation12], %s2445_s18  ;;  %p2949_p8 = pmov %p2945_p1 }
 0x128   : > { %p2950_p13 = pmov %p2945_p1 }
 0x129   : > { %1929 = dma.done.wait (%p2949_p8), [#allocation14], 512  }
 0x12a   : > { %1931 = vsyncadd (%p2950_p13), [#allocation14], 4294966784  ;;  %s2951_s22 = sld [smem:[#allocation26_spill]]  ;;  %s2952_s13 = sld [smem:[#allocation30_spill]] }
 0x130   : > { %s2458_s24 = sand.u32 1, %s2951_s22   ;;  %p1275_p4 = scmp.ne.s32.totalorder %s2952_s13, 0 }
 0x131   : > { %s1273_s27 = sshll.u32 %s2458_s24, 5  ;;  %vm482_vm0 = vcmask (!%p1275_p4), 261120   ;;  %v2007_v0 = vmov (!%p1275_p4), 0.0  }
 0x132   : > { %s2461_s0 = scalar_lea.vmem [#allocation16], %s1273_s27  ;;  %s2463_s2 = scalar_lea.vmem [#allocation17], %s1273_s27  ;;  %483 = vst.msk [vmem:[#allocation2] sm:$0xff] (!%p1275_p4), %vm482_vm0, %v2007_v0  ;;  %484 = vst.msk [vmem:[#allocation3] sm:$0xff] (!%p1275_p4), %vm482_vm0, %v2007_v0 }
 0x133   : > { %481 = sbr.rel (%p1275_p4) target bundleno = 314 (0x13a), region = 80 }
 0x13a PF: > { %v485_v1 = vld [vmem:[%s2433_s20] sm:$0xff]  ;;  %vm503_vm1 = vcmask 261120   ;;  %v487_v2 = vld [vmem:[%s2433_s20 + $0x10] sm:$0xff]  ;;  %v486_v3 = vld [vmem:[%s2433_s20 + $0x8] sm:$0xff]  ;;  %vm2009_vm2 = vmmov 0   ;;  %s2953_s19 = sld [smem:[#allocation30_spill]] }
 0x13b   : > { %v504_v4 = vsel %vm503_vm1, %v485_v1, 0.0  ;;  %v510_v5 = vsel %vm503_vm1, %v487_v2, 0.0  ;;  %v488_v6 = vld [vmem:[%s2433_s20 + $0x18] sm:$0xff]  ;;  %v507_v7 = vsel %vm503_vm1, %v486_v3, 0.0  ;;  %v489_v9 = vld [vmem:[%s2433_s20 + $0x20] sm:$0xff]  ;;  %v490_v10 = vld [vmem:[%s2433_s20 + $0x28] sm:$0xff] }
 0x13c   : > { %505 = vadd.xlane.f32.xlu0 %v504_v4  ;;  %511 = vadd.xlane.f32.xlu1 %v510_v5  ;;  %v513_v8 = vsel %vm503_vm1, %v488_v6, 0.0  ;;  %v516_v11 = vsel %vm503_vm1, %v489_v9, 0.0  ;;  %v519_v12 = vsel %vm503_vm1, %v490_v10, 0.0  ;;  %v2479_v13 = vld [vmem:[%s2433_s20 + $0x30] sm:$0xff]  ;;  %v2482_v14 = vld [vmem:[%s2433_s20 + $0x38] sm:$0xff]  ;;  %v2489_v17 = vld [vmem:[%s2433_s20 + $0x40] sm:$0xff] }
 0x13d   : > { %v522_v15 = vsel %vm503_vm1, %v2479_v13, 0.0  ;;  %v525_v16 = vsel %vm503_vm1, %v2482_v14, 0.0  ;;  %v2492_v18 = vld [vmem:[%s2433_s20 + $0x48] sm:$0xff]  ;;  %v528_v19 = vsel %vm503_vm1, %v2489_v17, 0.0  ;;  %v2499_v21 = vld [vmem:[%s2433_s20 + $0x50] sm:$0xff]  ;;  %v2502_v22 = vld [vmem:[%s2433_s20 + $0x58] sm:$0xff] }
 0x13e   : > { %v531_v20 = vsel %vm503_vm1, %v2492_v18, 0.0  ;;  %v534_v23 = vsel %vm503_vm1, %v2499_v21, 0.0  ;;  %v537_v24 = vsel %vm503_vm1, %v2502_v22, 0.0  ;;  %v2509_v25 = vld [vmem:[%s2433_s20 + $0x60] sm:$0xff]  ;;  %v2512_v26 = vld [vmem:[%s2433_s20 + $0x68] sm:$0xff]  ;;  %v2519_v29 = vld [vmem:[%s2433_s20 + $0x70] sm:$0xff] }
 0x13f   : > { %v540_v27 = vsel %vm503_vm1, %v2509_v25, 0.0  ;;  %v543_v28 = vsel %vm503_vm1, %v2512_v26, 0.0  ;;  %v2522_v30 = vld [vmem:[%s2433_s20 + $0x78] sm:$0xff]  ;;  %v546_v31 = vsel %vm503_vm1, %v2519_v29, 0.0 }
 0x140   : > { %508 = vadd.xlane.f32.xlu0 %v507_v7  ;;  %514 = vadd.xlane.f32.xlu1 %v513_v8  ;;  %v549_v32 = vsel %vm503_vm1, %v2522_v30, 0.0  ;;  %p1278_p7 = scmp.ne.s32.totalorder %s2953_s19, 1 }
 0x141   : > { %vm931_vm3 = vcmask (!%p1278_p7), 64512  }
 0x144   : > { %517 = vadd.xlane.f32.xlu0 %v516_v11  ;;  %520 = vadd.xlane.f32.xlu1 %v519_v12 }
 0x148   : > { %523 = vadd.xlane.f32.xlu0 %v522_v15  ;;  %526 = vadd.xlane.f32.xlu1 %v525_v16 }
 0x14c   : > { %529 = vadd.xlane.f32.xlu0 %v528_v19  ;;  %532 = vadd.xlane.f32.xlu1 %v531_v20 }
 0x150   : > { %535 = vadd.xlane.f32.xlu0 %v534_v23  ;;  %538 = vadd.xlane.f32.xlu1 %v537_v24 }
 0x154   : > { %541 = vadd.xlane.f32.xlu0 %v540_v27  ;;  %544 = vadd.xlane.f32.xlu1 %v543_v28 }
 0x158   : > { %547 = vadd.xlane.f32.xlu0 %v546_v31  ;;  %550 = vadd.xlane.f32.xlu1 %v549_v32 }
 0x1c9   : > { %v506_v33 = vpop.xlane.xlu0 %505  ;;  %v512_v34 = vpop.xlane.xlu1 %511 }
 0x1ca   : > { %v553_v35 = vmul.f32 0.03125, %v506_v33  ;;  %v555_v36 = vmul.f32 0.03125, %v512_v34 }
 0x1cc   : > { %v2528_v37 = vsub.f32 %v485_v1, %v553_v35  ;;  %v2530_v38 = vsub.f32 %v487_v2, %v555_v36 }
 0x1cd   : > { %v509_v39 = vpop.xlane.xlu0 %508  ;;  %v515_v40 = vpop.xlane.xlu1 %514 }
 0x1ce   : > { %v554_v41 = vmul.f32 0.03125, %v509_v39  ;;  %v556_v42 = vmul.f32 0.03125, %v515_v40  ;;  %v585_v43 = vmul.f32 %v2528_v37, %v2528_v37  ;;  %v587_v44 = vmul.f32 %v2530_v38, %v2530_v38 }
 0x1d0   : > { %v2536_v45 = vsub.f32 %v486_v3, %v554_v41  ;;  %v2538_v46 = vsub.f32 %v488_v6, %v556_v42  ;;  %v601_v47 = vsel %vm503_vm1, %v585_v43, 0.0  ;;  %v607_v50 = vsel %vm503_vm1, %v587_v44, 0.0 }
 0x1d1   : > { %602 = vadd.xlane.f32.xlu0 %v601_v47  ;;  %v518_v48 = vpop.xlane.xlu0 %517  ;;  %v521_v49 = vpop.xlane.xlu1 %520 }
 0x1d2   : > { %v557_v51 = vmul.f32 0.03125, %v518_v48  ;;  %v558_v52 = vmul.f32 0.03125, %v521_v49  ;;  %v586_v53 = vmul.f32 %v2536_v45, %v2536_v45  ;;  %v588_v54 = vmul.f32 %v2538_v46, %v2538_v46 }
 0x1d4   : > { %v2546_v55 = vsub.f32 %v489_v9, %v557_v51  ;;  %v2548_v56 = vsub.f32 %v490_v10, %v558_v52  ;;  %v604_v57 = vsel %vm503_vm1, %v586_v53, 0.0  ;;  %v610_v60 = vsel %vm503_vm1, %v588_v54, 0.0 }
 0x1d5   : > { %608 = vadd.xlane.f32.xlu0 %v607_v50  ;;  %605 = vadd.xlane.f32.xlu1 %v604_v57  ;;  %v524_v58 = vpop.xlane.xlu0 %523  ;;  %v527_v59 = vpop.xlane.xlu1 %526 }
 0x1d6   : > { %v559_v61 = vmul.f32 0.03125, %v524_v58  ;;  %v560_v62 = vmul.f32 0.03125, %v527_v59  ;;  %v589_v63 = vmul.f32 %v2546_v55, %v2546_v55  ;;  %v590_v0 = vmul.f32 %v2548_v56, %v2548_v56 }
 0x1d8   : > { %v2557_v1 = vsub.f32 %v2479_v13, %v559_v61  ;;  %v2560_v2 = vsub.f32 %v2482_v14, %v560_v62  ;;  %v613_v3 = vsel %vm503_vm1, %v589_v63, 0.0  ;;  %v616_v6 = vsel %vm503_vm1, %v590_v0, 0.0 }
 0x1d9   : > { %611 = vadd.xlane.f32.xlu1 %v610_v60  ;;  %614 = vadd.xlane.f32.xlu0 %v613_v3  ;;  %v530_v4 = vpop.xlane.xlu0 %529  ;;  %v533_v5 = vpop.xlane.xlu1 %532 }
 0x1da   : > { %v561_v7 = vmul.f32 0.03125, %v530_v4  ;;  %v562_v8 = vmul.f32 0.03125, %v533_v5  ;;  %v591_v9 = vmul.f32 %v2557_v1, %v2557_v1  ;;  %v592_v10 = vmul.f32 %v2560_v2, %v2560_v2 }
 0x1dc   : > { %v2569_v11 = vsub.f32 %v2489_v17, %v561_v7  ;;  %v2572_v12 = vsub.f32 %v2492_v18, %v562_v8  ;;  %v619_v13 = vsel %vm503_vm1, %v591_v9, 0.0  ;;  %v622_v16 = vsel %vm503_vm1, %v592_v10, 0.0 }
 0x1dd   : > { %617 = vadd.xlane.f32.xlu1 %v616_v6  ;;  %620 = vadd.xlane.f32.xlu0 %v619_v13  ;;  %v536_v14 = vpop.xlane.xlu0 %535  ;;  %v539_v15 = vpop.xlane.xlu1 %538 }
 0x1de   : > { %v563_v19 = vmul.f32 0.03125, %v536_v14  ;;  %v564_v20 = vmul.f32 0.03125, %v539_v15  ;;  %v593_v23 = vmul.f32 %v2569_v11, %v2569_v11  ;;  %v594_v17 = vmul.f32 %v2572_v12, %v2572_v12 }
 0x1e0   : > { %v2581_v24 = vsub.f32 %v2499_v21, %v563_v19  ;;  %v2584_v18 = vsub.f32 %v2502_v22, %v564_v20  ;;  %v625_v27 = vsel %vm503_vm1, %v593_v23, 0.0  ;;  %v628_v32 = vsel %vm503_vm1, %v594_v17, 0.0 }
 0x1e1   : > { %623 = vadd.xlane.f32.xlu1 %v622_v16  ;;  %626 = vadd.xlane.f32.xlu0 %v625_v27  ;;  %v542_v28 = vpop.xlane.xlu0 %541  ;;  %v545_v31 = vpop.xlane.xlu1 %544 }
 0x1e2   : > { %v565_v33 = vmul.f32 0.03125, %v542_v28  ;;  %v566_v34 = vmul.f32 0.03125, %v545_v31  ;;  %v595_v35 = vmul.f32 %v2581_v24, %v2581_v24  ;;  %v596_v21 = vmul.f32 %v2584_v18, %v2584_v18  ;;  %v2623_v31 = vld [vmem:[#allocation7] ss:$0 sm:$0xff] }
 0x1e4   : > { %v2593_v36 = vsub.f32 %v2509_v25, %v565_v33  ;;  %v2596_v22 = vsub.f32 %v2512_v26, %v566_v34  ;;  %v631_v39 = vsel %vm503_vm1, %v595_v35, 0.0  ;;  %v634_v42 = vsel %vm503_vm1, %v596_v21, 0.0 }
 0x1e5   : > { %629 = vadd.xlane.f32.xlu1 %v628_v32  ;;  %632 = vadd.xlane.f32.xlu0 %v631_v39  ;;  %v548_v40 = vpop.xlane.xlu0 %547  ;;  %v551_v41 = vpop.xlane.xlu1 %550 }
 0x1e6   : > { %v567_v43 = vmul.f32 0.03125, %v548_v40  ;;  %v568_v44 = vmul.f32 0.03125, %v551_v41  ;;  %v597_v47 = vmul.f32 %v2593_v36, %v2593_v36  ;;  %v598_v25 = vmul.f32 %v2596_v22, %v2596_v22 }
 0x1e8   : > { %v2605_v48 = vsub.f32 %v2519_v29, %v567_v43  ;;  %v2608_v26 = vsub.f32 %v2522_v30, %v568_v44  ;;  %v637_v49 = vsel %vm503_vm1, %v597_v47, 0.0  ;;  %v640_v50 = vsel %vm503_vm1, %v598_v25, 0.0 }
 0x1e9   : > { %635 = vadd.xlane.f32.xlu1 %v634_v42  ;;  %638 = vadd.xlane.f32.xlu0 %v637_v49  ;;  %v2008_v30 = vmov 0.0  }
 0x1ea   : > { %v599_v51 = vmul.f32 %v2605_v48, %v2605_v48  ;;  %v600_v52 = vmul.f32 %v2608_v26, %v2608_v26  ;;  %1321 = vmatprep.subr.bf16.mxu0 %v2008_v30  ;;  %1341 = vmatprep.subr.bf16.mxu1 %v2008_v30 }
 0x1eb   : > { %1337 = vmatprep.mubr.msk.bf16.mxu0 %vm2009_vm2, %v2008_v30  ;;  %1357 = vmatprep.mubr.msk.bf16.mxu1 %vm2009_vm2, %v2008_v30 }
 0x1ec   : > { %v643_v53 = vsel %vm503_vm1, %v599_v51, 0.0  ;;  %v646_v29 = vsel %vm503_vm1, %v600_v52, 0.0 }
 0x1ed   : > { %641 = vadd.xlane.f32.xlu1 %v640_v50  ;;  %644 = vadd.xlane.f32.xlu0 %v643_v53 }
 0x1f1   : > { %647 = vadd.xlane.f32.xlu1 %v646_v29 }
 0x25e   : > { %v603_v54 = vpop.xlane.xlu0 %602 }
 0x25f   : > { %v649_v57 = vmul.f32 0.03125, %v603_v54 }
 0x261   : > { %v665_v58 = vadd.f32 1e-05, %v649_v57 }
 0x262   : > { %v606_v59 = vpop.xlane.xlu1 %605  ;;  %v609_v60 = vpop.xlane.xlu0 %608 }
 0x263   : > { %1566 = vrsqrt.f32 %v665_v58  ;;  %v650_v61 = vmul.f32 0.03125, %v606_v59  ;;  %v651_v62 = vmul.f32 0.03125, %v609_v60 }
 0x265   : > { %v666_v63 = vadd.f32 1e-05, %v650_v61  ;;  %v667_v0 = vadd.f32 1e-05, %v651_v62 }
 0x266   : > { %v612_v3 = vpop.xlane.xlu1 %611  ;;  %v615_v4 = vpop.xlane.xlu0 %614 }
 0x267   : > { %1568 = vrsqrt.f32 %v666_v63  ;;  %v652_v5 = vmul.f32 0.03125, %v612_v3  ;;  %v653_v6 = vmul.f32 0.03125, %v615_v4 }
 0x268   : > { %1570 = vrsqrt.f32 %v667_v0 }
 0x269   : > { %v668_v7 = vadd.f32 1e-05, %v652_v5  ;;  %v669_v8 = vadd.f32 1e-05, %v653_v6 }
 0x26a   : > { %v618_v9 = vpop.xlane.xlu1 %617  ;;  %v621_v10 = vpop.xlane.xlu0 %620 }
 0x26b   : > { %1572 = vrsqrt.f32 %v668_v7  ;;  %v654_v13 = vmul.f32 0.03125, %v618_v9  ;;  %v655_v14 = vmul.f32 0.03125, %v621_v10 }
 0x26c   : > { %1574 = vrsqrt.f32 %v669_v8 }
 0x26d   : > { %v1567_v15 = vpop.eup %1566  ;;  %v670_v16 = vadd.f32 1e-05, %v654_v13  ;;  %v671_v19 = vadd.f32 1e-05, %v655_v14 }
 0x26e   : > { %v624_v20 = vpop.xlane.xlu1 %623  ;;  %v627_v23 = vpop.xlane.xlu0 %626  ;;  %v697_v17 = vmul.f32 %v1567_v15, %v2528_v37  ;;  %v2627_v37 = vld [vmem:[#allocation9] ss:$0 sm:$0xff] }
 0x26f   : > { %1576 = vrsqrt.f32 %v670_v16  ;;  %v656_v27 = vmul.f32 0.03125, %v624_v20  ;;  %v657_v28 = vmul.f32 0.03125, %v627_v23 }
 0x270   : > { %1578 = vrsqrt.f32 %v671_v19  ;;  %v719_v41 = vmul.f32 %v2623_v31, %v697_v17 }
 0x271   : > { %v1569_v32 = vpop.eup %1568  ;;  %v672_v33 = vadd.f32 1e-05, %v656_v27  ;;  %v673_v34 = vadd.f32 1e-05, %v657_v28 }
 0x272   : > { %v1571_v35 = vpop.eup %1570  ;;  %v630_v21 = vpop.xlane.xlu1 %629  ;;  %v698_v40 = vmul.f32 %v1569_v32, %v2536_v45  ;;  %v741_v29 = vadd.f32 %v2627_v37, %v719_v41 }
 0x273   : > { %v633_v39 = vpop.xlane.xlu0 %632  ;;  %1580 = vrsqrt.f32 %v672_v33  ;;  %v658_v42 = vmul.f32 0.03125, %v630_v21  ;;  %v699_v44 = vmul.f32 %v1571_v35, %v2530_v38 }
 0x274   : > { %v659_v43 = vmul.f32 0.03125, %v633_v39  ;;  %1582 = vrsqrt.f32 %v673_v34  ;;  %v720_v47 = vmul.f32 %v2623_v31, %v698_v40 }
 0x275   : > { %v1573_v25 = vpop.eup %1572  ;;  %v674_v49 = vadd.f32 1e-05, %v658_v42  ;;  %v721_v51 = vmul.f32 %v2623_v31, %v699_v44 }
 0x276   : > { %v675_v50 = vadd.f32 1e-05, %v659_v43  ;;  %v1575_v52 = vpop.eup %1574  ;;  %v636_v53 = vpop.xlane.xlu1 %635  ;;  %v742_v54 = vadd.f32 %v2627_v37, %v720_v47  ;;  %v700_v57 = vmul.f32 %v1573_v25, %v2538_v46 }
 0x277   : > { %v639_v45 = vpop.xlane.xlu0 %638  ;;  %1584 = vrsqrt.f32 %v674_v49  ;;  %v660_v58 = vmul.f32 0.03125, %v636_v53  ;;  %v701_v61 = vmul.f32 %v1575_v52, %v2546_v55  ;;  %v743_v3 = vadd.f32 %v2627_v37, %v721_v51 }
 0x278   : > { %v661_v38 = vmul.f32 0.03125, %v639_v45  ;;  %1586 = vrsqrt.f32 %v675_v50  ;;  %v757_v59 = vpack.c.bf16 %v742_v54, %v741_v29  ;;  %v722_v60 = vmul.f32 %v2623_v31, %v700_v57 }
 0x279   : > { %v1577_v62 = vpop.eup %1576  ;;  %v676_v63 = vadd.f32 1e-05, %v660_v58  ;;  %v723_v8 = vmul.f32 %v2623_v31, %v701_v61 }
 0x27a   : > { %v677_v0 = vadd.f32 1e-05, %v661_v38  ;;  %v1579_v4 = vpop.eup %1578  ;;  %v642_v5 = vpop.xlane.xlu1 %641  ;;  %1322 = vmatpush3.bf16.msra.mxu0 %v757_v59  ;;  %1342 = vmatpush3.bf16.msra.mxu1 %v757_v59  ;;  %v744_v46 = vadd.f32 %v2627_v37, %v722_v60  ;;  %v702_v7 = vmul.f32 %v1577_v62, %v2548_v56 }
 0x27b   : > { %v645_v6 = vpop.xlane.xlu0 %644  ;;  %1588 = vrsqrt.f32 %v676_v63  ;;  %v662_v9 = vmul.f32 0.03125, %v642_v5  ;;  %1323 = vmatprep.subr.bf16.mxu0 %v2008_v30  ;;  %1343 = vmatprep.subr.bf16.mxu1 %v2008_v30  ;;  %v703_v55 = vmul.f32 %v1579_v4, %v2557_v1  ;;  %v745_v56 = vadd.f32 %v2627_v37, %v723_v8  ;;  %v766_v5 = vld [vmem:[%s411_s25] sm:$0xf] }
 0x27c   : > { %v663_v10 = vmul.f32 0.03125, %v645_v6  ;;  %1590 = vrsqrt.f32 %v677_v0  ;;  %v758_v13 = vpack.c.bf16 %v744_v46, %v743_v3  ;;  %v724_v14 = vmul.f32 %v2623_v31, %v702_v7  ;;  %v810_v6 = vld [vmem:[%s420_s15] sm:$0xf]  ;;  %v809_v46 = vld [vmem:[#allocation3] sm:$0xff] }
 0x27d   : > { %v1581_v15 = vpop.eup %1580  ;;  %v678_v16 = vadd.f32 1e-05, %v662_v9  ;;  %v725_v28 = vmul.f32 %v2623_v31, %v703_v55 }
 0x27e   : > { %v679_v19 = vadd.f32 1e-05, %v663_v10  ;;  %v1583_v20 = vpop.eup %1582  ;;  %v648_v23 = vpop.xlane.xlu1 %647  ;;  %1324 = vmatpush3.bf16.msra.mxu0 %v758_v13  ;;  %1344 = vmatpush3.bf16.msra.mxu1 %v758_v13  ;;  %v746_v17 = vadd.f32 %v2627_v37, %v724_v14  ;;  %v704_v27 = vmul.f32 %v1581_v15, %v2560_v2 }
 0x27f   : > { %1592 = vrsqrt.f32 %v678_v16  ;;  %v664_v1 = vmul.f32 0.03125, %v648_v23  ;;  %1325 = vmatprep.subr.bf16.mxu0 %v2008_v30  ;;  %1345 = vmatprep.subr.bf16.mxu1 %v2008_v30  ;;  %v705_v32 = vmul.f32 %v1583_v20, %v2569_v11  ;;  %v747_v2 = vadd.f32 %v2627_v37, %v725_v28  ;;  %v1598_v23 = vld [vmem:[#allocation13] sm:$0xff] (!%p1278_p7)  }
 0x280   : > { %1594 = vrsqrt.f32 %v679_v19  ;;  %v759_v33 = vpack.c.bf16 %v746_v17, %v745_v56  ;;  %v726_v34 = vmul.f32 %v2623_v31, %v704_v27  ;;  %v1599_v17 = vld [vmem:[#allocation15] sm:$0xff] (!%p1278_p7)  }
 0x281   : > { %v1585_v35 = vpop.eup %1584  ;;  %v680_v21 = vadd.f32 1e-05, %v664_v1  ;;  %v727_v39 = vmul.f32 %v2623_v31, %v705_v32  ;;  %v1600_v1 = vld [vmem:[#allocation13 + $0x8] sm:$0xff] (!%p1278_p7)   ;;  %v1601_v32 = vld [vmem:[#allocation15 + $0x8] sm:$0xff] (!%p1278_p7)  }
 0x282   : > { %v1587_v40 = vpop.eup %1586  ;;  %1326 = vmatpush3.bf16.msra.mxu0 %v759_v33  ;;  %1346 = vmatpush3.bf16.msra.mxu1 %v759_v33  ;;  %v748_v41 = vadd.f32 %v2627_v37, %v726_v34  ;;  %v706_v42 = vmul.f32 %v1585_v35, %v2572_v12 }
 0x283   : > { %1596 = vrsqrt.f32 %v680_v21  ;;  %1327 = vmatprep.subr.bf16.mxu0 %v2008_v30  ;;  %1347 = vmatprep.subr.bf16.mxu1 %v2008_v30  ;;  %v707_v11 = vmul.f32 %v1587_v40, %v2581_v24  ;;  %v749_v25 = vadd.f32 %v2627_v37, %v727_v39 }
 0x284   : > { %v760_v43 = vpack.c.bf16 %v748_v41, %v747_v2  ;;  %v728_v44 = vmul.f32 %v2623_v31, %v706_v42 }
 0x285   : > { %v1589_v47 = vpop.eup %1588  ;;  %v729_v51 = vmul.f32 %v2623_v31, %v707_v11 }
 0x286   : > { %v1591_v49 = vpop.eup %1590  ;;  %1328 = vmatpush3.bf16.msra.mxu0 %v760_v43  ;;  %1348 = vmatpush3.bf16.msra.mxu1 %v760_v43  ;;  %v750_v50 = vadd.f32 %v2627_v37, %v728_v44  ;;  %v708_v12 = vmul.f32 %v1589_v47, %v2584_v18 }
 0x287   : > { %1329 = vmatprep.subr.bf16.mxu0 %v2008_v30  ;;  %1349 = vmatprep.subr.bf16.mxu1 %v2008_v30  ;;  %v709_v24 = vmul.f32 %v1591_v49, %v2593_v36  ;;  %v751_v57 = vadd.f32 %v2627_v37, %v729_v51 }
 0x288   : > { %v761_v52 = vpack.c.bf16 %v750_v50, %v749_v25  ;;  %v730_v53 = vmul.f32 %v2623_v31, %v708_v12 }
 0x289   : > { %v1593_v45 = vpop.eup %1592  ;;  %v731_v29 = vmul.f32 %v2623_v31, %v709_v24 }
 0x28a   : > { %v1595_v54 = vpop.eup %1594  ;;  %1330 = vmatpush3.bf16.msra.mxu0 %v761_v52  ;;  %1350 = vmatpush3.bf16.msra.mxu1 %v761_v52  ;;  %v752_v18 = vadd.f32 %v2627_v37, %v730_v53  ;;  %v710_v58 = vmul.f32 %v1593_v45, %v2596_v22 }
 0x28b   : > { %1331 = vmatprep.subr.bf16.mxu0 %v2008_v30  ;;  %1351 = vmatprep.subr.bf16.mxu1 %v2008_v30  ;;  %v711_v36 = vmul.f32 %v1595_v54, %v2605_v48  ;;  %v753_v61 = vadd.f32 %v2627_v37, %v731_v29 }
 0x28c   : > { %v762_v38 = vpack.c.bf16 %v752_v18, %v751_v57  ;;  %v732_v59 = vmul.f32 %v2623_v31, %v710_v58 }
 0x28d   : > { %v1597_v60 = vpop.eup %1596  ;;  %v733_v22 = vmul.f32 %v2623_v31, %v711_v36 }
 0x28e   : > { %1332 = vmatpush3.bf16.msra.mxu0 %v762_v38  ;;  %1352 = vmatpush3.bf16.msra.mxu1 %v762_v38  ;;  %v754_v62 = vadd.f32 %v2627_v37, %v732_v59  ;;  %v712_v63 = vmul.f32 %v1597_v60, %v2608_v26 }
 0x28f   : > { %1333 = vmatprep.subr.bf16.mxu0 %v2008_v30  ;;  %1353 = vmatprep.subr.bf16.mxu1 %v2008_v30  ;;  %v755_v3 = vadd.f32 %v2627_v37, %v733_v22 }
 0x290   : > { %v763_v48 = vpack.c.bf16 %v754_v62, %v753_v61  ;;  %v734_v0 = vmul.f32 %v2623_v31, %v712_v63  ;;  %v765_v31 = vld [vmem:[#allocation2] sm:$0xff] }
 0x292   : > { %1334 = vmatpush3.bf16.msra.mxu0 %v763_v48  ;;  %1354 = vmatpush3.bf16.msra.mxu1 %v763_v48  ;;  %v756_v4 = vadd.f32 %v2627_v37, %v734_v0 }
 0x293   : > { %1335 = vmatprep.subr.bf16.mxu0 %v2008_v30  ;;  %1355 = vmatprep.subr.bf16.mxu1 %v2008_v30 }
 0x294   : > { %v764_v26 = vpack.c.bf16 %v756_v4, %v755_v3 }
 0x296   : > { %1336 = vmatpush3.bf16.msra.mxu0 %v764_v26  ;;  %1356 = vmatpush3.bf16.msra.mxu1 %v764_v26 }
 0x299   : > { %1338 = vmatmul.mubr.bf16.vlgmr.msra.gmra.mrb[0].mxu0 %v766_v5  ;;  %1358 = vmatmul.mubr.bf16.vlgmr.msra.gmra.mrb[0].mxu1 %v810_v6 }
 0x29a   : > { %1363 = vmatprep.mubr.msk.bf16.mxu0 (!%p1278_p7), %vm503_vm1, %v1598_v23  ;;  %1369 = vmatprep.mubr.msk.bf16.mxu1 (!%p1278_p7), %vm503_vm1, %v1599_v17 }
 0x369   : > { %856 = sbr.rel (%p1278_p7) target bundleno = 1113 (0x459), region = 84 }
 0x36c   : > { %v801_v7 = vpop.f32.mrb[0].mxu0  ;;  %v845_v8 = vpop.f32.mrb[0].mxu1 }
 0x36d   : > { %v807_v9 = vadd.f32 %v801_v7, %v765_v31  ;;  %v851_v10 = vadd.f32 %v845_v8, %v809_v46  ;;  %v1339_v37 = vpop.f32.mrb[1].mxu0  ;;  %v1359_v55 = vpop.f32.mrb[1].mxu1 }
 0x36e   : > { %v804_v13 = vpop.f32.mrb[2].mxu0  ;;  %v848_v14 = vpop.f32.mrb[2].mxu1 }
 0x36f   : > { %808 = vst.msk [vmem:[#allocation2] sm:$0xff] %vm503_vm1, %v807_v9  ;;  %852 = vst.msk [vmem:[#allocation3] sm:$0xff] %vm503_vm1, %v851_v10  ;;  %v1340_v30 = vpop.f32.mrb[3].mxu0  ;;  %v1360_v15 = vpop.f32.mrb[3].mxu1 }
 0x376   : > { %v861_v16 = vld [vmem:[#allocation2] sm:$0xff]  ;;  %v940_v19 = vld [vmem:[#allocation3] sm:$0xff] }
 0x377   : > { %v862_v56 = vpack.c.bf16 %v861_v16, %v861_v16  ;;  %v941_v20 = vpack.c.bf16 %v940_v19, %v940_v19 }
 0x379   : > { %1373 = vmatprep.subr.msk.bf16.mxu0 %vm503_vm1, %v862_v56  ;;  %1374 = vmatprep.subr.msk.bf16.mxu1 %vm503_vm1, %v941_v20  ;;  %v880_v27 = vsel %vm503_vm1, %v862_v56, 0  ;;  %v959_v28 = vsel %vm503_vm1, %v941_v20, 0 }
 0x37a   : > { %1362 = vmatpush3.bf16.xpose.msra.mxu0 %v880_v27  ;;  %1368 = vmatpush3.bf16.xpose.msra.mxu1 %v959_v28 }
 0x381   : > { %1364 = vmatmul.mubr.msk.bf16.vlgmr.msra.gmra.mrb[0].mxu0 %vm503_vm1, %v1600_v1  ;;  %1370 = vmatmul.mubr.msk.bf16.vlgmr.msra.gmra.mrb[0].mxu1 %vm503_vm1, %v1601_v32 }
 0x454   : > { %v1365_v33 = vpop.f32.mrb[0].mxu0  ;;  %v1371_v34 = vpop.f32.mrb[0].mxu1 }
 0x455   : > { %934 = vst.msk [vmem:[%s2461_s0 + $0x10] sm:$0xff] %vm931_vm3, %v1365_v33  ;;  %1012 = vst.msk [vmem:[%s2463_s2 + $0x10] sm:$0xff] %vm931_vm3, %v1371_v34  ;;  %v916_v35 = vpop.f32.mrb[1].mxu0  ;;  %v995_v21 = vpop.f32.mrb[1].mxu1 }
 0x456   : > { %932 = vst.msk [vmem:[%s2461_s0] sm:$0xff] %vm931_vm3, %v916_v35  ;;  %1010 = vst.msk [vmem:[%s2463_s2] sm:$0xff] %vm931_vm3, %v995_v21  ;;  %v1366_v39 = vpop.f32.mrb[2].mxu0  ;;  %v1372_v40 = vpop.f32.mrb[2].mxu1 }
 0x457   : > { %935 = vst.msk [vmem:[%s2461_s0 + $0x18] sm:$0xff] %vm931_vm3, %v1366_v39  ;;  %1013 = vst.msk [vmem:[%s2463_s2 + $0x18] sm:$0xff] %vm931_vm3, %v1372_v40  ;;  %v919_v2 = vpop.f32.mrb[3].mxu0  ;;  %v998_v41 = vpop.f32.mrb[3].mxu1 }
 0x458   : > { %933 = vst.msk [vmem:[%s2461_s0 + $0x8] sm:$0xff] %vm931_vm3, %v919_v2  ;;  %1011 = vst.msk [vmem:[%s2463_s2 + $0x8] sm:$0xff] %vm931_vm3, %v998_v41 }
 0x459 PF: > { %s2954_s29 = sld [smem:[#allocation31_spill]]  ;;  %s2955_s28 = sld [smem:[#allocation40_spill]] }
 0x45a   : > { %s2956_s26 = sld [smem:[#allocation48_spill]]  ;;  %s1033_s21 = sshll.u32 %s2461_s0, 4  ;;  %s2728_s21 = int_to_ptr.vmem [resolvable:$true] %s1033_s21 }
 0x45b   : > { %s1015_s11 = scalar_lea.sflag [#allocation6], %s2458_s24  ;;  %s1804_s20 = scalar_lea.vmem %s2728_s21, 512 }
 0x45c   : > { %p1805_p6 = scmp.ne.s32.totalorder %s2728_s21, %s1804_s20  ;;  %s2010_s10 = smov [#allocation16]  }
 0x45d   : > { %s1808_s1 = sshll.u32 %s2010_s10, 4  ;;  %s1809_s1 = int_to_ptr.vmem [resolvable:$false] %s1808_s1 }
 0x45e   : > { %s1810_s7 = scalar_lea.vmem %s1809_s1, 1024  ;;  %p1811_p2 = scmp.lt.s32.totalorder %s2728_s21, %s1809_s1 }
 0x45f   : > { %s1295_s8 = sshll.u32 %s2954_s29, 9  ;;  %p2957_p5 = scmp.ne.s32.totalorder %s2955_s28, 0 }
 0x460   : > { %s2725_s3 = scalar_lea.hbm %s2956_s26, %s1295_s8  ;;  %p1812_p10 = scmp.lt.s32.totalorder %s1810_s7, %s1804_s20 }
 0x461   : > { %p1806_p9 = pnand %p1805_p6, %p2957_p5 }
 0x462   : > { %p1813_p3 = por %p1812_p10, %p1811_p2 }
 0x463   : > { %p1807_p0 = pneg %p1806_p9 }
 0x465   : > { %p1814_p1 = pnand %p1813_p3, %p1807_p0 }
 0x467   : > { %1817 = shalt.err (!%p1814_p1)
}
 0x468   : > { %s1818_s18 = scalar_lea.hbm %s2725_s3, 512  ;;  %s1822_s15 = scalar_lea.hbm %s2956_s26, 1024 }
 0x469   : > { %p1819_p12 = scmp.ne.s32.totalorder %s2725_s3, %s1818_s18  ;;  %p1823_p13 = scmp.lt.u32.totalorder %s2725_s3, %s2956_s26 }
 0x46a   : > { %p1824_p4 = scmp.lt.u32.totalorder %s1822_s15, %s1818_s18  ;;  %p1826_p6 = scmp.lt.u32.totalorder %s1818_s18, %s2725_s3 }
 0x46b   : > { %p1820_p11 = pnand %p1819_p12, %p2957_p5 }
 0x46c   : > { %p1825_p7 = por %p1824_p4, %p1823_p13 }
 0x46d   : > { %p1821_p8 = pneg %p1820_p11 }
 0x46e   : > { %p1827_p9 = por %p1826_p6, %p1825_p7 }
 0x470   : > { %p1828_p0 = pnand %p1827_p9, %p1821_p8 }
 0x472   : > { %1831 = shalt.err (!%p1828_p0)
}
 0x473   : > { %s2011_s0 = smov 128   ;;  %s2012_s13 = smov 8  }
 0x474   : > { %1397 = dma.vmem_to_hbm [thread:$0]  (%p2957_p5), %s2728_s21, 512, %s2725_s3, %s1015_s11, %s2011_s0, %s2011_s0, %s2012_s13  }
 0x475   : > { %s2958_s5 = sld [smem:[#allocation49_spill]]  ;;  %s1049_s10 = sshll.u32 %s2463_s2, 4  ;;  %s2765_s10 = int_to_ptr.vmem [resolvable:$true] %s1049_s10 }
 0x476   : > { %s1020_s1 = scalar_lea.sflag [#allocation18], %s2458_s24  ;;  %s1832_s7 = scalar_lea.vmem %s2765_s10, 512 }
 0x477   : > { %p1833_p2 = scmp.ne.s32.totalorder %s2765_s10, %s1832_s7  ;;  %s2013_s18 = smov [#allocation17]  }
 0x478   : > { %s1836_s3 = sshll.u32 %s2013_s18, 4  ;;  %s1837_s3 = int_to_ptr.vmem [resolvable:$false] %s1836_s3 }
 0x479   : > { %p1834_p10 = pnand %p1833_p2, %p2957_p5  ;;  %s1838_s29 = scalar_lea.vmem %s1837_s3, 1024 }
 0x47a   : > { %p1839_p1 = scmp.lt.s32.totalorder %s2765_s10, %s1837_s3  ;;  %p1840_p12 = scmp.lt.s32.totalorder %s1838_s29, %s1832_s7 }
 0x47b   : > { %s2762_s20 = scalar_lea.hbm %s2958_s5, %s1295_s8  ;;  %p1835_p3 = pneg %p1834_p10 }
 0x47c   : > { %p1841_p11 = por %p1840_p12, %p1839_p1 }
 0x47e   : > { %p1842_p8 = pnand %p1841_p11, %p1835_p3 }
 0x480   : > { %1845 = shalt.err (!%p1842_p8)
}
 0x481   : > { %s1846_s2 = scalar_lea.hbm %s2762_s20, 512  ;;  %s1850_s11 = scalar_lea.hbm %s2958_s5, 1024 }
 0x482   : > { %p1847_p13 = scmp.ne.s32.totalorder %s2762_s20, %s1846_s2  ;;  %p1851_p6 = scmp.lt.u32.totalorder %s2762_s20, %s2958_s5 }
 0x483   : > { %p1852_p9 = scmp.lt.u32.totalorder %s1850_s11, %s1846_s2  ;;  %p1854_p2 = scmp.lt.u32.totalorder %s1846_s2, %s2762_s20 }
 0x484   : > { %p1848_p4 = pnand %p1847_p13, %p2957_p5 }
 0x485   : > { %p1853_p0 = por %p1852_p9, %p1851_p6 }
 0x486   : > { %p1849_p7 = pneg %p1848_p4 }
 0x487   : > { %p1855_p10 = por %p1854_p2, %p1853_p0 }
 0x489   : > { %p1856_p3 = pnand %p1855_p10, %p1849_p7 }
 0x48b   : > { %1859 = shalt.err (!%p1856_p3)
}
 0x48c   : > { %1398 = dma.vmem_to_hbm [thread:$0]  (%p2957_p5), %s2765_s10, 512, %s2762_s20, %s1020_s1, %s2011_s0, %s2011_s0, %s2012_s13  }
 0x48d PF: > { %s2959_s15 = sld [smem:[#allocation32_spill]]  ;;  %s2960_s22 = sld [smem:[#allocation25_spill]] }
 0x48e   : > { %s2961_s27 = sld [smem:[#allocation41_spill]] }
 0x493   : > { %p1440_p1 = scmp.ge.s32.totalorder %s2959_s15, 2  ;;  %s1064_s19 = sand.u32 1, %s2960_s22  }
 0x494   : > { %p2962_p12 = scmp.ne.s32.totalorder %s2961_s27, 0  ;;  %s1065_s30 = scalar_lea.sflag [#allocation6], %s1064_s19 }
 0x496   : > { %p1425_p11 = pnand %p1440_p1, %p2962_p12 }
 0x498   : > { %1933 = dma.done.wait (!%p1425_p11), %s1065_s30, 512  }
 0x499   : > { %1935 = vsyncadd (!%p1425_p11), %s1065_s30, 4294966784  ;;  %s1074_s28 = scalar_lea.sflag [#allocation18], %s1064_s19 }
 0x49a   : > { %1937 = dma.done.wait (!%p1425_p11), %s1074_s28, 512  }
 0x49b   : > { %1939 = vsyncadd (!%p1425_p11), %s1074_s28, 4294966784  ;;  %s33_s18 = sadd.s32 1, %s2959_s15   ;;  %s2964_s27 = sld [smem:[#allocation26_spill]] }
 0x49c   : > { %p2799_p8 = scmp.ge.s32.totalorder %s33_s18, 6   ;;  %s2965_s28 = sld [smem:[#allocation27_spill]] }
 0x49d   : > { %s2966_s29 = sld [smem:[#allocation39_spill]]  ;;  %s2967_s0 = sld [smem:[#allocation28_spill]] }
 0x49e   : > { %s2968_s10 = sld [smem:[#allocation37_spill]]  ;;  %s2969_s13 = sld [smem:[#allocation29_spill]] }
 0x49f   : > { %s2970_s20 = sld [smem:[#allocation38_spill]]  ;;  %s2971_s1 = sld [smem:[#allocation34_spill]] }
 0x4a0   : > { %s2972_s7 = sld [smem:[#allocation35_spill]]  ;;  %s2973_s30 = smov %s1958_s9 }
 0x4a1   : > { %s2975_s11 = smov %s1970_s12  ;;  %s2978_s14 = smov %s1986_s16 }
 0x4a2   : > { %s2979_s15 = smov %s1990_s17  ;;  %32 = sbr.rel (!%p2799_p8) target bundleno = 25 (0x19), region = 158 }
 0x4a3   : > { %s2974_s9 = smov %s2967_s0 }
 0x4a4   : > { %s2976_s12 = smov %s2969_s13 }
 0x4a5   : > { %s2977_s13 = smov %s2970_s20  ;;  %s2980_s16 = smov %s2971_s1 }
 0x4a6   : > { %s2981_s17 = smov %s2972_s7 }
 0x4a9   :  { %1079 = vsyncpa [#allocation5], 1 }
 0x4aa   :  { %1081 = vsyncpa [#allocation5 + $0x1], 1 }
 0x4ab   :  { %1082 = vsyncpa [#allocation8], 1 }
 0x4ac   :  { %1083 = vsyncpa [#allocation11], 1 }
 0x4ad   :  { %1085 = vsyncpa [#allocation11 + $0x1], 1 }
 0x4ae   :  { %1086 = vsyncpa [#allocation14], 1 }
 0x4af   :  { %1087 = vsyncpa [#allocation6], 1 }
 0x4b0   :  { %1089 = vsyncpa [#allocation6 + $0x1], 1 }
 0x4b1   :  { %1090 = vsyncpa [#allocation18], 1 }
 0x4b2   :  { %1092 = vsyncpa [#allocation18 + $0x1], 1 }

// kernel: linformer_forward.5
= control target key start
LH: loop header
LB: loop body
LE: loop exit
PB: predicated region body
PF: predicated region fallthrough
CT: control target
= control target key end

     0   :  { %s6611_s0 = inlined_call_operand.hbm [shape: f32[2,256,32], index: 0, kind: input, shape index: {}]   ;;  %s6612_s1 = inlined_call_operand.hbm [shape: f32[1,32], index: 1, kind: input, shape index: {}]   ;;  %s6613_s2 = inlined_call_operand.hbm [shape: f32[1,32], index: 2, kind: input, shape index: {}]   ;;  %s6614_s3 = inlined_call_operand.hbm [shape: bf16[32,32], index: 3, kind: input, shape index: {}]   ;;  %s6615_s4 = inlined_call_operand.hbm [shape: f32[2,32,8], index: 4, kind: input, shape index: {}]   ;;  %s6616_s5 = inlined_call_operand.hbm [shape: f32[2,32,8], index: 5, kind: input, shape index: {}]   ;;  %s6617_s6 = inlined_call_operand.hbm [shape: bf16[32,32], index: 6, kind: input, shape index: {}]   ;;  %s6618_s7 = inlined_call_operand.hbm [shape: f32[1,32], index: 7, kind: input, shape index: {}]   ;;  %s6619_s8 = inlined_call_operand.hbm [shape: f32[1,32], index: 8, kind: input, shape index: {}]   ;;  %s6620_s9 = inlined_call_operand.hbm [shape: f32[1,32], index: 9, kind: input, shape index: {}]   ;;  %s6621_s10 = inlined_call_operand.hbm [shape: bf16[32,64], index: 10, kind: input, shape index: {}]   ;;  %s6622_s11 = inlined_call_operand.hbm [shape: f32[1,64], index: 11, kind: input, shape index: {}]   ;;  %s6623_s12 = inlined_call_operand.hbm [shape: bf16[64,32], index: 12, kind: input, shape index: {}]   ;;  %s6624_s13 = inlined_call_operand.hbm [shape: f32[1,32], index: 13, kind: input, shape index: {}]   ;;  %s6625_s14 = inlined_call_operand.hbm [shape: f32[2,256,32], index: 14, kind: output, shape index: {}]  }
   0x1   :  { %6672 = sst [smem:[#allocation47_spill]] %s6611_s0 }
   0x2   :  { %6673 = sst [smem:[#allocation48_spill]] %s6612_s1 }
   0x3   :  { %6674 = sst [smem:[#allocation49_spill]] %s6613_s2 }
   0x4   :  { %6675 = sst [smem:[#allocation50_spill]] %s6614_s3 }
   0x5   :  { %6676 = sst [smem:[#allocation51_spill]] %s6615_s4 }
   0x6   :  { %6677 = sst [smem:[#allocation52_spill]] %s6616_s5 }
   0x7   :  { %6678 = sst [smem:[#allocation53_spill]] %s6617_s6 }
   0x8   :  { %6679 = sst [smem:[#allocation54_spill]] %s6618_s7 }
   0x9   :  { %6680 = sst [smem:[#allocation55_spill]] %s6619_s8 }
   0xa   :  { %6681 = sst [smem:[#allocation56_spill]] %s6620_s9 }
   0xb   :  { %6682 = sst [smem:[#allocation57_spill]] %s6621_s10 }
   0xc   :  { %6683 = sst [smem:[#allocation58_spill]] %s6622_s11 }
   0xd   :  { %6684 = sst [smem:[#allocation59_spill]] %s6623_s12 }
   0xe   :  { %6685 = sst [smem:[#allocation60_spill]] %s6624_s13 }
   0xf   :  { %6686 = sst [smem:[#allocation61_spill]] %s6625_s14 }
  0x10   :  { %19 = vsyncpa [#allocation3], 0 }
  0x11   :  { %21 = vsyncpa [#allocation3 + $0x1], 0 }
  0x12   :  { %22 = vsyncpa [#allocation6], 0 }
  0x13   :  { %23 = vsyncpa [#allocation9], 0 }
  0x14   :  { %24 = vsyncpa [#allocation15], 0 }
  0x15   :  { %25 = vsyncpa [#allocation18], 0 }
  0x16   :  { %26 = vsyncpa [#allocation21], 0 }
  0x17   :  { %27 = vsyncpa [#allocation4], 0 }
  0x18   :  { %29 = vsyncpa [#allocation4 + $0x1], 0  ;;  %s5204_s29 = smov 0   ;;  %s5206_s30 = smov 0  }
  0x19   :  { %s5208_s15 = smov 0   ;;  %s5210_s16 = smov 0  }
  0x1a   :  { %s5212_s17 = smov 0   ;;  %s5214_s18 = smov 0  }
  0x1b   :  { %s5216_s19 = smov 0   ;;  %s5218_s20 = smov 0  }
  0x1c   :  { %s5220_s21 = smov 0   ;;  %s5222_s22 = smov 0  }
  0x1d   :  { %s5224_s23 = smov 0  }
  0x1e LB: > { %6687 = sst [smem:[#allocation34_spill]] %s5072_s16  ;;  %s5260_s24 = sadd.s32 4294967295, %s5100_s23   ;;  %s5100_s23 = sphi %s5224_s23, %s35_s23   ;;  %s5096_s22 = sphi %s5222_s22, %s6781_s22   ;;  %s5092_s21 = sphi %s5220_s21, %s6773_s21   ;;  %s5088_s20 = sphi %s5218_s20, %s6780_s20   ;;  %s5084_s19 = sphi %s5216_s19, %s6772_s19   ;;  %s5080_s18 = sphi %s5214_s18, %s6779_s18   ;;  %s5076_s17 = sphi %s5212_s17, %s6778_s17   ;;  %s5072_s16 = sphi %s5210_s16, %s6770_s16   ;;  %s5068_s15 = sphi %s5208_s15, %s6777_s15   ;;  %s5064_s30 = sphi %s5206_s30, %s6776_s30   ;;  %s5060_s29 = sphi %s5204_s29, %s6775_s29  }
  0x1f   : > { %6688 = sst [smem:[#allocation35_spill]] %s5076_s17  ;;  %p3579_p0 = scmp.ge.s32.totalorder %s5100_s23, 1 }
  0x20   : > { %6689 = sst [smem:[#allocation36_spill]] %s5084_s19  ;;  %p6631_p1 = scmp.eq.s32.totalorder %s5260_s24, 0 }
  0x21   : > { %6690 = sst [smem:[#allocation37_spill]] %s5088_s20  ;;  %p391_p2 = scmp.lt.s32.totalorder %s5100_s23, 9 }
  0x22   : > { %6691 = sst [smem:[#allocation38_spill]] %s5092_s21  ;;  %s5102_s26 = smov [#allocation5]  }
  0x23   : > { %6692 = sst [smem:[#allocation39_spill]] %s5260_s24  ;;  %p5265_p3 = pnand %p3579_p0, %p391_p2 }
  0x24   : > { %s404_s27 = sshll.u32 %s5102_s26, 4  ;;  %s6696_s1 = sld [smem:[#allocation48_spill]]  ;;  %s405_s27 = int_to_ptr.vmem [resolvable:$true] %s404_s27 }
  0x25   : > { %s6693_s25 = scalar_select %p5265_p3, 1, 0 }
  0x26   : > { %p4095_p4 = pneg %p5265_p3 }
  0x27   : > { %6694 = sst [smem:[#allocation40_spill]] %s6693_s25 }
  0x28   : > { %p5273_p5 = pnand %p4095_p4, %p6631_p1 }
  0x2a   : > { %s6695_s28 = scalar_select %p5273_p5, 1, 0 }
  0x2b   : > { %s4548_s19 = scalar_lea.hbm %s6696_s1, 16  ;;  %p5285_p7 = pneg %p5273_p5 }
  0x2c   : > { %p4549_p6 = scmp.ne.s32.totalorder %s6696_s1, %s4548_s19  ;;  %p4555_p10 = scmp.lt.u32.totalorder %s4548_s19, %s6696_s1 }
  0x2e   : > { %p4551_p8 = pnand %p5285_p7, %p4549_p6 }
  0x30   : > { %p4552_p9 = pneg %p4551_p8 }
  0x32   : > { %p4557_p11 = pnand %p4555_p10, %p4552_p9 }
  0x34   : > { %4560 = shalt.err (!%p4557_p11)
}
  0x35   : > { %s4561_s14 = scalar_lea.vmem %s405_s27, 16  ;;  %s4568_s5 = scalar_lea.vmem %s405_s27, 32 }
  0x36   : > { %p4562_p12 = scmp.ne.s32.totalorder %s405_s27, %s4561_s14  ;;  %p4569_p2 = scmp.lt.s32.totalorder %s405_s27, %s405_s27 }
  0x37   : > { %p4570_p4 = scmp.lt.s32.totalorder %s4568_s5, %s4561_s14 }
  0x38   : > { %p4564_p13 = pnand %p4562_p12, %p5285_p7 }
  0x39   : > { %p4571_p1 = por %p4570_p4, %p4569_p2 }
  0x3a   : > { %p4565_p0 = pneg %p4564_p13 }
  0x3c   : > { %p4572_p3 = pnand %p4571_p1, %p4565_p0 }
  0x3e   : > { %4575 = shalt.err (!%p4572_p3)
}
  0x3f   : > { %4098 = dma.hbm_to_vmem [thread:$0]  (!%p5273_p5), %s6696_s1, 16, %s405_s27, [#allocation6]  }
  0x40   : > { %s3578_s11 = sadd.s32 4294967294, %s5100_s23   ;;  %s44_s19 = sadd.s32 1, %s5092_s21 }
  0x41   : > { %s47_s25 = sadd.s32 1, %s5096_s22  ;;  %p45_p1 = scmp.ge.s32.totalorder %s44_s19, 4 }
  0x42   : > { %s56_s14 = sadd.s32 1, %s5080_s18  ;;  %p63_p3 = scmp.ne.s32.totalorder %s5080_s18, %s5076_s17 }
  0x43   : > { %p6650_p6 = scmp.eq.s32.totalorder %s5100_s23, 0  ;;  %s6783_s19 = smov (%p45_p1, %s44_s19), 0 }
  0x44   : > { %6698 = sst [smem:[#allocation41_spill]] %s6783_s19  ;;  %s6785_s25 = smov (!%p45_p1, %s47_s25), %s5096_s22 }
  0x45   : > { %s52_s5 = ssub.s32 %s5092_s21, %s6783_s19  ;;  %p5315_p8 = por %p6650_p6, %p63_p3 }
  0x46   : > { %p49_p9 = scmp.ge.s32.totalorder %s6785_s25, 2  ;;  %p69_p10 = scmp.ne.s32.totalorder %s5076_s17, %s5072_s16 }
  0x47   : > { %p378_p11 = scmp.eq.s32.totalorder %s5260_s24, 7  ;;  %p384_p12 = scmp.eq.s32.totalorder %s3578_s11, 7 }
  0x48   : > { %s6787_s25 = smov (%p49_p9, %s6785_s25), 0  ;;  %p6701_p13 = scmp.eq.s32.totalorder %s5260_s24, 0 }
  0x49   : > { %6700 = sst [smem:[#allocation42_spill]] %s6787_s25  ;;  %p5330_p2 = por %p378_p11, %p63_p3 }
  0x4a   : > { %p5326_p0 = por %p6701_p13, %p69_p10  ;;  %s5336_s1 = ssub.s32 %s5096_s22, %s6787_s25 }
  0x4b   : > { %s6704_s20 = scalar_select %p5330_p2, 1, 0 }
  0x4c   : > { %s6702_s13 = scalar_select %p5326_p0, 1, 0 }
  0x4d   : > { %6705 = sst [smem:[#allocation44_spill]] %s6704_s20  ;;  %p5338_p4 = por %p384_p12, %p69_p10 }
  0x4e   : > { %6703 = sst [smem:[#allocation43_spill]] %s6702_s13  ;;  %s53_s11 = sor.u32 %s52_s5, %s5336_s1 }
  0x4f   : > { %s6706_s19 = scalar_select %p5338_p4, 1, 0 }
  0x50   : > { %p54_p9 = scmp.eq.s32.totalorder %s53_s11, 0  ;;  %p6649_p13 = scmp.lt.s32.totalorder %s5100_s23, 8 }
  0x51   : > { %6707 = sst [smem:[#allocation45_spill]] %s6706_s19  ;;  %s533_s16 = sand.u32 1, %s5100_s23  }
  0x52   : > { %s535_s13 = sand.u32 1, %s5080_s18   ;;  %s3593_s20 = sshll.u32 %s5092_s21, 3 }
  0x53   : > { %s5348_s17 = scalar_select %p54_p9, %s5080_s18, %s56_s14  }
  0x54   : > { %s3592_s9 = sshll.u32 %s535_s13, 6  ;;  %s3594_s25 = sshll.u32 %s5096_s22, 5 }
  0x55   : > { %6708 = sst [smem:[#allocation46_spill]] %s5348_s17  ;;  %s537_s7 = scalar_lea.vmem [#allocation2], %s3592_s9 }
  0x56   : > { %s546_s6 = sshll.u32 %s537_s7, 4  ;;  %s543_s4 = sadd.s32 %s3594_s25, %s3593_s20  ;;  %s5352_s6 = int_to_ptr.vmem [resolvable:$true] %s546_s6 }
  0x57   : > { %s3595_s24 = sshll.u32 %s543_s4, 7  ;;  %p5358_p3 = pnand %p6649_p13, %p5315_p8 }
  0x58   : > { %s6710_s0 = sld [smem:[#allocation47_spill]]  ;;  %s5367_s7 = scalar_lea.sflag [#allocation3], %s533_s16 }
  0x59   : > { %p4578_p8 = pneg %p5358_p3 }
  0x5e   : > { %s5365_s14 = scalar_lea.hbm %s6710_s0, %s3595_s24  ;;  %s4581_s25 = scalar_lea.hbm %s6710_s0, 8192 }
  0x5f   : > { %s4576_s4 = scalar_lea.hbm %s5365_s14, 1024  ;;  %p4582_p9 = scmp.lt.u32.totalorder %s5365_s14, %s6710_s0 }
  0x60   : > { %p4577_p10 = scmp.ne.s32.totalorder %s5365_s14, %s4576_s4  ;;  %p4583_p13 = scmp.lt.u32.totalorder %s4581_s25, %s4576_s4 }
  0x61   : > { %p4585_p1 = scmp.lt.u32.totalorder %s4576_s4, %s5365_s14 }
  0x62   : > { %p4579_p11 = pnand %p4578_p8, %p4577_p10  ;;  %p4584_p6 = por %p4583_p13, %p4582_p9 }
  0x64   : > { %p4580_p12 = pneg %p4579_p11  ;;  %p4586_p4 = por %p4585_p1, %p4584_p6 }
  0x66   : > { %p4587_p2 = pnand %p4586_p4, %p4580_p12 }
  0x68   : > { %4590 = shalt.err (!%p4587_p2)
}
  0x69   : > { %s4591_s16 = scalar_lea.vmem %s5352_s6, 1024  ;;  %s5103_s13 = smov [#allocation2]  }
  0x6a   : > { %p4592_p10 = scmp.ne.s32.totalorder %s5352_s6, %s4591_s16  ;;  %s4596_s20 = sshll.u32 %s5103_s13, 4  ;;  %s4597_s20 = int_to_ptr.vmem [resolvable:$false] %s4596_s20 }
  0x6b   : > { %s4598_s11 = scalar_lea.vmem %s4597_s20, 2048  ;;  %p4599_p5 = scmp.lt.s32.totalorder %s5352_s6, %s4597_s20 }
  0x6c   : > { %p4594_p11 = pnand %p4592_p10, %p4578_p8  ;;  %p4600_p13 = scmp.lt.s32.totalorder %s4598_s11, %s4591_s16 }
  0x6e   : > { %p4595_p0 = pneg %p4594_p11  ;;  %p4601_p9 = por %p4600_p13, %p4599_p5 }
  0x70   : > { %p4602_p6 = pnand %p4601_p9, %p4595_p0 }
  0x72   : > { %4605 = shalt.err (!%p4602_p6)
}
  0x73   : > { %s6655_s4 = smov 128   ;;  %s6657_s9 = smov 8  }
  0x74   : > { %4132 = dma.hbm_to_vmem [thread:$0]  (!%p5358_p3), %s5365_s14, 1024, %s5352_s6, %s5367_s7, %s6655_s4, %s6655_s4, %s6657_s9  }
  0x75   : > { %s5106_s19 = smov [#allocation7]   ;;  %s5107_s24 = smov [#allocation8]  }
  0x76   : > { %s415_s25 = sshll.u32 %s5106_s19, 4  ;;  %s425_s27 = sshll.u32 %s5107_s24, 4  ;;  %s416_s25 = int_to_ptr.vmem [resolvable:$true] %s415_s25  ;;  %s5398_s27 = int_to_ptr.vmem [resolvable:$true] %s425_s27 }
  0x77   : > { %s6711_s2 = sld [smem:[#allocation49_spill]] }
  0x7d   : > { %s4606_s20 = scalar_lea.hbm %s6711_s2, 16 }
  0x7e   : > { %p4607_p5 = scmp.ne.s32.totalorder %s6711_s2, %s4606_s20  ;;  %p4613_p4 = scmp.lt.u32.totalorder %s4606_s20, %s6711_s2 }
  0x80   : > { %p4609_p0 = pnand %p4607_p5, %p5285_p7 }
  0x82   : > { %p4610_p2 = pneg %p4609_p0 }
  0x84   : > { %p4615_p1 = pnand %p4613_p4, %p4610_p2 }
  0x86   : > { %4618 = shalt.err (!%p4615_p1)
}
  0x87   : > { %s4619_s14 = scalar_lea.vmem %s416_s25, 16  ;;  %s4626_s19 = scalar_lea.vmem %s416_s25, 32 }
  0x88   : > { %p4620_p3 = scmp.ne.s32.totalorder %s416_s25, %s4619_s14  ;;  %p4627_p10 = scmp.lt.s32.totalorder %s416_s25, %s416_s25 }
  0x89   : > { %p4628_p11 = scmp.lt.s32.totalorder %s4626_s19, %s4619_s14 }
  0x8a   : > { %p4622_p8 = pnand %p4620_p3, %p5285_p7 }
  0x8b   : > { %p4629_p13 = por %p4628_p11, %p4627_p10 }
  0x8c   : > { %p4623_p12 = pneg %p4622_p8 }
  0x8e   : > { %p4630_p9 = pnand %p4629_p13, %p4623_p12 }
  0x90   : > { %4633 = shalt.err (!%p4630_p9)
}
  0x91   : > { %p6712_p6 = scmp.ne.s32.totalorder %s6695_s28, 0  ;;  %s6713_s3 = sld [smem:[#allocation50_spill]] }
  0x93   : > { %4101 = dma.hbm_to_vmem [thread:$0]  (!%p6712_p6), %s6711_s2, 16, %s416_s25, [#allocation6]  }
  0x97   : > { %s4634_s20 = scalar_lea.hbm %s6713_s3, 256 }
  0x98   : > { %p4635_p5 = scmp.ne.s32.totalorder %s6713_s3, %s4634_s20  ;;  %p4641_p4 = scmp.lt.u32.totalorder %s4634_s20, %s6713_s3 }
  0x9a   : > { %p4637_p0 = pnand %p4635_p5, %p5285_p7 }
  0x9c   : > { %p4638_p2 = pneg %p4637_p0 }
  0x9e   : > { %p4643_p1 = pnand %p4641_p4, %p4638_p2 }
  0xa0   : > { %4646 = shalt.err (!%p4643_p1)
}
  0xa1   : > { %s4647_s25 = scalar_lea.vmem %s5398_s27, 256  ;;  %p4655_p10 = scmp.lt.s32.totalorder %s5398_s27, %s5398_s27 }
  0xa2   : > { %p4648_p3 = scmp.ne.s32.totalorder %s5398_s27, %s4647_s25  ;;  %p4656_p11 = scmp.lt.s32.totalorder %s4647_s25, %s4647_s25 }
  0xa4   : > { %p4650_p8 = pnand %p4648_p3, %p5285_p7  ;;  %p4657_p13 = por %p4656_p11, %p4655_p10 }
  0xa6   : > { %p4651_p12 = pneg %p4650_p8 }
  0xa8   : > { %p4658_p9 = pnand %p4657_p13, %p4651_p12 }
  0xaa   : > { %4661 = shalt.err (!%p4658_p9)
}
  0xab   : > { %s6662_s19 = smov 64   ;;  %s6663_s0 = smov 4  }
  0xac   : > { %4104 = dma.hbm_to_vmem [thread:$0]  (!%p6712_p6), %s6713_s3, 256, %s5398_s27, [#allocation9], %s6662_s19, %s6662_s19, %s6663_s0  }
  0xad   : > { %s5110_s13 = smov [#allocation14]   ;;  %s5111_s11 = smov [#allocation17]  }
  0xae   : > { %s463_s20 = sshll.u32 %s5110_s13, 4  ;;  %s484_s5 = sshll.u32 %s5111_s11, 4  ;;  %s464_s20 = int_to_ptr.vmem [resolvable:$true] %s463_s20  ;;  %s5444_s5 = int_to_ptr.vmem [resolvable:$true] %s484_s5 }
  0xaf   : > { %s6714_s8 = sld [smem:[#allocation55_spill]] }
  0xb5   : > { %s4662_s25 = scalar_lea.hbm %s6714_s8, 16 }
  0xb6   : > { %p4663_p5 = scmp.ne.s32.totalorder %s6714_s8, %s4662_s25  ;;  %p4669_p4 = scmp.lt.u32.totalorder %s4662_s25, %s6714_s8 }
  0xb8   : > { %p4665_p0 = pnand %p4663_p5, %p5285_p7 }
  0xba   : > { %p4666_p2 = pneg %p4665_p0 }
  0xbc   : > { %p4671_p1 = pnand %p4669_p4, %p4666_p2 }
  0xbe   : > { %4674 = shalt.err (!%p4671_p1)
}
  0xbf   : > { %s4675_s16 = scalar_lea.vmem %s464_s20, 16  ;;  %s4682_s13 = scalar_lea.vmem %s464_s20, 32 }
  0xc0   : > { %p4676_p3 = scmp.ne.s32.totalorder %s464_s20, %s4675_s16  ;;  %p4683_p10 = scmp.lt.s32.totalorder %s464_s20, %s464_s20 }
  0xc1   : > { %p4684_p11 = scmp.lt.s32.totalorder %s4682_s13, %s4675_s16 }
  0xc2   : > { %p4678_p8 = pnand %p4676_p3, %p5285_p7 }
  0xc3   : > { %p4685_p13 = por %p4684_p11, %p4683_p10 }
  0xc4   : > { %p4679_p12 = pneg %p4678_p8 }
  0xc6   : > { %p4686_p9 = pnand %p4685_p13, %p4679_p12 }
  0xc8   : > { %4689 = shalt.err (!%p4686_p9)
}
  0xc9   : > { %4113 = dma.hbm_to_vmem [thread:$0]  (!%p6712_p6), %s6714_s8, 16, %s464_s20, [#allocation15]  }
  0xca   : > { %s6715_s10 = sld [smem:[#allocation57_spill]] }
  0xd0   : > { %s4690_s14 = scalar_lea.hbm %s6715_s10, 256 }
  0xd1   : > { %p4691_p5 = scmp.ne.s32.totalorder %s6715_s10, %s4690_s14  ;;  %p4697_p4 = scmp.lt.u32.totalorder %s4690_s14, %s6715_s10 }
  0xd3   : > { %p4693_p0 = pnand %p4691_p5, %p5285_p7 }
  0xd5   : > { %p4694_p2 = pneg %p4693_p0 }
  0xd7   : > { %p4699_p1 = pnand %p4697_p4, %p4694_p2 }
  0xd9   : > { %4702 = shalt.err (!%p4699_p1)
}
  0xda   : > { %s4703_s20 = scalar_lea.vmem %s5444_s5, 256  ;;  %p4711_p10 = scmp.lt.s32.totalorder %s5444_s5, %s5444_s5 }
  0xdb   : > { %p4704_p3 = scmp.ne.s32.totalorder %s5444_s5, %s4703_s20  ;;  %p4712_p11 = scmp.lt.s32.totalorder %s4703_s20, %s4703_s20 }
  0xdd   : > { %p4706_p8 = pnand %p4704_p3, %p5285_p7  ;;  %p4713_p13 = por %p4712_p11, %p4711_p10 }
  0xdf   : > { %p4707_p12 = pneg %p4706_p8 }
  0xe1   : > { %p4714_p9 = pnand %p4713_p13, %p4707_p12 }
  0xe3   : > { %4717 = shalt.err (!%p4714_p9)
}
  0xe4   : > { %4119 = dma.hbm_to_vmem [thread:$0]  (!%p6712_p6), %s6715_s10, 256, %s5444_s5, [#allocation18], %s6662_s19, %s6662_s19, %s6663_s0  }
  0xe5   : > { %s5112_s9 = smov [#allocation20]   ;;  %s6716_s12 = sld [smem:[#allocation59_spill]] }
  0xe6   : > { %s508_s11 = sshll.u32 %s5112_s9, 4  ;;  %s509_s11 = int_to_ptr.vmem [resolvable:$true] %s508_s11 }
  0xeb   : > { %s4718_s25 = scalar_lea.hbm %s6716_s12, 512 }
  0xec   : > { %p4719_p5 = scmp.ne.s32.totalorder %s6716_s12, %s4718_s25  ;;  %p4725_p4 = scmp.lt.u32.totalorder %s4718_s25, %s6716_s12 }
  0xee   : > { %p4721_p0 = pnand %p4719_p5, %p5285_p7 }
  0xf0   : > { %p4722_p2 = pneg %p4721_p0 }
  0xf2   : > { %p4727_p1 = pnand %p4725_p4, %p4722_p2 }
  0xf4   : > { %4730 = shalt.err (!%p4727_p1)
}
  0xf5   : > { %s4731_s5 = scalar_lea.vmem %s509_s11, 512  ;;  %p4739_p10 = scmp.lt.s32.totalorder %s509_s11, %s509_s11 }
  0xf6   : > { %p4732_p3 = scmp.ne.s32.totalorder %s509_s11, %s4731_s5  ;;  %p4740_p11 = scmp.lt.s32.totalorder %s4731_s5, %s4731_s5 }
  0xf8   : > { %p4734_p8 = pnand %p4732_p3, %p5285_p7  ;;  %p4741_p13 = por %p4740_p11, %p4739_p10 }
  0xfa   : > { %p4735_p12 = pneg %p4734_p8 }
  0xfc   : > { %p4742_p9 = pnand %p4741_p13, %p4735_p12 }
  0xfe   : > { %4745 = shalt.err (!%p4742_p9)
}
  0xff   : > { %s6717_s9 = sld [smem:[#allocation39_spill]]  ;;  %s145_s6 = sadd.s32 1, %s5068_s15 }
 0x100   : > { %4125 = dma.hbm_to_vmem [thread:$0]  (!%p6712_p6), %s6716_s12, 512, %s509_s11, [#allocation21], %s6662_s19, %s6662_s19, %s6663_s0  }
 0x101   : > { %p6718_p5 = scmp.eq.s32.totalorder %s5336_s1, 0  ;;  %p152_p0 = scmp.ne.s32.totalorder %s5068_s15, %s5064_s30 }
 0x102   : > { %p158_p2 = scmp.ne.s32.totalorder %s5064_s30, %s5060_s29  ;;  %s558_s25 = sand.u32 1, %s5068_s15  }
 0x103   : > { %s5515_s14 = scalar_select %p6718_p5, %s5068_s15, %s145_s6  }
 0x104   : > { %s6659_s24 = sshll.u32 %s5096_s22, 9  ;;  %p6719_p4 = scmp.eq.s32.totalorder %s5100_s23, 0 }
 0x105   : > { %p6720_p3 = scmp.eq.s32.totalorder %s6717_s9, 0  ;;  %s5531_s16 = sshll.u32 %s558_s25, 5 }
 0x106   : > { %p154_p1 = por %p152_p0, %p6719_p4  ;;  %s6722_s5 = sld [smem:[#allocation51_spill]] }
 0x107   : > { %p5527_p8 = por %p158_p2, %p6720_p3  ;;  %p6723_p12 = scmp.lt.s32.totalorder %s5100_s23, 8 }
 0x108   : > { %s560_s13 = scalar_lea.vmem [#allocation10], %s5531_s16 }
 0x109   : > { %s6721_s27 = scalar_select %p5527_p8, 1, 0 }
 0x10a   : > { %p5542_p10 = pnand %p6723_p12, %p154_p1  ;;  %s567_s4 = sshll.u32 %s560_s13, 4  ;;  %s5547_s4 = int_to_ptr.vmem [resolvable:$true] %s567_s4 }
 0x10c   : > { %s5538_s1 = scalar_lea.hbm %s6722_s5, %s6659_s24  ;;  %p6665_p13 = pneg %p5542_p10 }
 0x10d   : > { %s6724_s29 = scalar_select %p5542_p10, 1, 0 }
 0x10e   : > { %s4746_s9 = scalar_lea.hbm %s5538_s1, 512  ;;  %s4751_s20 = scalar_lea.hbm %s6722_s5, 1024 }
 0x10f   : > { %p4747_p11 = scmp.ne.s32.totalorder %s5538_s1, %s4746_s9  ;;  %p4752_p0 = scmp.lt.u32.totalorder %s5538_s1, %s6722_s5 }
 0x110   : > { %p4753_p2 = scmp.lt.u32.totalorder %s4751_s20, %s4746_s9  ;;  %p4755_p1 = scmp.lt.u32.totalorder %s4746_s9, %s5538_s1 }
 0x111   : > { %p4749_p9 = pnand %p6665_p13, %p4747_p11 }
 0x112   : > { %p4754_p4 = por %p4753_p2, %p4752_p0 }
 0x113   : > { %p4750_p5 = pneg %p4749_p9 }
 0x114   : > { %p4756_p3 = por %p4755_p1, %p4754_p4 }
 0x116   : > { %p4757_p12 = pnand %p4756_p3, %p4750_p5 }
 0x118   : > { %4760 = shalt.err (!%p4757_p12)
}
 0x119   : > { %s4761_s13 = scalar_lea.vmem %s5547_s4, 512  ;;  %s5113_s6 = smov [#allocation10]  }
 0x11a   : > { %p4762_p11 = scmp.ne.s32.totalorder %s5547_s4, %s4761_s13  ;;  %s4766_s25 = sshll.u32 %s5113_s6, 4  ;;  %s4767_s25 = int_to_ptr.vmem [resolvable:$false] %s4766_s25 }
 0x11b   : > { %s4768_s24 = scalar_lea.vmem %s4767_s25, 1024  ;;  %p4769_p6 = scmp.lt.s32.totalorder %s5547_s4, %s4767_s25 }
 0x11c   : > { %p4764_p9 = pnand %p4762_p11, %p6665_p13  ;;  %p4770_p0 = scmp.lt.s32.totalorder %s4768_s24, %s4761_s13 }
 0x11e   : > { %p4765_p8 = pneg %p4764_p9  ;;  %p4771_p2 = por %p4770_p0, %p4769_p6 }
 0x120   : > { %p4772_p4 = pnand %p4771_p2, %p4765_p8 }
 0x122   : > { %4775 = shalt.err (!%p4772_p4)
}
 0x123   : > { %s6725_s9 = smov 8   ;;  %s6726_s20 = smov 128  }
 0x124   : > { %4135 = dma.hbm_to_vmem [thread:$0]  (!%p5542_p10), %s5538_s1, 512, %s5547_s4, %s5367_s7, %s6726_s20, %s6726_s20, %s6725_s9  }
 0x125   : > { %s5114_s11 = smov [#allocation12]   ;;  %s5115_s6 = smov [#allocation13]  }
 0x126   : > { %s438_s19 = sshll.u32 %s5114_s11, 4  ;;  %s452_s0 = sshll.u32 %s5115_s6, 4  ;;  %s439_s19 = int_to_ptr.vmem [resolvable:$true] %s438_s19  ;;  %s453_s0 = int_to_ptr.vmem [resolvable:$true] %s452_s0 }
 0x127   : > { %s6727_s24 = sld [smem:[#allocation53_spill]] }
 0x12d   : > { %s4776_s2 = scalar_lea.hbm %s6727_s24, 256 }
 0x12e   : > { %p4777_p6 = scmp.ne.s32.totalorder %s6727_s24, %s4776_s2  ;;  %p4783_p1 = scmp.lt.u32.totalorder %s4776_s2, %s6727_s24 }
 0x130   : > { %p4779_p8 = pnand %p4777_p6, %p5285_p7 }
 0x132   : > { %p4780_p5 = pneg %p4779_p8 }
 0x134   : > { %p4785_p3 = pnand %p4783_p1, %p4780_p5 }
 0x136   : > { %4788 = shalt.err (!%p4785_p3)
}
 0x137   : > { %s4789_s1 = scalar_lea.vmem %s439_s19, 256  ;;  %p4797_p0 = scmp.lt.s32.totalorder %s439_s19, %s439_s19 }
 0x138   : > { %p4790_p12 = scmp.ne.s32.totalorder %s439_s19, %s4789_s1  ;;  %p4798_p2 = scmp.lt.s32.totalorder %s4789_s1, %s4789_s1 }
 0x13a   : > { %p4792_p11 = pnand %p4790_p12, %p5285_p7  ;;  %p4799_p4 = por %p4798_p2, %p4797_p0 }
 0x13c   : > { %p4793_p9 = pneg %p4792_p11 }
 0x13e   : > { %p4800_p13 = pnand %p4799_p4, %p4793_p9 }
 0x140   : > { %4803 = shalt.err (!%p4800_p13)
}
 0x141   : > { %p6728_p6 = scmp.ne.s32.totalorder %s6695_s28, 0  ;;  %s6729_s3 = smov 4  }
 0x142   : > { %s6730_s5 = smov 64   ;;  %s6731_s11 = sld [smem:[#allocation54_spill]] }
 0x143   : > { %4107 = dma.hbm_to_vmem [thread:$0]  (!%p6728_p6), %s6727_s24, 256, %s439_s19, [#allocation6], %s6730_s5, %s6730_s5, %s6729_s3  }
 0x148   : > { %s4804_s6 = scalar_lea.hbm %s6731_s11, 16 }
 0x149   : > { %p4805_p8 = scmp.ne.s32.totalorder %s6731_s11, %s4804_s6  ;;  %p4811_p1 = scmp.lt.u32.totalorder %s4804_s6, %s6731_s11 }
 0x14b   : > { %p4807_p13 = pnand %p4805_p8, %p5285_p7 }
 0x14d   : > { %p4808_p5 = pneg %p4807_p13 }
 0x14f   : > { %p4813_p3 = pnand %p4811_p1, %p4808_p5 }
 0x151   : > { %4816 = shalt.err (!%p4813_p3)
}
 0x152   : > { %s4817_s8 = scalar_lea.vmem %s453_s0, 16  ;;  %s4824_s19 = scalar_lea.vmem %s453_s0, 32 }
 0x153   : > { %p4818_p12 = scmp.ne.s32.totalorder %s453_s0, %s4817_s8  ;;  %p4825_p0 = scmp.lt.s32.totalorder %s453_s0, %s453_s0 }
 0x154   : > { %p4826_p2 = scmp.lt.s32.totalorder %s4824_s19, %s4817_s8 }
 0x155   : > { %p4820_p11 = pnand %p4818_p12, %p5285_p7 }
 0x156   : > { %p4827_p4 = por %p4826_p2, %p4825_p0 }
 0x157   : > { %p4821_p9 = pneg %p4820_p11 }
 0x159   : > { %p4828_p10 = pnand %p4827_p4, %p4821_p9 }
 0x15b   : > { %4831 = shalt.err (!%p4828_p10)
}
 0x15c   : > { %4110 = dma.hbm_to_vmem [thread:$0]  (!%p6728_p6), %s6731_s11, 16, %s453_s0, [#allocation9]  }
 0x15d   : > { %s5116_s12 = smov [#allocation16]   ;;  %s5117_s10 = smov [#allocation19]  }
 0x15e   : > { %s474_s2 = sshll.u32 %s5116_s12, 4  ;;  %s498_s4 = sshll.u32 %s5117_s10, 4  ;;  %s475_s2 = int_to_ptr.vmem [resolvable:$true] %s474_s2  ;;  %s499_s4 = int_to_ptr.vmem [resolvable:$true] %s498_s4 }
 0x15f   : > { %s6732_s13 = sld [smem:[#allocation56_spill]] }
 0x165   : > { %s4832_s1 = scalar_lea.hbm %s6732_s13, 16 }
 0x166   : > { %p4833_p10 = scmp.ne.s32.totalorder %s6732_s13, %s4832_s1  ;;  %p4839_p5 = scmp.lt.u32.totalorder %s4832_s1, %s6732_s13 }
 0x168   : > { %p4835_p8 = pnand %p4833_p10, %p5285_p7 }
 0x16a   : > { %p4836_p13 = pneg %p4835_p8 }
 0x16c   : > { %p4841_p1 = pnand %p4839_p5, %p4836_p13 }
 0x16e   : > { %4844 = shalt.err (!%p4841_p1)
}
 0x16f   : > { %s4845_s0 = scalar_lea.vmem %s475_s2, 16  ;;  %s4852_s5 = scalar_lea.vmem %s475_s2, 32 }
 0x170   : > { %p4846_p3 = scmp.ne.s32.totalorder %s475_s2, %s4845_s0  ;;  %p4853_p9 = scmp.lt.s32.totalorder %s475_s2, %s475_s2 }
 0x171   : > { %p4854_p0 = scmp.lt.s32.totalorder %s4852_s5, %s4845_s0 }
 0x172   : > { %p4848_p12 = pnand %p4846_p3, %p5285_p7 }
 0x173   : > { %p4855_p2 = por %p4854_p0, %p4853_p9 }
 0x174   : > { %p4849_p11 = pneg %p4848_p12 }
 0x176   : > { %p4856_p4 = pnand %p4855_p2, %p4849_p11 }
 0x178   : > { %4859 = shalt.err (!%p4856_p4)
}
 0x179   : > { %4116 = dma.hbm_to_vmem [thread:$0]  (!%p6728_p6), %s6732_s13, 16, %s475_s2, [#allocation15]  }
 0x17a   : > { %s6733_s25 = sld [smem:[#allocation58_spill]] }
 0x180   : > { %s4860_s1 = scalar_lea.hbm %s6733_s25, 16 }
 0x181   : > { %p4861_p10 = scmp.ne.s32.totalorder %s6733_s25, %s4860_s1  ;;  %p4867_p5 = scmp.lt.u32.totalorder %s4860_s1, %s6733_s25 }
 0x183   : > { %p4863_p8 = pnand %p4861_p10, %p5285_p7 }
 0x185   : > { %p4864_p13 = pneg %p4863_p8 }
 0x187   : > { %p4869_p1 = pnand %p4867_p5, %p4864_p13 }
 0x189   : > { %4872 = shalt.err (!%p4869_p1)
}
 0x18a   : > { %s4873_s5 = scalar_lea.vmem %s499_s4, 16  ;;  %s4880_s2 = scalar_lea.vmem %s499_s4, 32 }
 0x18b   : > { %p4874_p3 = scmp.ne.s32.totalorder %s499_s4, %s4873_s5  ;;  %p4881_p9 = scmp.lt.s32.totalorder %s499_s4, %s499_s4 }
 0x18c   : > { %p4882_p0 = scmp.lt.s32.totalorder %s4880_s2, %s4873_s5 }
 0x18d   : > { %p4876_p12 = pnand %p4874_p3, %p5285_p7 }
 0x18e   : > { %p4883_p2 = por %p4882_p0, %p4881_p9 }
 0x18f   : > { %p4877_p11 = pneg %p4876_p12 }
 0x191   : > { %p4884_p4 = pnand %p4883_p2, %p4877_p11 }
 0x193   : > { %4887 = shalt.err (!%p4884_p4)
}
 0x194   : > { %4122 = dma.hbm_to_vmem [thread:$0]  (!%p6728_p6), %s6733_s25, 16, %s499_s4, [#allocation18]  }
 0x195   : > { %s5118_s24 = smov [#allocation22]   ;;  %s6734_s1 = sshll.u32 %s5096_s22, 9 }
 0x196   : > { %s522_s6 = sshll.u32 %s5118_s24, 4  ;;  %s6735_s3 = sld [smem:[#allocation52_spill]]  ;;  %s523_s6 = int_to_ptr.vmem [resolvable:$true] %s522_s6 }
 0x197   : > { %s6736_s11 = sld [smem:[#allocation60_spill]] }
 0x19c   : > { %s5658_s0 = scalar_lea.hbm %s6735_s3, %s6734_s1 }
 0x19d   : > { %s4888_s13 = scalar_lea.hbm %s6736_s11, 16 }
 0x19e   : > { %p4889_p10 = scmp.ne.s32.totalorder %s6736_s11, %s4888_s13  ;;  %p4895_p5 = scmp.lt.u32.totalorder %s4888_s13, %s6736_s11 }
 0x1a0   : > { %p4891_p8 = pnand %p4889_p10, %p5285_p7 }
 0x1a2   : > { %p4892_p13 = pneg %p4891_p8 }
 0x1a4   : > { %p4897_p1 = pnand %p4895_p5, %p4892_p13 }
 0x1a6   : > { %4900 = shalt.err (!%p4897_p1)
}
 0x1a7   : > { %s4901_s10 = scalar_lea.vmem %s523_s6, 16  ;;  %s4908_s24 = scalar_lea.vmem %s523_s6, 32 }
 0x1a8   : > { %p4902_p3 = scmp.ne.s32.totalorder %s523_s6, %s4901_s10  ;;  %p4909_p9 = scmp.lt.s32.totalorder %s523_s6, %s523_s6 }
 0x1a9   : > { %p4910_p0 = scmp.lt.s32.totalorder %s4908_s24, %s4901_s10 }
 0x1aa   : > { %p4904_p12 = pnand %p4902_p3, %p5285_p7 }
 0x1ab   : > { %p4911_p2 = por %p4910_p0, %p4909_p9 }
 0x1ac   : > { %p4905_p11 = pneg %p4904_p12 }
 0x1ae   : > { %p4912_p4 = pnand %p4911_p2, %p4905_p11 }
 0x1b0   : > { %4915 = shalt.err (!%p4912_p4)
}
 0x1b1   : > { %4128 = dma.hbm_to_vmem [thread:$0]  (!%p6728_p6), %s6736_s11, 16, %s523_s6, [#allocation21]  }
 0x1b2   : > { %s581_s26 = scalar_lea.vmem [#allocation11], %s5531_s16  ;;  %s4916_s1 = scalar_lea.hbm %s5658_s0, 512 }
 0x1b3   : > { %s588_s13 = sshll.u32 %s581_s26, 4  ;;  %p4917_p7 = scmp.ne.s32.totalorder %s5658_s0, %s4916_s1  ;;  %s5679_s13 = int_to_ptr.vmem [resolvable:$true] %s588_s13 }
 0x1b4   : > { %p6737_p10 = scmp.ne.s32.totalorder %s6724_s29, 0  ;;  %s4921_s19 = scalar_lea.hbm %s6735_s3, 1024 }
 0x1b5   : > { %p4922_p1 = scmp.lt.u32.totalorder %s5658_s0, %s6735_s3  ;;  %p4923_p3 = scmp.lt.u32.totalorder %s4921_s19, %s4916_s1 }
 0x1b6   : > { %p6738_p8 = pneg %p6737_p10  ;;  %p4925_p12 = scmp.lt.u32.totalorder %s4916_s1, %s5658_s0 }
 0x1b7   : > { %p4924_p6 = por %p4923_p3, %p4922_p1 }
 0x1b8   : > { %p4919_p13 = pnand %p4917_p7, %p6738_p8 }
 0x1b9   : > { %p4926_p11 = por %p4925_p12, %p4924_p6 }
 0x1ba   : > { %p4920_p5 = pneg %p4919_p13 }
 0x1bc   : > { %p4927_p9 = pnand %p4926_p11, %p4920_p5 }
 0x1be   : > { %4930 = shalt.err (!%p4927_p9)
}
 0x1bf   : > { %s4931_s16 = scalar_lea.vmem %s5679_s13, 512  ;;  %p6739_p2 = pmov %p6738_p8 }
 0x1c0   : > { %p4932_p0 = scmp.ne.s32.totalorder %s5679_s13, %s4931_s16  ;;  %s5119_s6 = smov [#allocation11]  }
 0x1c1   : > { %s4936_s4 = sshll.u32 %s5119_s6, 4  ;;  %s4937_s4 = int_to_ptr.vmem [resolvable:$false] %s4936_s4 }
 0x1c2   : > { %p4934_p4 = pnand %p4932_p0, %p6739_p2  ;;  %s4938_s12 = scalar_lea.vmem %s4937_s4, 1024 }
 0x1c3   : > { %p4939_p8 = scmp.lt.s32.totalorder %s5679_s13, %s4937_s4  ;;  %p4940_p13 = scmp.lt.s32.totalorder %s4938_s12, %s4931_s16 }
 0x1c4   : > { %p4935_p7 = pneg %p4934_p4 }
 0x1c5   : > { %p4941_p1 = por %p4940_p13, %p4939_p8 }
 0x1c7   : > { %p4942_p3 = pnand %p4941_p1, %p4935_p7 }
 0x1c9   : > { %4945 = shalt.err (!%p4942_p3)
}
 0x1ca   : > { %4138 = dma.hbm_to_vmem [thread:$0]  (!%p6737_p10), %s5658_s0, 512, %s5679_s13, %s5367_s7, %s6726_s20, %s6726_s20, %s6725_s9  }
 0x1cb   : > { %s6740_s10 = sld [smem:[#allocation40_spill]] }
 0x1d1   : > { %p6741_p5 = scmp.ne.s32.totalorder %s6740_s10, 0 }
 0x1d2   : > { %s6742_s24 = sld [smem:[#allocation39_spill]] (!%p6741_p5)  ;;  %s6744_s21 = sld [smem:[#allocation43_spill]] (!%p6741_p5) }
 0x1d3   : > { %600 = sbr.rel (%p6741_p5) target bundleno = 3100 (0xc1c), region = 76  ;;  %s6743_s17 = sld [smem:[#allocation35_spill]] (!%p6741_p5) }
 0x1d8   : > { %s602_s26 = sand.u32 (!%p6741_p5), 1, %s6742_s24   ;;  %p6745_p6 = scmp.ne.s32.totalorder (!%p6741_p5), %s6744_s21, 0 }
 0x1d9   : > { %s604_s1 = sand.u32 (!%p6741_p5), 1, %s6743_s17   ;;  %s603_s29 = scalar_lea.sflag (!%p6741_p5), [#allocation3], %s602_s26 }
 0x1da   : > { %s5714_s28 = sshll.u32 %s604_s1, 6 }
 0x1db   : > { %s5717_s8 = scalar_lea.vmem [#allocation2], %s5714_s28 }
 0x1dc   : > { %5019 = dma.done.wait (%p6745_p6), %s603_s29, 1024  }
 0x1dd   : > { %5021 = vsyncadd (%p6745_p6), %s603_s29, 4294966272  ;;  %p6746_p10 = scmp.eq.s32.totalorder %s6742_s24, 0 }
 0x1df   : > { %5023 = dma.done.wait (%p6746_p10), [#allocation6], 32   ;;  %p6747_p12 = pmov %p6746_p10 }
 0x1e0   : > { %p6748_p11 = pmov %p6746_p10 }
 0x1e1   : > { %5025 = vsyncadd (%p6747_p12), [#allocation6], 4294967264 }
 0x1e2   : > { %5027 = dma.done.wait (%p6748_p11), [#allocation9], 256   ;;  %p6749_p9 = pmov %p6746_p10 }
 0x1e3   : > { %s625_s7 = sand.u32 1, %s5064_s30   ;;  %p6750_p0 = scmp.ne.s32.totalorder %s6721_s27, 0 }
 0x1e4   : > { %5029 = vsyncadd (%p6749_p9), [#allocation9], 4294967040  ;;  %s3607_s9 = sshll.u32 %s625_s7, 5 }
 0x1e5   : > { %s5732_s20 = scalar_lea.vmem [#allocation10], %s3607_s9 }
 0x1e6   : > { %5031 = dma.done.wait (%p6750_p0), %s603_s29, 1024  }
 0x1e7   : > { %5033 = vsyncadd (%p6750_p0), %s603_s29, 4294966272  ;;  %s5738_s0 = scalar_lea.vmem [#allocation11], %s3607_s9  ;;  %p6751_p2 = pmov %p6749_p9 }
 0x1e9   : > { %5035 = dma.done.wait (%p6751_p2), [#allocation6], 256   ;;  %p6752_p4 = pmov %p6751_p2 }
 0x1ea   : > { %p6753_p7 = pmov %p6751_p2 }
 0x1eb   : > { %5037 = vsyncadd (%p6752_p4), [#allocation6], 4294967040 }
 0x1ec   : > { %5039 = dma.done.wait (%p6753_p7), [#allocation9], 16   ;;  %p6754_p8 = pmov %p6751_p2 }
 0x1ed   : > { %p6755_p13 = pmov %p6751_p2 }
 0x1ee   : > { %5041 = vsyncadd (%p6754_p8), [#allocation9], 4294967280 }
 0x1ef   : > { %5043 = dma.done.wait (%p6755_p13), [#allocation15], 32   ;;  %p6756_p1 = pmov %p6751_p2 }
 0x1f1   : > { %5045 = vsyncadd (%p6756_p1), [#allocation15], 4294967264  ;;  %p6757_p3 = pmov %p6756_p1 }
 0x1f2   : > { %p6758_p5 = pmov %p6756_p1 }
 0x1f3   : > { %5047 = dma.done.wait (%p6757_p3), [#allocation18], 272  }
 0x1f4   : > { %5049 = vsyncadd (%p6758_p5), [#allocation18], 4294967024  ;;  %p6759_p6 = pmov %p6756_p1 }
 0x1f5   : > { %p6760_p10 = pmov %p6756_p1 }
 0x1f6   : > { %5051 = dma.done.wait (%p6759_p6), [#allocation21], 528  }
 0x1f7   : > { %5053 = vsyncadd (%p6760_p10), [#allocation21], 4294966768  ;;  %vm736_vm0 = vcmask 261120   ;;  %v726_v0 = vld [vmem:[%s5717_s8] sm:$0xff]  ;;  %v728_v1 = vld [vmem:[%s5717_s8 + $0x10] sm:$0xff]  ;;  %vm968_vm1 = vcmask 64512  }
 0x1f8   : > { %v727_v2 = vld [vmem:[%s5717_s8 + $0x8] sm:$0xff]  ;;  %v737_v3 = vsel %vm736_vm0, %v726_v0, 0.0  ;;  %v743_v4 = vsel %vm736_vm0, %v728_v1, 0.0  ;;  %v729_v5 = vld [vmem:[%s5717_s8 + $0x18] sm:$0xff]  ;;  %v730_v6 = vld [vmem:[%s5717_s8 + $0x20] sm:$0xff]  ;;  %s5120_s27 = smov 120  }
 0x1f9   : > { %v731_v7 = vld [vmem:[%s5717_s8 + $0x28] sm:$0xff]  ;;  %738 = vadd.xlane.f32.xlu0 %v737_v3  ;;  %744 = vadd.xlane.f32.xlu1 %v743_v4  ;;  %v740_v8 = vsel %vm736_vm0, %v727_v2, 0.0  ;;  %v746_v9 = vsel %vm736_vm0, %v729_v5, 0.0  ;;  %v749_v10 = vsel %vm736_vm0, %v730_v6, 0.0  ;;  %v732_v12 = vld [vmem:[%s5717_s8 + $0x30] sm:$0xff]  ;;  %v733_v13 = vld [vmem:[%s5717_s8 + $0x38] sm:$0xff] }
 0x1fa   : > { %v752_v11 = vsel %vm736_vm0, %v731_v7, 0.0  ;;  %v755_v14 = vsel %vm736_vm0, %v732_v12, 0.0  ;;  %v758_v15 = vsel %vm736_vm0, %v733_v13, 0.0  ;;  %v4338_v56 = vld [vmem:[#allocation8] sm:$0xff]   ;;  %v4339_v57 = vld [vmem:[#allocation8 + $0x8] sm:$0xff]   ;;  %s5121_s13 = smov 112  }
 0x1fb   : > { %3843 = vmatprep.subr.bf16.mxu0 %v4338_v56  ;;  %s5122_s19 = smov 104   ;;  %s5123_s5 = smov 8   ;;  %vm2500_vm2 = vcmask 130048   ;;  %vm2509_vm3 = vcmask 195584  }
 0x1fc   : > { %3844 = vmatpush3.bf16.msra.mxu0 %v4338_v56  ;;  %s5124_s2 = smov 16   ;;  %s5125_s16 = smov 24  }
 0x1fd   : > { %741 = vadd.xlane.f32.xlu0 %v740_v8  ;;  %747 = vadd.xlane.f32.xlu1 %v746_v9  ;;  %s5126_s6 = smov 96   ;;  %s6761_s4 = sld [smem:[#allocation36_spill]] }
 0x1fe   : > { %3845 = vmatprep.subr.bf16.mxu0 %v4339_v57  ;;  %s6762_s12 = sld [smem:[#allocation37_spill]]  ;;  %s6515_s10 = scalar_lea.vmem [#allocation23], %s5714_s28 }
 0x1ff   : > { %s3343_s28 = sshll.u32 %s6515_s10, 4  ;;  %s6534_s28 = int_to_ptr.vmem [resolvable:$true] %s3343_s28 }
 0x200   : > { %3846 = vmatpush3.bf16.msra.mxu0 %v4339_v57  ;;  %v967_v57 = vld [vmem:[%s5732_s20] sm:$0xff] }
 0x201   : > { %750 = vadd.xlane.f32.xlu0 %v749_v10  ;;  %753 = vadd.xlane.f32.xlu1 %v752_v11 }
 0x202   : > { %3855 = vmatprep.subr.mxu1 %v967_v57 }
 0x203   : > { %3856 = vmatpush3.msra.mxu1 %v967_v57  ;;  %s3728_s24 = sshll.u32 %s6761_s4, 3 }
 0x204   : > { %s3729_s21 = sshll.u32 %s6762_s12, 5 }
 0x205   : > { %756 = vadd.xlane.f32.xlu0 %v755_v14  ;;  %759 = vadd.xlane.f32.xlu1 %v758_v15  ;;  %s3340_s26 = sadd.s32 %s3729_s21, %s3728_s24 }
 0x206   : > { %s3730_s29 = sshll.u32 %s3340_s26, 7 }
 0x286   : > { %v739_v16 = vpop.xlane.xlu0 %738  ;;  %v745_v17 = vpop.xlane.xlu1 %744 }
 0x287   : > { %v762_v18 = vmul.f32 0.03125, %v739_v16  ;;  %v764_v19 = vmul.f32 0.03125, %v745_v17 }
 0x289   : > { %v5776_v20 = vsub.f32 %v726_v0, %v762_v18  ;;  %v5778_v21 = vsub.f32 %v728_v1, %v764_v19  ;;  %v3618_v19 = vld [vmem:[#allocation5] ss:$0 sm:$0xff] }
 0x28a   : > { %v742_v22 = vpop.xlane.xlu0 %741  ;;  %v748_v23 = vpop.xlane.xlu1 %747 }
 0x28b   : > { %v763_v24 = vmul.f32 0.03125, %v742_v22  ;;  %v765_v25 = vmul.f32 0.03125, %v748_v23  ;;  %v778_v26 = vmul.f32 %v5776_v20, %v5776_v20  ;;  %v780_v27 = vmul.f32 %v5778_v21, %v5778_v21 }
 0x28d   : > { %v5784_v28 = vsub.f32 %v727_v2, %v763_v24  ;;  %v5786_v29 = vsub.f32 %v729_v5, %v765_v25  ;;  %v786_v30 = vsel %vm736_vm0, %v778_v26, 0.0  ;;  %v792_v33 = vsel %vm736_vm0, %v780_v27, 0.0  ;;  %v3619_v27 = vld [vmem:[#allocation7] ss:$0 sm:$0xff] }
 0x28e   : > { %787 = vadd.xlane.f32.xlu0 %v786_v30  ;;  %v751_v31 = vpop.xlane.xlu0 %750  ;;  %v754_v32 = vpop.xlane.xlu1 %753 }
 0x28f   : > { %v766_v34 = vmul.f32 0.03125, %v751_v31  ;;  %v767_v35 = vmul.f32 0.03125, %v754_v32  ;;  %v779_v36 = vmul.f32 %v5784_v28, %v5784_v28  ;;  %v781_v37 = vmul.f32 %v5786_v29, %v5786_v29 }
 0x291   : > { %v5794_v38 = vsub.f32 %v730_v6, %v766_v34  ;;  %v5796_v39 = vsub.f32 %v731_v7, %v767_v35  ;;  %v789_v40 = vsel %vm736_vm0, %v779_v36, 0.0  ;;  %v795_v43 = vsel %vm736_vm0, %v781_v37, 0.0 }
 0x292   : > { %793 = vadd.xlane.f32.xlu0 %v792_v33  ;;  %790 = vadd.xlane.f32.xlu1 %v789_v40  ;;  %v757_v41 = vpop.xlane.xlu0 %756  ;;  %v760_v42 = vpop.xlane.xlu1 %759 }
 0x293   : > { %v768_v44 = vmul.f32 0.03125, %v757_v41  ;;  %v769_v45 = vmul.f32 0.03125, %v760_v42  ;;  %v782_v46 = vmul.f32 %v5794_v38, %v5794_v38  ;;  %v783_v47 = vmul.f32 %v5796_v39, %v5796_v39 }
 0x295   : > { %v5804_v48 = vsub.f32 %v732_v12, %v768_v44  ;;  %v5806_v49 = vsub.f32 %v733_v13, %v769_v45  ;;  %v798_v50 = vsel %vm736_vm0, %v782_v46, 0.0  ;;  %v801_v51 = vsel %vm736_vm0, %v783_v47, 0.0 }
 0x296   : > { %796 = vadd.xlane.f32.xlu1 %v795_v43  ;;  %799 = vadd.xlane.f32.xlu0 %v798_v50 }
 0x297   : > { %v784_v52 = vmul.f32 %v5804_v48, %v5804_v48  ;;  %v785_v53 = vmul.f32 %v5806_v49, %v5806_v49 }
 0x299   : > { %v804_v54 = vsel %vm736_vm0, %v784_v52, 0.0  ;;  %v807_v55 = vsel %vm736_vm0, %v785_v53, 0.0 }
 0x29a   : > { %802 = vadd.xlane.f32.xlu1 %v801_v51  ;;  %805 = vadd.xlane.f32.xlu0 %v804_v54 }
 0x29e   : > { %808 = vadd.xlane.f32.xlu1 %v807_v55 }
 0x31b   : > { %v788_v58 = vpop.xlane.xlu0 %787 }
 0x31c   : > { %v810_v59 = vmul.f32 0.03125, %v788_v58  ;;  %v1319_v58 = vld [vmem:[%s5732_s20 + $0x8] sm:$0xff] }
 0x31d   : > { %3883 = vmatprep.subr.mxu0 %v1319_v58 }
 0x31e   : > { %v818_v60 = vadd.f32 1e-05, %v810_v59  ;;  %v1678_v59 = vld [vmem:[%s5732_s20 + $0x10] sm:$0xff] }
 0x31f   : > { %v791_v61 = vpop.xlane.xlu1 %790  ;;  %v794_v62 = vpop.xlane.xlu0 %793 }
 0x320   : > { %4348 = vrsqrt.f32 %v818_v60  ;;  %v811_v63 = vmul.f32 0.03125, %v791_v61  ;;  %v812_v0 = vmul.f32 0.03125, %v794_v62 }
 0x322   : > { %v819_v1 = vadd.f32 1e-05, %v811_v63  ;;  %v820_v2 = vadd.f32 1e-05, %v812_v0 }
 0x323   : > { %v797_v3 = vpop.xlane.xlu1 %796  ;;  %v800_v4 = vpop.xlane.xlu0 %799 }
 0x324   : > { %4350 = vrsqrt.f32 %v819_v1  ;;  %v813_v5 = vmul.f32 0.03125, %v797_v3  ;;  %v814_v6 = vmul.f32 0.03125, %v800_v4 }
 0x325   : > { %4352 = vrsqrt.f32 %v820_v2 }
 0x326   : > { %v821_v7 = vadd.f32 1e-05, %v813_v5  ;;  %v822_v8 = vadd.f32 1e-05, %v814_v6  ;;  %v2037_v6 = vld [vmem:[%s5732_s20 + $0x18] sm:$0xff]  ;;  %s6764_s20 = sld [smem:[#allocation61_spill]] }
 0x327   : > { %v803_v9 = vpop.xlane.xlu1 %802  ;;  %v806_v10 = vpop.xlane.xlu0 %805 }
 0x328   : > { %4354 = vrsqrt.f32 %v821_v7  ;;  %v815_v11 = vmul.f32 0.03125, %v803_v9  ;;  %v816_v12 = vmul.f32 0.03125, %v806_v10 }
 0x329   : > { %4356 = vrsqrt.f32 %v822_v8 }
 0x32a   : > { %v4349_v13 = vpop.eup %4348  ;;  %v823_v14 = vadd.f32 1e-05, %v815_v11  ;;  %v824_v15 = vadd.f32 1e-05, %v816_v12 }
 0x32b   : > { %v809_v16 = vpop.xlane.xlu1 %808  ;;  %v834_v17 = vmul.f32 %v4349_v13, %v5776_v20 }
 0x32c   : > { %4358 = vrsqrt.f32 %v823_v14  ;;  %v817_v18 = vmul.f32 0.03125, %v809_v16 }
 0x32d   : > { %4360 = vrsqrt.f32 %v824_v15  ;;  %v848_v26 = vmul.f32 %v3618_v19, %v834_v17 }
 0x32e   : > { %v4351_v22 = vpop.eup %4350  ;;  %v825_v23 = vadd.f32 1e-05, %v817_v18 }
 0x32f   : > { %v4353_v24 = vpop.eup %4352  ;;  %v835_v25 = vmul.f32 %v4351_v22, %v5784_v28  ;;  %v862_v34 = vadd.f32 %v3619_v27, %v848_v26 }
 0x330   : > { %4362 = vrsqrt.f32 %v825_v23  ;;  %v836_v30 = vmul.f32 %v4353_v24, %v5778_v21 }
 0x331   : > { %v849_v31 = vmul.f32 %v3618_v19, %v835_v25 }
 0x332   : > { %v4355_v32 = vpop.eup %4354  ;;  %v850_v36 = vmul.f32 %v3618_v19, %v836_v30 }
 0x333   : > { %v4357_v33 = vpop.eup %4356  ;;  %v863_v35 = vadd.f32 %v3619_v27, %v849_v31  ;;  %v837_v20 = vmul.f32 %v4355_v32, %v5786_v29 }
 0x334   : > { %v838_v37 = vmul.f32 %v4357_v33, %v5794_v38  ;;  %v864_v28 = vadd.f32 %v3619_v27, %v850_v36 }
 0x335   : > { %v870_v40 = vpack.c.bf16 %v863_v35, %v862_v34  ;;  %v851_v41 = vmul.f32 %v3618_v19, %v837_v20 }
 0x336   : > { %v4359_v42 = vpop.eup %4358  ;;  %v852_v45 = vmul.f32 %v3618_v19, %v838_v37 }
 0x337   : > { %v4361_v43 = vpop.eup %4360  ;;  %3847 = vmatprep.mubr.msk.bf16.mxu0 %vm736_vm0, %v870_v40  ;;  %v865_v44 = vadd.f32 %v3619_v27, %v851_v41  ;;  %v839_v21 = vmul.f32 %v4359_v42, %v5796_v39 }
 0x338   : > { %v840_v46 = vmul.f32 %v4361_v43, %v5804_v48  ;;  %v866_v38 = vadd.f32 %v3619_v27, %v852_v45 }
 0x339   : > { %v871_v47 = vpack.c.bf16 %v865_v44, %v864_v28  ;;  %v853_v50 = vmul.f32 %v3618_v19, %v839_v21 }
 0x33a   : > { %v4363_v29 = vpop.eup %4362  ;;  %v854_v53 = vmul.f32 %v3618_v19, %v840_v46 }
 0x33b   : > { %3848 = vmatmul.mubr.msk.bf16.vlgmr.msra.gmra.mrb[0].mxu0 %vm736_vm0, %v871_v47  ;;  %v867_v51 = vadd.f32 %v3619_v27, %v853_v50  ;;  %v841_v52 = vmul.f32 %v4363_v29, %v5806_v49 }
 0x33c   : > { %v868_v39 = vadd.f32 %v3619_v27, %v854_v53  ;;  %3884 = vmatpush3.msra.mxu0 %v1319_v58 }
 0x33d   : > { %v872_v54 = vpack.c.bf16 %v867_v51, %v866_v38  ;;  %v855_v55 = vmul.f32 %v3618_v19, %v841_v52  ;;  %3911 = vmatprep.subr.mxu0 %v1678_v59 }
 0x33f   : > { %3851 = vmatprep.mubr.msk.bf16.mxu0 %vm736_vm0, %v872_v54  ;;  %v869_v56 = vadd.f32 %v3619_v27, %v855_v55 }
 0x341   : > { %v873_v48 = vpack.c.bf16 %v869_v56, %v868_v39 }
 0x343   : > { %3852 = vmatmul.mubr.msk.bf16.gmra.mrb[4].mxu0 %vm736_vm0, %v873_v48 }
 0x40e   : > { %v3849_v49 = vpop.f32.mrb[0].mxu0 }
 0x40f   : > { %1324 = vrot.lane.b32.xlu1 %v3849_v49, %s5120_s27  ;;  %v936_v60 = vpop.f32.mrb[1].mxu0 }
 0x410   : > { %1320 = vrot.lane.b32.xlu0 %v936_v60, %s5120_s27  ;;  %v3850_v61 = vpop.f32.mrb[2].mxu0  ;;  %3857 = vmatprep.mubr.msk.f32.mxu1 %vm968_vm1, %v936_v60 }
 0x411   : > { %v939_v62 = vpop.f32.mrb[3].mxu0 }
 0x412   : > { %3858 = vmatmul.mubr.msk.f32.vlgmr.msra.gmra.mrb[0].mxu1 %vm968_vm1, %v939_v62 }
 0x413   : > { %1322 = vrot.lane.b32.xlu1 %v939_v62, %s5120_s27  ;;  %3860 = vmatprep.mubr.msk.f32.mxu1 %vm968_vm1, %v3849_v49 }
 0x416   : > { %v3853_v63 = vpop.f32.mrb[4].mxu0  ;;  %3861 = vmatmul.mubr.msk.f32.gmra.mrb[2].mxu1 %vm968_vm1, %v3850_v61 }
 0x417   : > { %1326 = vrot.lane.b32.xlu1 %v3850_v61, %s5120_s27  ;;  %v952_v0 = vpop.f32.mrb[5].mxu0 }
 0x418   : > { %1328 = vrot.lane.b32.xlu0 %v952_v0, %s5120_s27  ;;  %v3854_v1 = vpop.f32.mrb[6].mxu0  ;;  %3863 = vmatprep.mubr.msk.f32.mxu1 %vm968_vm1, %v952_v0 }
 0x419   : > { %v955_v2 = vpop.f32.mrb[7].mxu0 }
 0x41a   : > { %3864 = vmatmul.mubr.msk.f32.gmra.mrb[4].mxu1 %vm968_vm1, %v955_v2 }
 0x41b   : > { %1330 = vrot.lane.b32.xlu1 %v955_v2, %s5120_s27  ;;  %3866 = vmatprep.mubr.msk.f32.mxu1 %vm968_vm1, %v3853_v63 }
 0x41c   : > { %1332 = vrot.lane.b32.xlu0 %v3853_v63, %s5120_s27 }
 0x41e   : > { %3867 = vmatmul.mubr.msk.f32.gmra.mrb[6].mxu1 %vm968_vm1, %v3854_v1 }
 0x41f   : > { %1334 = vrot.lane.b32.xlu1 %v3854_v1, %s5120_s27  ;;  %s6541_s27 = scalar_lea.hbm %s6764_s20, %s3730_s29 }
 0x420   : > { %1679 = vrot.lane.b32.xlu0 %v936_v60, %s5121_s13 }
 0x423   : > { %1681 = vrot.lane.b32.xlu1 %v939_v62, %s5121_s13 }
 0x424   : > { %1683 = vrot.lane.b32.xlu0 %v3849_v49, %s5121_s13 }
 0x427   : > { %1685 = vrot.lane.b32.xlu1 %v3850_v61, %s5121_s13 }
 0x428   : > { %1687 = vrot.lane.b32.xlu0 %v952_v0, %s5121_s13 }
 0x42b   : > { %1689 = vrot.lane.b32.xlu1 %v955_v2, %s5121_s13 }
 0x42c   : > { %1691 = vrot.lane.b32.xlu0 %v3853_v63, %s5121_s13 }
 0x42f   : > { %1693 = vrot.lane.b32.xlu1 %v3854_v1, %s5121_s13  ;;  %s6549_s13 = scalar_lea.sflag [#allocation4], %s604_s1 }
 0x430   : > { %2038 = vrot.lane.b32.xlu0 %v936_v60, %s5122_s19 }
 0x433   : > { %2040 = vrot.lane.b32.xlu1 %v939_v62, %s5122_s19 }
 0x434   : > { %2042 = vrot.lane.b32.xlu0 %v3849_v49, %s5122_s19 }
 0x437   : > { %2044 = vrot.lane.b32.xlu1 %v3850_v61, %s5122_s19 }
 0x438   : > { %2046 = vrot.lane.b32.xlu0 %v952_v0, %s5122_s19 }
 0x43b   : > { %2048 = vrot.lane.b32.xlu1 %v955_v2, %s5122_s19 }
 0x43c   : > { %2050 = vrot.lane.b32.xlu0 %v3853_v63, %s5122_s19 }
 0x43f   : > { %2052 = vrot.lane.b32.xlu1 %v3854_v1, %s5122_s19  ;;  %s4946_s19 = scalar_lea.vmem %s6534_s28, 1024 }
 0x440   : > { %p4947_p12 = scmp.ne.s32.totalorder %s6534_s28, %s4946_s19 }
 0x481   : > { %v1325_v3 = vpop.permute.xlu1 %1324 }
 0x482   : > { %v1321_v4 = vpop.permute.xlu0 %1320 }
 0x483   : > { %3885 = vmatprep.mubr.msk.f32.mxu0 %vm968_vm1, %v1321_v4 }
 0x485   : > { %v1323_v5 = vpop.permute.xlu1 %1322 }
 0x486   : > { %3886 = vmatmul.mubr.msk.f32.vlgmr.msra.gmra.mrb[8].mxu0 %vm968_vm1, %v1323_v5 }
 0x487   : > { %3912 = vmatpush3.msra.mxu0 %v1678_v59  ;;  %3888 = vmatprep.mubr.msk.f32.mxu0 %vm968_vm1, %v1325_v3 }
 0x488   : > { %3939 = vmatprep.subr.mxu0 %v2037_v6 }
 0x489   : > { %v1327_v7 = vpop.permute.xlu1 %1326 }
 0x48a   : > { %3889 = vmatmul.mubr.msk.f32.gmra.mrb[10].mxu0 %vm968_vm1, %v1327_v7  ;;  %v1329_v8 = vpop.permute.xlu0 %1328 }
 0x48b   : > { %3891 = vmatprep.mubr.msk.f32.mxu0 %vm968_vm1, %v1329_v8 }
 0x48d   : > { %v1331_v9 = vpop.permute.xlu1 %1330 }
 0x48e   : > { %3892 = vmatmul.mubr.msk.f32.gmra.mrb[12].mxu0 %vm968_vm1, %v1331_v9  ;;  %v1333_v10 = vpop.permute.xlu0 %1332 }
 0x48f   : > { %3894 = vmatprep.mubr.msk.f32.mxu0 %vm968_vm1, %v1333_v10 }
 0x491   : > { %v1335_v11 = vpop.permute.xlu1 %1334 }
 0x492   : > { %3895 = vmatmul.mubr.msk.f32.gmra.mrb[14].mxu0 %vm968_vm1, %v1335_v11  ;;  %v1680_v12 = vpop.permute.xlu0 %1679 }
 0x493   : > { %3913 = vmatprep.mubr.msk.f32.mxu0 %vm968_vm1, %v1680_v12 }
 0x495   : > { %v1682_v13 = vpop.permute.xlu1 %1681 }
 0x496   : > { %3914 = vmatmul.mubr.msk.f32.vlgmr.msra.gmra.mrb[16].mxu0 %vm968_vm1, %v1682_v13  ;;  %v1684_v14 = vpop.permute.xlu0 %1683 }
 0x497   : > { %3940 = vmatpush3.msra.mxu0 %v2037_v6  ;;  %3916 = vmatprep.mubr.msk.f32.mxu0 %vm968_vm1, %v1684_v14 }
 0x499   : > { %v1686_v15 = vpop.permute.xlu1 %1685 }
 0x49a   : > { %3917 = vmatmul.mubr.msk.f32.gmra.mrb[18].mxu0 %vm968_vm1, %v1686_v15  ;;  %v1688_v16 = vpop.permute.xlu0 %1687 }
 0x49b   : > { %3919 = vmatprep.mubr.msk.f32.mxu0 %vm968_vm1, %v1688_v16 }
 0x49d   : > { %v1690_v17 = vpop.permute.xlu1 %1689 }
 0x49e   : > { %3920 = vmatmul.mubr.msk.f32.gmra.mrb[20].mxu0 %vm968_vm1, %v1690_v17  ;;  %v1692_v18 = vpop.permute.xlu0 %1691 }
 0x49f   : > { %3922 = vmatprep.mubr.msk.f32.mxu0 %vm968_vm1, %v1692_v18 }
 0x4a1   : > { %v1694_v19 = vpop.permute.xlu1 %1693 }
 0x4a2   : > { %3923 = vmatmul.mubr.msk.f32.gmra.mrb[22].mxu0 %vm968_vm1, %v1694_v19  ;;  %v2039_v22 = vpop.permute.xlu0 %2038 }
 0x4a3   : > { %3941 = vmatprep.mubr.msk.f32.mxu0 %vm968_vm1, %v2039_v22 }
 0x4a5   : > { %v2041_v23 = vpop.permute.xlu1 %2040 }
 0x4a6   : > { %3942 = vmatmul.mubr.msk.f32.vlgmr.msra.gmra.mrb[24].mxu0 %vm968_vm1, %v2041_v23  ;;  %v2043_v24 = vpop.permute.xlu0 %2042 }
 0x4a7   : > { %3944 = vmatprep.mubr.msk.f32.mxu0 %vm968_vm1, %v2043_v24 }
 0x4a9   : > { %v2045_v25 = vpop.permute.xlu1 %2044 }
 0x4aa   : > { %3945 = vmatmul.mubr.msk.f32.gmra.mrb[26].mxu0 %vm968_vm1, %v2045_v25  ;;  %v2047_v26 = vpop.permute.xlu0 %2046 }
 0x4ab   : > { %3947 = vmatprep.mubr.msk.f32.mxu0 %vm968_vm1, %v2047_v26 }
 0x4ad   : > { %v2049_v27 = vpop.permute.xlu1 %2048 }
 0x4ae   : > { %3948 = vmatmul.mubr.msk.f32.gmra.mrb[28].mxu0 %vm968_vm1, %v2049_v27  ;;  %v2051_v30 = vpop.permute.xlu0 %2050 }
 0x4af   : > { %3950 = vmatprep.mubr.msk.f32.mxu0 %vm968_vm1, %v2051_v30 }
 0x4b1   : > { %v2053_v31 = vpop.permute.xlu1 %2052 }
 0x4b2   : > { %3951 = vmatmul.mubr.msk.f32.gmra.mrb[30].mxu0 %vm968_vm1, %v2053_v31 }
 0x4e5   : > { %v5864_v32 = vpop.f32.mrb[0].mxu1 }
 0x4e6   : > { %v5866_v33 = vpop.f32.mrb[1].mxu1  ;;  %v1101_v34 = vsel %vm968_vm1, %v5864_v32, -inf }
 0x4e7   : > { %1102 = vmax.xlane.f32.xlu1 %v1101_v34  ;;  %v1098_v35 = vsel %vm968_vm1, %v5866_v33, -inf }
 0x4e8   : > { %1099 = vmax.xlane.f32.xlu0 %v1098_v35 }
 0x4e9   : > { %v5872_v20 = vpop.f32.mrb[2].mxu1 }
 0x4ea   : > { %v5874_v36 = vpop.f32.mrb[3].mxu1  ;;  %v1107_v37 = vsel %vm968_vm1, %v5872_v20, -inf }
 0x4eb   : > { %v1104_v43 = vsel %vm968_vm1, %v5874_v36, -inf }
 0x4ec   : > { %1108 = vmax.xlane.f32.xlu0 %v1107_v37 }
 0x4ed   : > { %v5878_v40 = vpop.f32.mrb[4].mxu1 }
 0x4ee   : > { %v5880_v41 = vpop.f32.mrb[5].mxu1  ;;  %v1113_v42 = vsel %vm968_vm1, %v5878_v40, -inf }
 0x4ef   : > { %1114 = vmax.xlane.f32.xlu1 %v1113_v42  ;;  %v1110_v45 = vsel %vm968_vm1, %v5880_v41, -inf }
 0x4f0   : > { %1105 = vmax.xlane.f32.xlu0 %v1104_v43 }
 0x4f1   : > { %v5886_v28 = vpop.f32.mrb[6].mxu1 }
 0x4f2   : > { %v5888_v44 = vpop.f32.mrb[7].mxu1  ;;  %v1119_v21 = vsel %vm968_vm1, %v5886_v28, -inf }
 0x4f3   : > { %1120 = vmax.xlane.f32.xlu1 %v1119_v21  ;;  %v1116_v46 = vsel %vm968_vm1, %v5888_v44, -inf }
 0x4f4   : > { %1111 = vmax.xlane.f32.xlu0 %v1110_v45 }
 0x4f8   : > { %1117 = vmax.xlane.f32.xlu0 %v1116_v46 }
 0x559   : > { %v5896_v47 = vpop.f32.mrb[8].mxu0 }
 0x55a   : > { %v5898_v50 = vpop.f32.mrb[9].mxu0  ;;  %v1460_v29 = vsel %vm968_vm1, %v5896_v47, -inf }
 0x55b   : > { %1461 = vmax.xlane.f32.xlu1 %v1460_v29  ;;  %v1457_v38 = vsel %vm968_vm1, %v5898_v50, -inf }
 0x55c   : > { %1458 = vmax.xlane.f32.xlu0 %v1457_v38 }
 0x55d   : > { %v5904_v51 = vpop.f32.mrb[10].mxu0 }
 0x55e   : > { %v5906_v52 = vpop.f32.mrb[11].mxu0  ;;  %v1466_v53 = vsel %vm968_vm1, %v5904_v51, -inf }
 0x55f   : > { %1467 = vmax.xlane.f32.xlu1 %v1466_v53  ;;  %v1463_v54 = vsel %vm968_vm1, %v5906_v52, -inf }
 0x560   : > { %1464 = vmax.xlane.f32.xlu0 %v1463_v54 }
 0x561   : > { %v5912_v55 = vpop.f32.mrb[12].mxu0 }
 0x562   : > { %v5914_v39 = vpop.f32.mrb[13].mxu0  ;;  %v1472_v56 = vsel %vm968_vm1, %v5912_v55, -inf }
 0x563   : > { %1473 = vmax.xlane.f32.xlu1 %v1472_v56  ;;  %v1469_v48 = vsel %vm968_vm1, %v5914_v39, -inf }
 0x564   : > { %1470 = vmax.xlane.f32.xlu0 %v1469_v48 }
 0x565   : > { %v5920_v57 = vpop.f32.mrb[14].mxu0 }
 0x566   : > { %v5922_v58 = vpop.f32.mrb[15].mxu0  ;;  %v1478_v59 = vsel %vm968_vm1, %v5920_v57, -inf }
 0x567   : > { %1479 = vmax.xlane.f32.xlu1 %v1478_v59  ;;  %v1475_v49 = vsel %vm968_vm1, %v5922_v58, -inf }
 0x568   : > { %1476 = vmax.xlane.f32.xlu0 %v1475_v49 }
 0x569   : > { %v5928_v60 = vpop.f32.mrb[16].mxu0 }
 0x56a   : > { %v5930_v61 = vpop.f32.mrb[17].mxu0  ;;  %v1819_v62 = vsel %vm968_vm1, %v5928_v60, -inf }
 0x56b   : > { %1820 = vmax.xlane.f32.xlu1 %v1819_v62  ;;  %v1816_v63 = vsel %vm968_vm1, %v5930_v61, -inf }
 0x56c   : > { %1817 = vmax.xlane.f32.xlu0 %v1816_v63 }
 0x56d   : > { %v5936_v0 = vpop.f32.mrb[18].mxu0 }
 0x56e   : > { %v5938_v1 = vpop.f32.mrb[19].mxu0  ;;  %v1825_v2 = vsel %vm968_vm1, %v5936_v0, -inf }
 0x56f   : > { %1826 = vmax.xlane.f32.xlu1 %v1825_v2  ;;  %v1822_v3 = vsel %vm968_vm1, %v5938_v1, -inf }
 0x570   : > { %1823 = vmax.xlane.f32.xlu0 %v1822_v3 }
 0x571   : > { %v5944_v4 = vpop.f32.mrb[20].mxu0 }
 0x572   : > { %v5946_v5 = vpop.f32.mrb[21].mxu0  ;;  %v1831_v6 = vsel %vm968_vm1, %v5944_v4, -inf }
 0x573   : > { %1832 = vmax.xlane.f32.xlu1 %v1831_v6  ;;  %v1828_v7 = vsel %vm968_vm1, %v5946_v5, -inf }
 0x574   : > { %v1103_v8 = vpop.xlane.xlu1 %1102  ;;  %1829 = vmax.xlane.f32.xlu0 %v1828_v7 }
 0x575   : > { %v1123_v9 = vsub.f32 %v5864_v32, %v1103_v8  ;;  %v5953_v10 = vpop.f32.mrb[22].mxu0  ;;  %v1100_v11 = vpop.xlane.xlu0 %1099 }
 0x576   : > { %v1122_v12 = vsub.f32 %v5866_v33, %v1100_v11  ;;  %v5956_v13 = vpop.f32.mrb[23].mxu0  ;;  %v1837_v14 = vsel %vm968_vm1, %v5953_v10, -inf }
 0x577   : > { %1838 = vmax.xlane.f32.xlu1 %v1837_v14  ;;  %v1834_v15 = vsel %vm968_vm1, %v5956_v13, -inf  ;;  %v1132_v16 = vmul.f32 1.442695, %v1123_v9 }
 0x578   : > { %1835 = vmax.xlane.f32.xlu0 %v1834_v15  ;;  %v1130_v19 = vmul.f32 1.442695, %v1122_v12 }
 0x579   : > { %v5962_v17 = vpop.f32.mrb[24].mxu0  ;;  %v1109_v18 = vpop.xlane.xlu0 %1108  ;;  %4364 = vpow2.f32 %v1132_v16 }
 0x57a   : > { %v1125_v22 = vsub.f32 %v5872_v20, %v1109_v18  ;;  %v5965_v23 = vpop.f32.mrb[25].mxu0  ;;  %v2178_v24 = vsel %vm968_vm1, %v5962_v17, -inf  ;;  %4366 = vpow2.f32 %v1130_v19 }
 0x57b   : > { %2179 = vmax.xlane.f32.xlu1 %v2178_v24  ;;  %v2175_v25 = vsel %vm968_vm1, %v5965_v23, -inf  ;;  %v1186_v24 = vld [vmem:[%s5738_s0] sm:$0xff] }
 0x57c   : > { %v1115_v26 = vpop.xlane.xlu1 %1114  ;;  %2176 = vmax.xlane.f32.xlu0 %v2175_v25  ;;  %v1136_v27 = vmul.f32 1.442695, %v1125_v22  ;;  %3869 = vmatprep.subr.msk.mxu1 %vm968_vm1, %v1186_v24  ;;  %v6036_v25 = vld [vmem:[%s5738_s0 + $0x8] sm:$0xff] }
 0x57d   : > { %v1127_v30 = vsub.f32 %v5878_v40, %v1115_v26  ;;  %v5972_v31 = vpop.f32.mrb[26].mxu0  ;;  %v1106_v32 = vpop.xlane.xlu0 %1105  ;;  %3870 = vmatpush3.xpose.msk.msra.mxu1 %vm968_vm1, %v1186_v24 }
 0x57e   : > { %v1124_v33 = vsub.f32 %v5874_v36, %v1106_v32  ;;  %v5975_v34 = vpop.f32.mrb[27].mxu0  ;;  %v2184_v35 = vsel %vm968_vm1, %v5972_v31, -inf  ;;  %4368 = vpow2.f32 %v1136_v27  ;;  %3897 = vmatprep.subr.msk.mxu1 %vm968_vm1, %v6036_v25 }
 0x57f   : > { %2185 = vmax.xlane.f32.xlu1 %v2184_v35  ;;  %v2181_v20 = vsel %vm968_vm1, %v5975_v34, -inf  ;;  %v1140_v40 = vmul.f32 1.442695, %v1127_v30 }
 0x580   : > { %v1134_v37 = vmul.f32 1.442695, %v1124_v33  ;;  %v1121_v42 = vpop.xlane.xlu1 %1120  ;;  %2182 = vmax.xlane.f32.xlu0 %v2181_v20 }
 0x581   : > { %v1129_v43 = vsub.f32 %v5886_v28, %v1121_v42  ;;  %v5982_v21 = vpop.f32.mrb[28].mxu0  ;;  %v1112_v45 = vpop.xlane.xlu0 %1111 }
 0x582   : > { %4370 = vpow2.f32 %v1134_v37  ;;  %v1126_v36 = vsub.f32 %v5880_v41, %v1112_v45  ;;  %v5985_v46 = vpop.f32.mrb[29].mxu0  ;;  %v2190_v29 = vsel %vm968_vm1, %v5982_v21, -inf }
 0x583   : > { %2191 = vmax.xlane.f32.xlu1 %v2190_v29  ;;  %v2187_v38 = vsel %vm968_vm1, %v5985_v46, -inf  ;;  %4372 = vpow2.f32 %v1140_v40  ;;  %v1144_v54 = vmul.f32 1.442695, %v1129_v43  ;;  %v5998_v49 = vpop.eup %4364 }
 0x584   : > { %v1138_v53 = vmul.f32 1.442695, %v1126_v36  ;;  %2188 = vmax.xlane.f32.xlu0 %v2187_v38  ;;  %v6002_v63 = vpop.eup %4366 }
 0x585   : > { %v5991_v28 = vpop.f32.mrb[30].mxu0  ;;  %v1118_v56 = vpop.xlane.xlu0 %1117  ;;  %v1146_v6 = vsel %vm968_vm1, %v6002_v63, 0.0 }
 0x586   : > { %4374 = vpow2.f32 %v1138_v53  ;;  %v1128_v48 = vsub.f32 %v5888_v44, %v1118_v56  ;;  %v5994_v41 = vpop.f32.mrb[31].mxu0  ;;  %v2196_v59 = vsel %vm968_vm1, %v5991_v28, -inf  ;;  %v1149_v44 = vsel %vm968_vm1, %v5998_v49, 0.0 }
 0x587   : > { %2197 = vmax.xlane.f32.xlu1 %v2196_v59  ;;  %v2193_v62 = vsel %vm968_vm1, %v5994_v41, -inf  ;;  %4376 = vpow2.f32 %v1144_v54 }
 0x588   : > { %v1142_v2 = vmul.f32 1.442695, %v1128_v48  ;;  %2194 = vmax.xlane.f32.xlu0 %v2193_v62  ;;  %v6006_v3 = vpop.eup %4368 }
 0x589   : > { %v1155_v8 = vsel %vm968_vm1, %v6006_v3, 0.0 }
 0x58a   : > { %4378 = vpow2.f32 %v1142_v2 }
 0x58b   : > { %1150 = vadd.xlane.f32.xlu1 %v1149_v44 }
 0x58c   : > { %v6010_v7 = vpop.eup %4370  ;;  %1147 = vadd.xlane.f32.xlu0 %v1146_v6 }
 0x58d   : > { %v6014_v9 = vpop.eup %4372  ;;  %v1152_v11 = vsel %vm968_vm1, %v6010_v7, 0.0 }
 0x58e   : > { %v1161_v14 = vsel %vm968_vm1, %v6014_v9, 0.0 }
 0x58f   : > { %1156 = vadd.xlane.f32.xlu1 %v1155_v8 }
 0x590   : > { %v6018_v12 = vpop.eup %4374  ;;  %1153 = vadd.xlane.f32.xlu0 %v1152_v11 }
 0x591   : > { %v6022_v15 = vpop.eup %4376  ;;  %v1158_v16 = vsel %vm968_vm1, %v6018_v12, 0.0 }
 0x592   : > { %v1167_v19 = vsel %vm968_vm1, %v6022_v15, 0.0 }
 0x593   : > { %1162 = vadd.xlane.f32.xlu1 %v1161_v14 }
 0x594   : > { %v6026_v18 = vpop.eup %4378  ;;  %1159 = vadd.xlane.f32.xlu0 %v1158_v16 }
 0x595   : > { %v1164_v22 = vsel %vm968_vm1, %v6026_v18, 0.0 }
 0x597   : > { %1168 = vadd.xlane.f32.xlu1 %v1167_v19 }
 0x598   : > { %1165 = vadd.xlane.f32.xlu0 %v1164_v22 }
 0x5e8   : > { %v1462_v26 = vpop.xlane.xlu1 %1461 }
 0x5e9   : > { %v1482_v27 = vsub.f32 %v5896_v47, %v1462_v26  ;;  %v1459_v30 = vpop.xlane.xlu0 %1458 }
 0x5ea   : > { %v1481_v32 = vsub.f32 %v5898_v50, %v1459_v30 }
 0x5eb   : > { %v1491_v33 = vmul.f32 1.442695, %v1482_v27 }
 0x5ec   : > { %v1489_v35 = vmul.f32 1.442695, %v1481_v32  ;;  %v1468_v20 = vpop.xlane.xlu1 %1467 }
 0x5ed   : > { %4380 = vpow2.f32 %v1491_v33  ;;  %v1484_v37 = vsub.f32 %v5904_v51, %v1468_v20  ;;  %v1465_v42 = vpop.xlane.xlu0 %1464 }
 0x5ee   : > { %4382 = vpow2.f32 %v1489_v35  ;;  %v1483_v40 = vsub.f32 %v5906_v52, %v1465_v42 }
 0x5ef   : > { %v1495_v43 = vmul.f32 1.442695, %v1484_v37 }
 0x5f0   : > { %v1493_v45 = vmul.f32 1.442695, %v1483_v40  ;;  %v1474_v36 = vpop.xlane.xlu1 %1473 }
 0x5f1   : > { %4384 = vpow2.f32 %v1495_v43  ;;  %v1486_v29 = vsub.f32 %v5912_v55, %v1474_v36  ;;  %v1471_v47 = vpop.xlane.xlu0 %1470 }
 0x5f2   : > { %4386 = vpow2.f32 %v1493_v45  ;;  %v1485_v50 = vsub.f32 %v5914_v39, %v1471_v47 }
 0x5f3   : > { %v1499_v38 = vmul.f32 1.442695, %v1486_v29 }
 0x5f4   : > { %v1497_v53 = vmul.f32 1.442695, %v1485_v50  ;;  %v1480_v54 = vpop.xlane.xlu1 %1479 }
 0x5f5   : > { %4388 = vpow2.f32 %v1499_v38  ;;  %v1488_v51 = vsub.f32 %v5920_v57, %v1480_v54  ;;  %v1477_v56 = vpop.xlane.xlu0 %1476 }
 0x5f6   : > { %4390 = vpow2.f32 %v1497_v53  ;;  %v1487_v52 = vsub.f32 %v5922_v58, %v1477_v56 }
 0x5f7   : > { %v6048_v48 = vpop.eup %4380  ;;  %v1503_v59 = vmul.f32 1.442695, %v1488_v51 }
 0x5f8   : > { %v6050_v62 = vpop.eup %4382  ;;  %v1501_v55 = vmul.f32 1.442695, %v1487_v52  ;;  %v1821_v2 = vpop.xlane.xlu1 %1820  ;;  %v1508_v39 = vsel %vm968_vm1, %v6048_v48, 0.0 }
 0x5f9   : > { %4392 = vpow2.f32 %v1503_v59  ;;  %v1841_v44 = vsub.f32 %v5928_v60, %v1821_v2  ;;  %1509 = vadd.xlane.f32.xlu1 %v1508_v39  ;;  %v1818_v6 = vpop.xlane.xlu0 %1817  ;;  %v1505_v57 = vsel %vm968_vm1, %v6050_v62, 0.0 }
 0x5fa   : > { %4394 = vpow2.f32 %v1501_v55  ;;  %v1840_v58 = vsub.f32 %v5930_v61, %v1818_v6  ;;  %1506 = vadd.xlane.f32.xlu0 %v1505_v57 }
 0x5fb   : > { %v6058_v8 = vpop.eup %4384  ;;  %v1850_v11 = vmul.f32 1.442695, %v1841_v44 }
 0x5fc   : > { %v6060_v14 = vpop.eup %4386  ;;  %v1848_v16 = vmul.f32 1.442695, %v1840_v58  ;;  %v1827_v19 = vpop.xlane.xlu1 %1826  ;;  %v1514_v22 = vsel %vm968_vm1, %v6058_v8, 0.0 }
 0x5fd   : > { %4396 = vpow2.f32 %v1850_v11  ;;  %v1843_v60 = vsub.f32 %v5936_v0, %v1827_v19  ;;  %1515 = vadd.xlane.f32.xlu1 %v1514_v22  ;;  %v1824_v24 = vpop.xlane.xlu0 %1823  ;;  %v1511_v26 = vsel %vm968_vm1, %v6060_v14, 0.0 }
 0x5fe   : > { %4398 = vpow2.f32 %v1848_v16  ;;  %v1842_v61 = vsub.f32 %v5938_v1, %v1824_v24  ;;  %1512 = vadd.xlane.f32.xlu0 %v1511_v26 }
 0x5ff   : > { %v6068_v27 = vpop.eup %4388  ;;  %v1854_v30 = vmul.f32 1.442695, %v1843_v60 }
 0x600   : > { %v6070_v32 = vpop.eup %4390  ;;  %v1852_v33 = vmul.f32 1.442695, %v1842_v61  ;;  %v1833_v35 = vpop.xlane.xlu1 %1832  ;;  %v1520_v20 = vsel %vm968_vm1, %v6068_v27, 0.0 }
 0x601   : > { %4400 = vpow2.f32 %v1854_v30  ;;  %v1845_v0 = vsub.f32 %v5944_v4, %v1833_v35  ;;  %1521 = vadd.xlane.f32.xlu1 %v1520_v20  ;;  %v1830_v37 = vpop.xlane.xlu0 %1829  ;;  %v1517_v42 = vsel %vm968_vm1, %v6070_v32, 0.0 }
 0x602   : > { %4402 = vpow2.f32 %v1852_v33  ;;  %v1844_v1 = vsub.f32 %v5946_v5, %v1830_v37  ;;  %1518 = vadd.xlane.f32.xlu0 %v1517_v42 }
 0x603   : > { %v6078_v40 = vpop.eup %4392  ;;  %v1858_v43 = vmul.f32 1.442695, %v1845_v0 }
 0x604   : > { %v6080_v45 = vpop.eup %4394  ;;  %v1856_v36 = vmul.f32 1.442695, %v1844_v1  ;;  %v1839_v29 = vpop.xlane.xlu1 %1838  ;;  %v1526_v47 = vsel %vm968_vm1, %v6078_v40, 0.0 }
 0x605   : > { %4404 = vpow2.f32 %v1858_v43  ;;  %v1847_v4 = vsub.f32 %v5953_v10, %v1839_v29  ;;  %1527 = vadd.xlane.f32.xlu1 %v1526_v47  ;;  %v1836_v50 = vpop.xlane.xlu0 %1835  ;;  %v1523_v38 = vsel %vm968_vm1, %v6080_v45, 0.0 }
 0x606   : > { %4406 = vpow2.f32 %v1856_v36  ;;  %v1846_v5 = vsub.f32 %v5956_v13, %v1836_v50  ;;  %1524 = vadd.xlane.f32.xlu0 %v1523_v38 }
 0x607   : > { %v6088_v53 = vpop.eup %4396  ;;  %v1862_v54 = vmul.f32 1.442695, %v1847_v4 }
 0x608   : > { %v6090_v51 = vpop.eup %4398  ;;  %v1860_v56 = vmul.f32 1.442695, %v1846_v5  ;;  %v2180_v52 = vpop.xlane.xlu1 %2179  ;;  %v1867_v59 = vsel %vm968_vm1, %v6088_v53, 0.0 }
 0x609   : > { %4408 = vpow2.f32 %v1862_v54  ;;  %v2200_v10 = vsub.f32 %v5962_v17, %v2180_v52  ;;  %1868 = vadd.xlane.f32.xlu1 %v1867_v59  ;;  %v2177_v55 = vpop.xlane.xlu0 %2176  ;;  %v1864_v2 = vsel %vm968_vm1, %v6090_v51, 0.0 }
 0x60a   : > { %4410 = vpow2.f32 %v1860_v56  ;;  %v2199_v13 = vsub.f32 %v5965_v23, %v2177_v55  ;;  %1865 = vadd.xlane.f32.xlu0 %v1864_v2 }
 0x60b   : > { %v6098_v39 = vpop.eup %4400  ;;  %v2209_v44 = vmul.f32 1.442695, %v2200_v10 }
 0x60c   : > { %v6100_v6 = vpop.eup %4402  ;;  %v2207_v57 = vmul.f32 1.442695, %v2199_v13  ;;  %v2186_v58 = vpop.xlane.xlu1 %2185  ;;  %v1873_v11 = vsel %vm968_vm1, %v6098_v39, 0.0 }
 0x60d   : > { %4412 = vpow2.f32 %v2209_v44  ;;  %v2202_v17 = vsub.f32 %v5972_v31, %v2186_v58  ;;  %1874 = vadd.xlane.f32.xlu1 %v1873_v11  ;;  %v2183_v16 = vpop.xlane.xlu0 %2182  ;;  %v1870_v19 = vsel %vm968_vm1, %v6100_v6, 0.0 }
 0x60e   : > { %4414 = vpow2.f32 %v2207_v57  ;;  %v2201_v23 = vsub.f32 %v5975_v34, %v2183_v16  ;;  %1871 = vadd.xlane.f32.xlu0 %v1870_v19 }
 0x60f   : > { %v6108_v22 = vpop.eup %4404  ;;  %v2213_v60 = vmul.f32 1.442695, %v2202_v17 }
 0x610   : > { %v6110_v24 = vpop.eup %4406  ;;  %v2211_v26 = vmul.f32 1.442695, %v2201_v23  ;;  %v2192_v61 = vpop.xlane.xlu1 %2191  ;;  %v1879_v30 = vsel %vm968_vm1, %v6108_v22, 0.0 }
 0x611   : > { %4416 = vpow2.f32 %v2213_v60  ;;  %v2204_v31 = vsub.f32 %v5982_v21, %v2192_v61  ;;  %1880 = vadd.xlane.f32.xlu1 %v1879_v30  ;;  %v2189_v33 = vpop.xlane.xlu0 %2188  ;;  %v1876_v35 = vsel %vm968_vm1, %v6110_v24, 0.0 }
 0x612   : > { %4418 = vpow2.f32 %v2211_v26  ;;  %v2203_v34 = vsub.f32 %v5985_v46, %v2189_v33  ;;  %1877 = vadd.xlane.f32.xlu0 %v1876_v35 }
 0x613   : > { %v6118_v20 = vpop.eup %4408  ;;  %v2217_v0 = vmul.f32 1.442695, %v2204_v31 }
 0x614   : > { %v6120_v37 = vpop.eup %4410  ;;  %v2215_v42 = vmul.f32 1.442695, %v2203_v34  ;;  %v2198_v1 = vpop.xlane.xlu1 %2197  ;;  %v1885_v43 = vsel %vm968_vm1, %v6118_v20, 0.0 }
 0x615   : > { %4420 = vpow2.f32 %v2217_v0  ;;  %v2206_v21 = vsub.f32 %v5991_v28, %v2198_v1  ;;  %1886 = vadd.xlane.f32.xlu1 %v1885_v43  ;;  %v2195_v36 = vpop.xlane.xlu0 %2194  ;;  %v1882_v29 = vsel %vm968_vm1, %v6120_v37, 0.0  ;;  %v1904_v1 = vld [vmem:[%s5738_s0 + $0x10] sm:$0xff] }
 0x616   : > { %4422 = vpow2.f32 %v2215_v42  ;;  %v2205_v46 = vsub.f32 %v5994_v41, %v2195_v36  ;;  %1883 = vadd.xlane.f32.xlu0 %v1882_v29 }
 0x617   : > { %v6128_v47 = vpop.eup %4412  ;;  %v2221_v4 = vmul.f32 1.442695, %v2206_v21 }
 0x618   : > { %v6130_v50 = vpop.eup %4414  ;;  %v2219_v38 = vmul.f32 1.442695, %v2205_v46  ;;  %v1151_v5 = vpop.xlane.xlu1 %1150  ;;  %v2226_v54 = vsel %vm968_vm1, %v6128_v47, 0.0 }
 0x619   : > { %4424 = vpow2.f32 %v2221_v4  ;;  %2227 = vadd.xlane.f32.xlu1 %v2226_v54  ;;  %v1148_v28 = vpop.xlane.xlu0 %1147  ;;  %v2223_v56 = vsel %vm968_vm1, %v6130_v50, 0.0 }
 0x61a   : > { %4426 = vpow2.f32 %v2219_v38  ;;  %2224 = vadd.xlane.f32.xlu0 %v2223_v56 }
 0x61b   : > { %v6136_v41 = vpop.eup %4416  ;;  %4428 = vrcp.f32 %v1151_v5 }
 0x61c   : > { %v6138_v52 = vpop.eup %4418  ;;  %4430 = vrcp.f32 %v1148_v28  ;;  %v1157_v59 = vpop.xlane.xlu1 %1156  ;;  %v2232_v10 = vsel %vm968_vm1, %v6136_v41, 0.0 }
 0x61d   : > { %2233 = vadd.xlane.f32.xlu1 %v2232_v10  ;;  %v1154_v55 = vpop.xlane.xlu0 %1153  ;;  %v2229_v2 = vsel %vm968_vm1, %v6138_v52, 0.0 }
 0x61e   : > { %4432 = vrcp.f32 %v1154_v55  ;;  %2230 = vadd.xlane.f32.xlu0 %v2229_v2  ;;  %v2263_v55 = vld [vmem:[%s5738_s0 + $0x18] sm:$0xff]  ;;  %s6765_s0 = smov %s6764_s20 }
 0x61f   : > { %v6144_v13 = vpop.eup %4420  ;;  %4434 = vrcp.f32 %v1157_v59 }
 0x620   : > { %v6146_v44 = vpop.eup %4422  ;;  %v1163_v57 = vpop.xlane.xlu1 %1162  ;;  %v2238_v58 = vsel %vm968_vm1, %v6144_v13, 0.0 }
 0x621   : > { %2239 = vadd.xlane.f32.xlu1 %v2238_v58  ;;  %v1160_v11 = vpop.xlane.xlu0 %1159  ;;  %v2235_v17 = vsel %vm968_vm1, %v6146_v44, 0.0 }
 0x622   : > { %4436 = vrcp.f32 %v1160_v11  ;;  %2236 = vadd.xlane.f32.xlu0 %v2235_v17 }
 0x623   : > { %v6152_v16 = vpop.eup %4424  ;;  %4438 = vrcp.f32 %v1163_v57 }
 0x624   : > { %v6154_v19 = vpop.eup %4426  ;;  %v1169_v23 = vpop.xlane.xlu1 %1168  ;;  %v2244_v60 = vsel %vm968_vm1, %v6152_v16, 0.0 }
 0x625   : > { %v4429_v26 = vpop.eup %4428  ;;  %2245 = vadd.xlane.f32.xlu1 %v2244_v60  ;;  %v1166_v61 = vpop.xlane.xlu0 %1165  ;;  %v2241_v30 = vsel %vm968_vm1, %v6154_v19, 0.0 }
 0x626   : > { %v4431_v31 = vpop.eup %4430  ;;  %4440 = vrcp.f32 %v1166_v61  ;;  %2242 = vadd.xlane.f32.xlu0 %v2241_v30  ;;  %v1179_v34 = vmul.f32 %v4429_v26, %v5998_v49 }
 0x627   : > { %4442 = vrcp.f32 %v1169_v23  ;;  %v1178_v33 = vmul.f32 %v4431_v31, %v6002_v63 }
 0x628   : > { %v4433_v35 = vpop.eup %4432 }
 0x629   : > { %v4435_v0 = vpop.eup %4434  ;;  %3871 = vmatprep.mubr.msk.f32.mxu1 %vm968_vm1, %v1178_v33  ;;  %v1180_v42 = vmul.f32 %v4433_v35, %v6010_v7 }
 0x62a   : > { %3872 = vmatmul.mubr.msk.f32.vlgmr.msra.gmra.mrb[8].mxu1 %vm968_vm1, %v1179_v34  ;;  %v1181_v21 = vmul.f32 %v4435_v0, %v6006_v3 }
 0x62b   : > { %3874 = vmatprep.mubr.msk.f32.mxu1 %vm968_vm1, %v1180_v42  ;;  %3898 = vmatpush3.xpose.msk.msra.mxu1 %vm968_vm1, %v6036_v25 }
 0x62c   : > { %v4437_v43 = vpop.eup %4436  ;;  %3925 = vmatprep.subr.msk.mxu1 %vm968_vm1, %v1904_v1 }
 0x62d   : > { %v4439_v63 = vpop.eup %4438  ;;  %v1182_v49 = vmul.f32 %v4437_v43, %v6018_v12 }
 0x62e   : > { %3875 = vmatmul.mubr.msk.f32.gmra.mrb[10].mxu1 %vm968_vm1, %v1181_v21  ;;  %v1183_v36 = vmul.f32 %v4439_v63, %v6014_v9 }
 0x62f   : > { %3877 = vmatprep.mubr.msk.f32.mxu1 %vm968_vm1, %v1182_v49 }
 0x630   : > { %v4441_v7 = vpop.eup %4440 }
 0x631   : > { %v4443_v29 = vpop.eup %4442  ;;  %v1184_v46 = vmul.f32 %v4441_v7, %v6026_v18 }
 0x632   : > { %3878 = vmatmul.mubr.msk.f32.gmra.mrb[12].mxu1 %vm968_vm1, %v1183_v36  ;;  %v1185_v3 = vmul.f32 %v4443_v29, %v6022_v15 }
 0x633   : > { %3880 = vmatprep.mubr.msk.f32.mxu1 %vm968_vm1, %v1184_v46 }
 0x636   : > { %3881 = vmatmul.mubr.msk.f32.gmra.mrb[14].mxu1 %vm968_vm1, %v1185_v3 }
 0x686   : > { %v1510_v25 = vpop.xlane.xlu1 %1509 }
 0x687   : > { %4444 = vrcp.f32 %v1510_v25  ;;  %v1507_v12 = vpop.xlane.xlu0 %1506 }
 0x688   : > { %4446 = vrcp.f32 %v1507_v12 }
 0x68a   : > { %v1516_v4 = vpop.xlane.xlu1 %1515 }
 0x68b   : > { %4448 = vrcp.f32 %v1516_v4  ;;  %v1513_v38 = vpop.xlane.xlu0 %1512 }
 0x68c   : > { %4450 = vrcp.f32 %v1513_v38 }
 0x68e   : > { %v1522_v9 = vpop.xlane.xlu1 %1521 }
 0x68f   : > { %4452 = vrcp.f32 %v1522_v9  ;;  %v1519_v18 = vpop.xlane.xlu0 %1518 }
 0x690   : > { %4454 = vrcp.f32 %v1519_v18 }
 0x691   : > { %v4445_v5 = vpop.eup %4444 }
 0x692   : > { %v4447_v54 = vpop.eup %4446  ;;  %v1528_v28 = vpop.xlane.xlu1 %1527  ;;  %v1538_v59 = vmul.f32 %v4445_v5, %v6048_v48 }
 0x693   : > { %4456 = vrcp.f32 %v1528_v28  ;;  %v1525_v15 = vpop.xlane.xlu0 %1524  ;;  %v1537_v56 = vmul.f32 %v4447_v54, %v6050_v62 }
 0x694   : > { %4458 = vrcp.f32 %v1525_v15 }
 0x695   : > { %v4449_v10 = vpop.eup %4448  ;;  %3899 = vmatprep.mubr.msk.f32.mxu1 %vm968_vm1, %v1537_v56 }
 0x696   : > { %v4451_v2 = vpop.eup %4450  ;;  %v1869_v57 = vpop.xlane.xlu1 %1868  ;;  %3900 = vmatmul.mubr.msk.f32.vlgmr.msra.gmra.mrb[16].mxu1 %vm968_vm1, %v1538_v59  ;;  %v1540_v62 = vmul.f32 %v4449_v10, %v6058_v8 }
 0x697   : > { %4460 = vrcp.f32 %v1869_v57  ;;  %3926 = vmatpush3.xpose.msk.msra.mxu1 %vm968_vm1, %v1904_v1  ;;  %v1866_v58 = vpop.xlane.xlu0 %1865  ;;  %v1539_v11 = vmul.f32 %v4451_v2, %v6060_v14 }
 0x698   : > { %4462 = vrcp.f32 %v1866_v58  ;;  %3953 = vmatprep.subr.msk.mxu1 %vm968_vm1, %v2263_v55 }
 0x699   : > { %v4453_v48 = vpop.eup %4452  ;;  %3902 = vmatprep.mubr.msk.f32.mxu1 %vm968_vm1, %v1539_v11 }
 0x69a   : > { %v4455_v17 = vpop.eup %4454  ;;  %v1875_v23 = vpop.xlane.xlu1 %1874  ;;  %3903 = vmatmul.mubr.msk.f32.gmra.mrb[18].mxu1 %vm968_vm1, %v1540_v62  ;;  %v1542_v61 = vmul.f32 %v4453_v48, %v6068_v27 }
 0x69b   : > { %4464 = vrcp.f32 %v1875_v23  ;;  %v1872_v60 = vpop.xlane.xlu0 %1871  ;;  %v1541_v26 = vmul.f32 %v4455_v17, %v6070_v32 }
 0x69c   : > { %4466 = vrcp.f32 %v1872_v60 }
 0x69d   : > { %v4457_v14 = vpop.eup %4456  ;;  %3905 = vmatprep.mubr.msk.f32.mxu1 %vm968_vm1, %v1541_v26 }
 0x69e   : > { %v4459_v8 = vpop.eup %4458  ;;  %v1881_v30 = vpop.xlane.xlu1 %1880  ;;  %3906 = vmatmul.mubr.msk.f32.gmra.mrb[20].mxu1 %vm968_vm1, %v1542_v61  ;;  %v1544_v35 = vmul.f32 %v4457_v14, %v6078_v40 }
 0x69f   : > { %4468 = vrcp.f32 %v1881_v30  ;;  %v1878_v31 = vpop.xlane.xlu0 %1877  ;;  %v1543_v33 = vmul.f32 %v4459_v8, %v6080_v45 }
 0x6a0   : > { %4470 = vrcp.f32 %v1878_v31  ;;  %v4340_v31 = vld [vmem:[#allocation12] sm:$0xff]  }
 0x6a1   : > { %v4461_v34 = vpop.eup %4460  ;;  %3908 = vmatprep.mubr.msk.f32.mxu1 %vm968_vm1, %v1543_v33  ;;  %3967 = vmatprep.subr.bf16.mxu0 %v4340_v31 }
 0x6a2   : > { %v4463_v32 = vpop.eup %4462  ;;  %v1887_v0 = vpop.xlane.xlu1 %1886  ;;  %3909 = vmatmul.mubr.msk.f32.gmra.mrb[22].mxu1 %vm968_vm1, %v1544_v35  ;;  %v1897_v1 = vmul.f32 %v4461_v34, %v6088_v53  ;;  %3968 = vmatpush3.bf16.msra.mxu0 %v4340_v31 }
 0x6a3   : > { %4472 = vrcp.f32 %v1887_v0  ;;  %v1884_v27 = vpop.xlane.xlu0 %1883  ;;  %v1896_v42 = vmul.f32 %v4463_v32, %v6090_v51 }
 0x6a4   : > { %4474 = vrcp.f32 %v1884_v27 }
 0x6a5   : > { %v4465_v43 = vpop.eup %4464  ;;  %3927 = vmatprep.mubr.msk.f32.mxu1 %vm968_vm1, %v1896_v42 }
 0x6a6   : > { %v4467_v45 = vpop.eup %4466  ;;  %v2228_v21 = vpop.xlane.xlu1 %2227  ;;  %3928 = vmatmul.mubr.msk.f32.vlgmr.msra.gmra.mrb[24].mxu1 %vm968_vm1, %v1897_v1  ;;  %v1899_v49 = vmul.f32 %v4465_v43, %v6098_v39 }
 0x6a7   : > { %4476 = vrcp.f32 %v2228_v21  ;;  %3954 = vmatpush3.xpose.msk.msra.mxu1 %vm968_vm1, %v2263_v55  ;;  %v2225_v40 = vpop.xlane.xlu0 %2224  ;;  %v1898_v63 = vmul.f32 %v4467_v45, %v6100_v6  ;;  %v4341_v21 = vld [vmem:[#allocation12 + $0x8] sm:$0xff]  }
 0x6a8   : > { %4478 = vrcp.f32 %v2225_v40  ;;  %3969 = vmatprep.subr.bf16.mxu0 %v4341_v21 }
 0x6a9   : > { %v4469_v51 = vpop.eup %4468  ;;  %3930 = vmatprep.mubr.msk.f32.mxu1 %vm968_vm1, %v1898_v63  ;;  %3970 = vmatpush3.bf16.msra.mxu0 %v4341_v21 }
 0x6aa   : > { %v4471_v53 = vpop.eup %4470  ;;  %v2234_v7 = vpop.xlane.xlu1 %2233  ;;  %3931 = vmatmul.mubr.msk.f32.gmra.mrb[26].mxu1 %vm968_vm1, %v1899_v49  ;;  %v1901_v46 = vmul.f32 %v4469_v51, %v6108_v22 }
 0x6ab   : > { %4480 = vrcp.f32 %v2234_v7  ;;  %v2231_v36 = vpop.xlane.xlu0 %2230  ;;  %v1900_v29 = vmul.f32 %v4471_v53, %v6110_v24 }
 0x6ac   : > { %4482 = vrcp.f32 %v2231_v36 }
 0x6ad   : > { %v4473_v3 = vpop.eup %4472  ;;  %3933 = vmatprep.mubr.msk.f32.mxu1 %vm968_vm1, %v1900_v29 }
 0x6ae   : > { %v4475_v6 = vpop.eup %4474  ;;  %v2240_v25 = vpop.xlane.xlu1 %2239  ;;  %3934 = vmatmul.mubr.msk.f32.gmra.mrb[28].mxu1 %vm968_vm1, %v1901_v46  ;;  %v1903_v4 = vmul.f32 %v4473_v3, %v6118_v20 }
 0x6af   : > { %4484 = vrcp.f32 %v2240_v25  ;;  %v2237_v39 = vpop.xlane.xlu0 %2236  ;;  %v1902_v12 = vmul.f32 %v4475_v6, %v6120_v37 }
 0x6b0   : > { %4486 = vrcp.f32 %v2237_v39 }
 0x6b1   : > { %v4477_v38 = vpop.eup %4476  ;;  %3936 = vmatprep.mubr.msk.f32.mxu1 %vm968_vm1, %v1902_v12 }
 0x6b2   : > { %v4479_v24 = vpop.eup %4478  ;;  %v2246_v9 = vpop.xlane.xlu1 %2245  ;;  %3937 = vmatmul.mubr.msk.f32.gmra.mrb[30].mxu1 %vm968_vm1, %v1903_v4  ;;  %v2256_v5 = vmul.f32 %v4477_v38, %v6128_v47 }
 0x6b3   : > { %4488 = vrcp.f32 %v2246_v9  ;;  %v2243_v22 = vpop.xlane.xlu0 %2242  ;;  %v2255_v18 = vmul.f32 %v4479_v24, %v6130_v50 }
 0x6b4   : > { %4490 = vrcp.f32 %v2243_v22 }
 0x6b5   : > { %v4481_v54 = vpop.eup %4480  ;;  %3955 = vmatprep.mubr.msk.f32.mxu1 %vm968_vm1, %v2255_v18 }
 0x6b6   : > { %v4483_v37 = vpop.eup %4482  ;;  %3956 = vmatmul.mubr.msk.f32.vlgmr.msra.gmra.mrb[32].mxu1 %vm968_vm1, %v2256_v5  ;;  %v2258_v28 = vmul.f32 %v4481_v54, %v6136_v41 }
 0x6b7   : > { %v2257_v20 = vmul.f32 %v4483_v37, %v6138_v52 }
 0x6b9   : > { %v4485_v15 = vpop.eup %4484  ;;  %3958 = vmatprep.mubr.msk.f32.mxu1 %vm968_vm1, %v2257_v20 }
 0x6ba   : > { %v4487_v56 = vpop.eup %4486  ;;  %3959 = vmatmul.mubr.msk.f32.gmra.mrb[34].mxu1 %vm968_vm1, %v2258_v28  ;;  %v2260_v47 = vmul.f32 %v4485_v15, %v6144_v13 }
 0x6bb   : > { %v2259_v50 = vmul.f32 %v4487_v56, %v6146_v44 }
 0x6bd   : > { %v4489_v59 = vpop.eup %4488  ;;  %3961 = vmatprep.mubr.msk.f32.mxu1 %vm968_vm1, %v2259_v50 }
 0x6be   : > { %v4491_v10 = vpop.eup %4490  ;;  %3962 = vmatmul.mubr.msk.f32.gmra.mrb[36].mxu1 %vm968_vm1, %v2260_v47  ;;  %v2262_v41 = vmul.f32 %v4489_v59, %v6152_v16 }
 0x6bf   : > { %v2261_v52 = vmul.f32 %v4491_v10, %v6154_v19 }
 0x6c1   : > { %3964 = vmatprep.mubr.msk.f32.mxu1 %vm968_vm1, %v2261_v52 }
 0x6c2   : > { %3965 = vmatmul.mubr.msk.f32.gmra.mrb[38].mxu1 %vm968_vm1, %v2262_v41 }
 0x6fd   : > { %v6232_v55 = vpop.f32.mrb[8].mxu1 }
 0x6fe   : > { %v6234_v2 = vpop.f32.mrb[9].mxu1 }
 0x701   : > { %v6236_v44 = vpop.f32.mrb[10].mxu1 }
 0x702   : > { %v6238_v13 = vpop.f32.mrb[11].mxu1 }
 0x705   : > { %v6240_v57 = vpop.f32.mrb[12].mxu1 }
 0x706   : > { %v6242_v58 = vpop.f32.mrb[13].mxu1 }
 0x709   : > { %v6244_v11 = vpop.f32.mrb[14].mxu1 }
 0x70a   : > { %v6246_v19 = vpop.f32.mrb[15].mxu1 }
 0x769   : > { %v3901_v16 = vpop.f32.mrb[16].mxu1 }
 0x76a   : > { %v1639_v62 = vpop.f32.mrb[17].mxu1 }
 0x76b   : > { %v4278_v48 = vpack.i.bf16 %v3901_v16, %v1639_v62 }
 0x76d   : > { %4279 = vrot.lane.b32.xlu0 %v4278_v48, %s5123_s5  ;;  %v3904_v17 = vpop.f32.mrb[18].mxu1 }
 0x76e   : > { %v1649_v23 = vpop.f32.mrb[19].mxu1 }
 0x76f   : > { %v4283_v60 = vpack.i.bf16 %v3904_v17, %v1649_v23 }
 0x771   : > { %4284 = vrot.lane.b32.xlu1 %v4283_v60, %s5123_s5  ;;  %v3907_v26 = vpop.f32.mrb[20].mxu1 }
 0x772   : > { %v1659_v61 = vpop.f32.mrb[21].mxu1 }
 0x773   : > { %v4288_v14 = vpack.i.bf16 %v3907_v26, %v1659_v61 }
 0x775   : > { %4289 = vrot.lane.b32.xlu0 %v4288_v14, %s5123_s5  ;;  %v3910_v8 = vpop.f32.mrb[22].mxu1 }
 0x776   : > { %v1669_v30 = vpop.f32.mrb[23].mxu1 }
 0x777   : > { %v4293_v33 = vpack.i.bf16 %v3910_v8, %v1669_v30 }
 0x779   : > { %4294 = vrot.lane.b32.xlu1 %v4293_v33, %s5123_s5  ;;  %v3929_v35 = vpop.f32.mrb[24].mxu1 }
 0x77a   : > { %v1998_v34 = vpop.f32.mrb[25].mxu1 }
 0x77b   : > { %v4298_v32 = vpack.i.bf16 %v3929_v35, %v1998_v34 }
 0x77d   : > { %4299 = vrot.lane.b32.xlu1 %v4298_v32, %s5124_s2  ;;  %v3932_v0 = vpop.f32.mrb[26].mxu1 }
 0x77e   : > { %v2008_v27 = vpop.f32.mrb[27].mxu1 }
 0x77f   : > { %v4303_v42 = vpack.i.bf16 %v3932_v0, %v2008_v27 }
 0x781   : > { %4304 = vrot.lane.b32.xlu1 %v4303_v42, %s5124_s2  ;;  %v3935_v1 = vpop.f32.mrb[28].mxu1 }
 0x782   : > { %v2018_v43 = vpop.f32.mrb[29].mxu1 }
 0x783   : > { %v4313_v45 = vpack.i.bf16 %v3935_v1, %v2018_v43 }
 0x785   : > { %v3938_v40 = vpop.f32.mrb[30].mxu1 }
 0x786   : > { %v2028_v63 = vpop.f32.mrb[31].mxu1 }
 0x787   : > { %v4323_v49 = vpack.i.bf16 %v3938_v40, %v2028_v63 }
 0x789   : > { %v3957_v51 = vpop.f32.mrb[32].mxu1 }
 0x78a   : > { %v2357_v53 = vpop.f32.mrb[33].mxu1 }
 0x78b   : > { %v4308_v7 = vpack.i.bf16 %v3957_v51, %v2357_v53 }
 0x78d   : > { %4309 = vrot.lane.b32.xlu0 %v4308_v7, %s5125_s16  ;;  %v3960_v36 = vpop.f32.mrb[34].mxu1 }
 0x78e   : > { %v2367_v29 = vpop.f32.mrb[35].mxu1 }
 0x78f   : > { %v4318_v46 = vpack.i.bf16 %v3960_v36, %v2367_v29 }
 0x791   : > { %4314 = vrot.lane.b32.xlu0 %v4313_v45, %s5124_s2  ;;  %4319 = vrot.lane.b32.xlu1 %v4318_v46, %s5125_s16  ;;  %v3963_v3 = vpop.f32.mrb[36].mxu1 }
 0x792   : > { %v2377_v6 = vpop.f32.mrb[37].mxu1 }
 0x793   : > { %v4328_v25 = vpack.i.bf16 %v3963_v3, %v2377_v6 }
 0x795   : > { %4324 = vrot.lane.b32.xlu1 %v4323_v49, %s5124_s2  ;;  %4329 = vrot.lane.b32.xlu0 %v4328_v25, %s5125_s16  ;;  %v3966_v39 = vpop.f32.mrb[38].mxu1  ;;  %s5127_s2 = smov [#allocation23]  }
 0x796   : > { %v2387_v12 = vpop.f32.mrb[39].mxu1 }
 0x797   : > { %v4333_v4 = vpack.i.bf16 %v3966_v39, %v2387_v12 }
 0x799   : > { %4334 = vrot.lane.b32.xlu1 %v4333_v4, %s5125_s16  ;;  %s4950_s16 = sshll.u32 %s5127_s2, 4  ;;  %s4951_s16 = int_to_ptr.vmem [resolvable:$false] %s4950_s16 }
 0x79a   : > { %p4953_p2 = scmp.lt.s32.totalorder %s6534_s28, %s4951_s16 }
 0x7df   : > { %v4280_v9 = vpop.permute.xlu0 %4279 }
 0x7e0   : > { %v4282_v18 = vunpack.i.h.bf16 %v4280_v9  ;;  %v4281_v5 = vunpack.i.l.bf16 %v4280_v9  ;;  %v4540_v9 = vld [vmem:[%s5717_s8] sm:$0xff] }
 0x7e2   : > { %v2493_v15 = vsel %vm968_vm1, %v6232_v55, %v4282_v18  ;;  %v2492_v56 = vsel %vm968_vm1, %v6234_v2, %v4281_v5 }
 0x7e3   : > { %v4285_v38 = vpop.permute.xlu1 %4284 }
 0x7e4   : > { %v4287_v47 = vunpack.i.h.bf16 %v4285_v38  ;;  %v4286_v59 = vunpack.i.l.bf16 %v4285_v38 }
 0x7e6   : > { %v2495_v14 = vsel %vm968_vm1, %v6236_v44, %v4287_v47  ;;  %v2494_v8 = vsel %vm968_vm1, %v6238_v13, %v4286_v59  ;;  %v4543_v47 = vld [vmem:[%s5717_s8 + $0x18] sm:$0xff] }
 0x7e7   : > { %v4290_v54 = vpop.permute.xlu0 %4289 }
 0x7e8   : > { %v4292_v55 = vunpack.i.h.bf16 %v4290_v54  ;;  %v4291_v60 = vunpack.i.l.bf16 %v4290_v54  ;;  %v4542_v54 = vld [vmem:[%s5717_s8 + $0x8] sm:$0xff] }
 0x7ea   : > { %v2497_v44 = vsel %vm968_vm1, %v6240_v57, %v4292_v55  ;;  %v2496_v13 = vsel %vm968_vm1, %v6242_v58, %v4291_v60  ;;  %v4545_v55 = vld [vmem:[%s5717_s8 + $0x28] sm:$0xff] }
 0x7eb   : > { %v4295_v24 = vpop.permute.xlu1 %4294 }
 0x7ec   : > { %v4297_v45 = vunpack.i.h.bf16 %v4295_v24  ;;  %v4296_v21 = vunpack.i.l.bf16 %v4295_v24 }
 0x7ee   : > { %v2499_v46 = vsel %vm968_vm1, %v6244_v11, %v4297_v45  ;;  %v2498_v3 = vsel %vm968_vm1, %v6246_v19, %v4296_v21  ;;  %v3694_v11 = vld [vmem:[#allocation13] ss:$0 sm:$0xff] }
 0x7ef   : > { %v4300_v22 = vpop.permute.xlu1 %4299  ;;  %v2529_v19 = vadd.f32 %v4540_v9, %v3694_v11  ;;  %v2532_v59 = vadd.f32 %v4543_v47, %v3694_v11  ;;  %v2534_v60 = vadd.f32 %v4545_v55, %v3694_v11  ;;  %v6376_v55 = vld [vmem:[#allocation19] ss:$0 sm:$0xff] }
 0x7f0   : > { %v4302_v37 = vunpack.i.h.bf16 %v4300_v22  ;;  %v4301_v20 = vunpack.i.l.bf16 %v4300_v22  ;;  %v4541_v22 = vld [vmem:[%s5717_s8 + $0x10] sm:$0xff] }
 0x7f1   : > { %v2531_v18 = vadd.f32 %v4541_v22, %v3694_v11 }
 0x7f2   : > { %v2501_v41 = vsel %vm2500_vm2, %v2492_v56, %v4301_v20  ;;  %v2502_v16 = vsel %vm2500_vm2, %v2493_v15, %v4302_v37  ;;  %v2530_v37 = vadd.f32 %v4542_v54, %v3694_v11 }
 0x7f3   : > { %v4305_v28 = vpop.permute.xlu1 %4304 }
 0x7f4   : > { %v4307_v62 = vunpack.i.h.bf16 %v4305_v28  ;;  %v4306_v48 = vunpack.i.l.bf16 %v4305_v28 }
 0x7f6   : > { %v2504_v33 = vsel %vm2500_vm2, %v2495_v14, %v4307_v62  ;;  %v2503_v35 = vsel %vm2500_vm2, %v2494_v8, %v4306_v48 }
 0x7ff   : > { %v4310_v50 = vpop.permute.xlu0 %4309 }
 0x800   : > { %v4312_v10 = vunpack.i.h.bf16 %v4310_v50  ;;  %v4311_v52 = vunpack.i.l.bf16 %v4310_v50 }
 0x802   : > { %v2510_v17 = vsel %vm2509_vm3, %v2501_v41, %v4311_v52  ;;  %v2511_v23 = vsel %vm2509_vm3, %v2502_v16, %v4312_v10 }
 0x803   : > { %v2518_v26 = vpack.c.bf16 %v2511_v23, %v2510_v17  ;;  %v4320_v2 = vpop.permute.xlu1 %4319  ;;  %v4315_v61 = vpop.permute.xlu0 %4314  ;;  %v4544_v17 = vld [vmem:[%s5717_s8 + $0x20] sm:$0xff] }
 0x804   : > { %v4322_v30 = vunpack.i.h.bf16 %v4320_v2  ;;  %v4321_v31 = vunpack.i.l.bf16 %v4320_v2  ;;  %v4317_v34 = vunpack.i.h.bf16 %v4315_v61  ;;  %v4316_v32 = vunpack.i.l.bf16 %v4315_v61  ;;  %v4546_v2 = vld [vmem:[%s5717_s8 + $0x38] sm:$0xff] }
 0x805   : > { %3971 = vmatprep.mubr.msk.bf16.mxu0 %vm736_vm0, %v2518_v26  ;;  %v2533_v23 = vadd.f32 %v4544_v17, %v3694_v11  ;;  %v2536_v61 = vadd.f32 %v4546_v2, %v3694_v11 }
 0x806   : > { %v2513_v0 = vsel %vm2509_vm3, %v2504_v33, %v4322_v30  ;;  %v2512_v27 = vsel %vm2509_vm3, %v2503_v35, %v4321_v31  ;;  %v2505_v49 = vsel %vm2500_vm2, %v2496_v13, %v4316_v32  ;;  %v2506_v51 = vsel %vm2500_vm2, %v2497_v44, %v4317_v34  ;;  %v4547_v30 = vld [vmem:[%s5717_s8 + $0x30] sm:$0xff]  ;;  %s6763_s8 = sld [smem:[#allocation44_spill]] }
 0x807   : > { %v2519_v42 = vpack.c.bf16 %v2513_v0, %v2512_v27  ;;  %v4325_v1 = vpop.permute.xlu1 %4324  ;;  %v4330_v43 = vpop.permute.xlu0 %4329  ;;  %v2535_v31 = vadd.f32 %v4547_v30, %v3694_v11 }
 0x808   : > { %v4332_v40 = vunpack.i.h.bf16 %v4330_v43  ;;  %v4331_v63 = vunpack.i.l.bf16 %v4330_v43  ;;  %v4327_v53 = vunpack.i.h.bf16 %v4325_v1  ;;  %v4326_v7 = vunpack.i.l.bf16 %v4325_v1  ;;  %v4342_v1 = vld [vmem:[#allocation17] sm:$0xff]   ;;  %v4343_v43 = vld [vmem:[#allocation17 + $0x8] sm:$0xff]  }
 0x809   : > { %3972 = vmatmul.mubr.msk.bf16.vlgmr.msra.gmra.mrb[32].mxu0 %vm736_vm0, %v2519_v42  ;;  %3979 = vmatprep.subr.bf16.mxu1 %v4342_v1 }
 0x80a   : > { %v2514_v57 = vsel %vm2509_vm3, %v2505_v49, %v4331_v63  ;;  %v2515_v58 = vsel %vm2509_vm3, %v2506_v51, %v4332_v40  ;;  %v2508_v39 = vsel %vm2500_vm2, %v2499_v46, %v4327_v53  ;;  %v2507_v12 = vsel %vm2500_vm2, %v2498_v3, %v4326_v7  ;;  %3980 = vmatpush3.bf16.msra.mxu1 %v4342_v1 }
 0x80b   : > { %v2520_v36 = vpack.c.bf16 %v2515_v58, %v2514_v57  ;;  %v4335_v29 = vpop.permute.xlu1 %4334  ;;  %3981 = vmatprep.subr.bf16.mxu1 %v4343_v43 }
 0x80c   : > { %v4337_v6 = vunpack.i.h.bf16 %v4335_v29  ;;  %v4336_v25 = vunpack.i.l.bf16 %v4335_v29  ;;  %p6766_p11 = scmp.ne.s32.totalorder %s6763_s8, 0 }
 0x80d   : > { %3975 = vmatprep.mubr.msk.bf16.mxu0 %vm736_vm0, %v2520_v36 }
 0x80e   : > { %v2517_v4 = vsel %vm2509_vm3, %v2508_v39, %v4337_v6  ;;  %v2516_v38 = vsel %vm2509_vm3, %v2507_v12, %v4336_v25  ;;  %3982 = vmatpush3.bf16.msra.mxu1 %v4343_v43  ;;  %p4948_p9 = pnand %p4947_p12, %p6766_p11 }
 0x80f   : > { %v2521_v24 = vpack.c.bf16 %v2517_v4, %v2516_v38 }
 0x810   : > { %p4949_p0 = pneg %p4948_p9 }
 0x811   : > { %3976 = vmatmul.mubr.msk.bf16.gmra.mrb[36].mxu0 %vm736_vm0, %v2521_v24 }
 0x8dc   : > { %v3973_v5 = vpop.f32.mrb[32].mxu0 }
 0x8dd   : > { %v2599_v20 = vpop.f32.mrb[33].mxu0  ;;  %v6293_v50 = vadd.f32 %v3973_v5, %v2531_v18 }
 0x8de   : > { %v6291_v28 = vadd.f32 %v2599_v20, %v2529_v19  ;;  %v3974_v15 = vpop.f32.mrb[34].mxu0 }
 0x8df   : > { %v2602_v56 = vpop.f32.mrb[35].mxu0  ;;  %v6302_v16 = vadd.f32 %v3974_v15, %v2532_v59  ;;  %v2646_v48 = vsel %vm736_vm0, %v6293_v50, 0.0 }
 0x8e0   : > { %v6296_v10 = vadd.f32 %v2602_v56, %v2530_v37  ;;  %v2640_v52 = vsel %vm736_vm0, %v6291_v28, 0.0 }
 0x8e1   : > { %2641 = vadd.xlane.f32.xlu0 %v2640_v52  ;;  %v2649_v34 = vsel %vm736_vm0, %v6302_v16, 0.0 }
 0x8e2   : > { %v2643_v41 = vsel %vm736_vm0, %v6296_v10, 0.0 }
 0x8e3   : > { %2644 = vadd.xlane.f32.xlu1 %v2643_v41 }
 0x8e4   : > { %v3977_v62 = vpop.f32.mrb[36].mxu0 }
 0x8e5   : > { %2647 = vadd.xlane.f32.xlu0 %v2646_v48  ;;  %v2615_v26 = vpop.f32.mrb[37].mxu0  ;;  %v6320_v27 = vadd.f32 %v3977_v62, %v2535_v31 }
 0x8e6   : > { %v3978_v14 = vpop.f32.mrb[38].mxu0  ;;  %v6310_v33 = vadd.f32 %v2615_v26, %v2533_v23 }
 0x8e7   : > { %v2618_v8 = vpop.f32.mrb[39].mxu0  ;;  %v6316_v32 = vadd.f32 %v3978_v14, %v2536_v61  ;;  %v2658_v42 = vsel %vm736_vm0, %v6320_v27, 0.0 }
 0x8e8   : > { %v6312_v35 = vadd.f32 %v2618_v8, %v2534_v60  ;;  %v2652_v44 = vsel %vm736_vm0, %v6310_v33, 0.0 }
 0x8e9   : > { %2650 = vadd.xlane.f32.xlu0 %v2649_v34  ;;  %v2661_v13 = vsel %vm736_vm0, %v6316_v32, 0.0 }
 0x8ea   : > { %v2655_v0 = vsel %vm736_vm0, %v6312_v35, 0.0 }
 0x8eb   : > { %2656 = vadd.xlane.f32.xlu1 %v2655_v0 }
 0x8ed   : > { %2653 = vadd.xlane.f32.xlu0 %v2652_v44 }
 0x8ef   : > { %2662 = vadd.xlane.f32.xlu1 %v2661_v13 }
 0x8f1   : > { %2659 = vadd.xlane.f32.xlu0 %v2658_v42 }
 0x96e   : > { %v2642_v45 = vpop.xlane.xlu0 %2641 }
 0x96f   : > { %v2664_v21 = vmul.f32 0.03125, %v2642_v45 }
 0x970   : > { %v2645_v40 = vpop.xlane.xlu1 %2644 }
 0x971   : > { %v6329_v63 = vsub.f32 %v6291_v28, %v2664_v21  ;;  %v2665_v49 = vmul.f32 0.03125, %v2645_v40  ;;  %v3701_v40 = vld [vmem:[#allocation14] ss:$0 sm:$0xff] }
 0x972   : > { %v2648_v51 = vpop.xlane.xlu0 %2647 }
 0x973   : > { %v6332_v53 = vsub.f32 %v6296_v10, %v2665_v49  ;;  %v2666_v7 = vmul.f32 0.03125, %v2648_v51  ;;  %v2680_v57 = vmul.f32 %v6329_v63, %v6329_v63 }
 0x975   : > { %v6337_v58 = vsub.f32 %v6293_v50, %v2666_v7  ;;  %v2688_v36 = vsel %vm736_vm0, %v2680_v57, 0.0  ;;  %v2681_v29 = vmul.f32 %v6332_v53, %v6332_v53 }
 0x976   : > { %v2651_v46 = vpop.xlane.xlu0 %2650  ;;  %2689 = vadd.xlane.f32.xlu0 %v2688_v36 }
 0x977   : > { %v2667_v3 = vmul.f32 0.03125, %v2651_v46  ;;  %v2691_v6 = vsel %vm736_vm0, %v2681_v29, 0.0  ;;  %v2682_v25 = vmul.f32 %v6337_v58, %v6337_v58 }
 0x978   : > { %2692 = vadd.xlane.f32.xlu1 %v2691_v6  ;;  %v2657_v39 = vpop.xlane.xlu1 %2656 }
 0x979   : > { %v6346_v12 = vsub.f32 %v6302_v16, %v2667_v3  ;;  %v2669_v4 = vmul.f32 0.03125, %v2657_v39  ;;  %v2694_v38 = vsel %vm736_vm0, %v2682_v25, 0.0 }
 0x97a   : > { %2695 = vadd.xlane.f32.xlu0 %v2694_v38  ;;  %v2654_v24 = vpop.xlane.xlu0 %2653 }
 0x97b   : > { %v6350_v11 = vsub.f32 %v6312_v35, %v2669_v4  ;;  %v2668_v9 = vmul.f32 0.03125, %v2654_v24  ;;  %v2683_v19 = vmul.f32 %v6346_v12, %v6346_v12  ;;  %v3702_v4 = vld [vmem:[#allocation16] ss:$0 sm:$0xff] }
 0x97c   : > { %v2663_v22 = vpop.xlane.xlu1 %2662 }
 0x97d   : > { %v6355_v18 = vsub.f32 %v6310_v33, %v2668_v9  ;;  %v2671_v5 = vmul.f32 0.03125, %v2663_v22  ;;  %v2697_v54 = vsel %vm736_vm0, %v2683_v19, 0.0  ;;  %v2685_v37 = vmul.f32 %v6350_v11, %v6350_v11 }
 0x97e   : > { %v2660_v20 = vpop.xlane.xlu0 %2659  ;;  %2698 = vadd.xlane.f32.xlu1 %v2697_v54 }
 0x97f   : > { %v6361_v15 = vsub.f32 %v6316_v32, %v2671_v5  ;;  %v2670_v56 = vmul.f32 0.03125, %v2660_v20  ;;  %v2684_v47 = vmul.f32 %v6355_v18, %v6355_v18  ;;  %v2703_v41 = vsel %vm736_vm0, %v2685_v37, 0.0 }
 0x981   : > { %v6366_v59 = vsub.f32 %v6320_v27, %v2670_v56  ;;  %v2700_v52 = vsel %vm736_vm0, %v2684_v47, 0.0  ;;  %v2687_v62 = vmul.f32 %v6361_v15, %v6361_v15 }
 0x982   : > { %2701 = vadd.xlane.f32.xlu0 %v2700_v52  ;;  %2704 = vadd.xlane.f32.xlu1 %v2703_v41 }
 0x983   : > { %v2686_v48 = vmul.f32 %v6366_v59, %v6366_v59  ;;  %v2709_v23 = vsel %vm736_vm0, %v2687_v62, 0.0 }
 0x985   : > { %v2706_v17 = vsel %vm736_vm0, %v2686_v48, 0.0 }
 0x986   : > { %2707 = vadd.xlane.f32.xlu0 %v2706_v17  ;;  %2710 = vadd.xlane.f32.xlu1 %v2709_v23 }
 0x997   : > { %3070 = vrot.lane.b32.xlu1 %v4343_v43, %s5126_s6 }
 0x99b   : > { %3074 = vrot.lane.b32.xlu1 %v6376_v55, %s5126_s6 }
 0x99c   : > { %3068 = vrot.lane.b32.xlu0 %v4342_v1, %s5126_s6  ;;  %s4952_s6 = scalar_lea.vmem %s4951_s16, 2048 }
 0x99d   : > { %p4954_p4 = scmp.lt.s32.totalorder %s4952_s6, %s4946_s19 }
 0x99f   : > { %p4955_p7 = por %p4954_p4, %p4953_p2 }
 0x9a1   : > { %p4956_p8 = pnand %p4955_p7, %p4949_p0 }
 0xa03   : > { %v2690_v60 = vpop.xlane.xlu0 %2689 }
 0xa04   : > { %v2712_v26 = vmul.f32 0.03125, %v2690_v60 }
 0xa05   : > { %v2693_v2 = vpop.xlane.xlu1 %2692 }
 0xa06   : > { %v2720_v61 = vadd.f32 1e-05, %v2712_v26  ;;  %v2713_v14 = vmul.f32 0.03125, %v2693_v2 }
 0xa07   : > { %v2696_v8 = vpop.xlane.xlu0 %2695 }
 0xa08   : > { %4492 = vrsqrt.f32 %v2720_v61  ;;  %v2721_v30 = vadd.f32 1e-05, %v2713_v14  ;;  %v2714_v31 = vmul.f32 0.03125, %v2696_v8 }
 0xa0a   : > { %4494 = vrsqrt.f32 %v2721_v30  ;;  %v2722_v34 = vadd.f32 1e-05, %v2714_v31 }
 0xa0b   : > { %v2699_v0 = vpop.xlane.xlu1 %2698 }
 0xa0c   : > { %4496 = vrsqrt.f32 %v2722_v34  ;;  %v2715_v44 = vmul.f32 0.03125, %v2699_v0 }
 0xa0e   : > { %v2723_v13 = vadd.f32 1e-05, %v2715_v44 }
 0xa0f   : > { %v2702_v42 = vpop.xlane.xlu0 %2701  ;;  %v2705_v1 = vpop.xlane.xlu1 %2704 }
 0xa10   : > { %4498 = vrsqrt.f32 %v2723_v13  ;;  %v2716_v43 = vmul.f32 0.03125, %v2702_v42  ;;  %v2717_v45 = vmul.f32 0.03125, %v2705_v1  ;;  %v6395_v13 = vld [vmem:[#allocation20 + $0x10] sm:$0xff]  }
 0xa12   : > { %v4493_v21 = vpop.eup %4492  ;;  %v2724_v49 = vadd.f32 1e-05, %v2716_v43  ;;  %v2725_v51 = vadd.f32 1e-05, %v2717_v45 }
 0xa13   : > { %v2736_v7 = vmul.f32 %v4493_v21, %v6329_v63  ;;  %v2708_v57 = vpop.xlane.xlu0 %2707  ;;  %v2711_v36 = vpop.xlane.xlu1 %2710 }
 0xa14   : > { %v4495_v29 = vpop.eup %4494  ;;  %4500 = vrsqrt.f32 %v2724_v49  ;;  %v2718_v46 = vmul.f32 0.03125, %v2708_v57  ;;  %v2719_v3 = vmul.f32 0.03125, %v2711_v36 }
 0xa15   : > { %v2737_v6 = vmul.f32 %v4495_v29, %v6332_v53  ;;  %4502 = vrsqrt.f32 %v2725_v51  ;;  %v2750_v25 = vmul.f32 %v3701_v40, %v2736_v7 }
 0xa16   : > { %v4497_v39 = vpop.eup %4496  ;;  %v2726_v38 = vadd.f32 1e-05, %v2718_v46  ;;  %v2727_v24 = vadd.f32 1e-05, %v2719_v3 }
 0xa17   : > { %v2738_v9 = vmul.f32 %v4497_v39, %v6337_v58  ;;  %v2751_v19 = vmul.f32 %v3701_v40, %v2737_v6  ;;  %v3069_v22 = vpop.permute.xlu0 %3068  ;;  %v2764_v63 = vadd.f32 %v3702_v4, %v2750_v25  ;;  %v3071_v2 = vpop.permute.xlu1 %3070 }
 0xa18   : > { %4504 = vrsqrt.f32 %v2726_v38  ;;  %4003 = vmatprep.subr.bf16.mxu1 %v3069_v22 }
 0xa19   : > { %4506 = vrsqrt.f32 %v2727_v24  ;;  %v2765_v5 = vadd.f32 %v3702_v4, %v2751_v19  ;;  %v2752_v37 = vmul.f32 %v3701_v40, %v2738_v9 }
 0xa1a   : > { %v4499_v54 = vpop.eup %4498 }
 0xa1b   : > { %v2739_v20 = vmul.f32 %v4499_v54, %v6346_v12  ;;  %v2772_v53 = vpack.c.bf16 %v2765_v5, %v2764_v63  ;;  %v2766_v41 = vadd.f32 %v3702_v4, %v2752_v37 }
 0xa1d   : > { %v2753_v56 = vmul.f32 %v3701_v40, %v2739_v20  ;;  %3983 = vmatprep.mubr.msk.bf16.mxu1 %vm736_vm0, %v2772_v53 }
 0xa1e   : > { %v4501_v47 = vpop.eup %4500 }
 0xa1f   : > { %v4503_v52 = vpop.eup %4502  ;;  %v2767_v62 = vadd.f32 %v3702_v4, %v2753_v56  ;;  %v2740_v58 = vmul.f32 %v4501_v47, %v6355_v18 }
 0xa20   : > { %v2741_v48 = vmul.f32 %v4503_v52, %v6350_v11 }
 0xa21   : > { %v2773_v17 = vpack.c.bf16 %v2767_v62, %v2766_v41  ;;  %v2754_v23 = vmul.f32 %v3701_v40, %v2740_v58 }
 0xa22   : > { %v4505_v60 = vpop.eup %4504  ;;  %v2755_v26 = vmul.f32 %v3701_v40, %v2741_v48 }
 0xa23   : > { %v4507_v61 = vpop.eup %4506  ;;  %v2742_v12 = vmul.f32 %v4505_v60, %v6366_v59  ;;  %3984 = vmatmul.mubr.msk.bf16.vlgmr.msra.gmra.mrb[40].mxu1 %vm736_vm0, %v2773_v17  ;;  %v2768_v14 = vadd.f32 %v3702_v4, %v2754_v23  ;;  %v4345_v59 = vld [vmem:[#allocation20 + $0x8] sm:$0xff]  }
 0xa24   : > { %v2743_v8 = vmul.f32 %v4507_v61, %v6361_v15  ;;  %4004 = vmatpush3.bf16.msra.mxu1 %v3069_v22  ;;  %v2769_v30 = vadd.f32 %v3702_v4, %v2755_v26  ;;  %v4344_v15 = vld [vmem:[#allocation20] sm:$0xff]  }
 0xa25   : > { %4005 = vmatprep.subr.bf16.mxu1 %v3071_v2  ;;  %v2756_v31 = vmul.f32 %v3701_v40, %v2742_v12  ;;  %3991 = vmatprep.subr.bf16.mxu0 %v4344_v15  ;;  %v6413_v12 = vpop.permute.xlu1 %3074 }
 0xa26   : > { %v2774_v18 = vpack.c.bf16 %v2769_v30, %v2768_v14  ;;  %v2757_v34 = vmul.f32 %v3701_v40, %v2743_v8  ;;  %3992 = vmatpush3.bf16.msra.mxu0 %v4344_v15 }
 0xa27   : > { %v2770_v11 = vadd.f32 %v3702_v4, %v2756_v31  ;;  %3993 = vmatprep.subr.bf16.mxu0 %v4345_v59 }
 0xa28   : > { %3987 = vmatprep.mubr.msk.bf16.mxu1 %vm736_vm0, %v2774_v18  ;;  %4006 = vmatpush3.bf16.msra.mxu1 %v3071_v2  ;;  %v2771_v0 = vadd.f32 %v3702_v4, %v2757_v34 }
 0xa2a   : > { %v2775_v44 = vpack.c.bf16 %v2771_v0, %v2770_v11  ;;  %3994 = vmatpush3.bf16.msra.mxu0 %v4345_v59 }
 0xa2b   : > { %4015 = vmatprep.subr.bf16.mxu0 %v6395_v13 }
 0xa2c   : > { %3988 = vmatmul.mubr.msk.bf16.gmra.mrb[44].mxu1 %vm736_vm0, %v2775_v44 }
 0xa2d   : > { %4007 = vmatprep.mubr.msk.bf16.mxu1 %vm736_vm0, %v2772_v53 }
 0xa34   : > { %4008 = vmatmul.mubr.msk.bf16.vlgmr.msra.gmra.mrb[48].mxu1 %vm736_vm0, %v2773_v17 }
 0xa35   : > { %4011 = vmatprep.mubr.msk.bf16.mxu1 %vm736_vm0, %v2774_v18 }
 0xa3c   : > { %4012 = vmatmul.mubr.msk.bf16.gmra.mrb[52].mxu1 %vm736_vm0, %v2775_v44 }
 0xaf6   : > { %v3985_v42 = vpop.f32.mrb[40].mxu1 }
 0xaf7   : > { %v2869_v1 = vadd.f32 %v3985_v42, %v6376_v55  ;;  %v2860_v43 = vpop.f32.mrb[41].mxu1 }
 0xaf8   : > { %v2861_v45 = vadd.f32 %v6376_v55, %v2860_v43  ;;  %v3986_v21 = vpop.f32.mrb[42].mxu1 }
 0xaf9   : > { %v2901_v40 = vmul.f32 0.044715, %v2869_v1  ;;  %v2872_v49 = vadd.f32 %v3986_v21, %v6376_v55  ;;  %v2863_v51 = vpop.f32.mrb[43].mxu1  ;;  %v2893_v14 = vmul.f32 0.5, %v2869_v1 }
 0xafa   : > { %v2899_v7 = vmul.f32 0.044715, %v2861_v45  ;;  %v2864_v57 = vadd.f32 %v6376_v55, %v2863_v51  ;;  %v6417_v11 = vmul.f32 0.5, %v2861_v45 }
 0xafb   : > { %v2909_v36 = vmul.f32 %v2901_v40, %v2869_v1  ;;  %v2902_v29 = vmul.f32 0.044715, %v2872_v49  ;;  %v2894_v31 = vmul.f32 0.5, %v2872_v49 }
 0xafc   : > { %v2907_v46 = vmul.f32 %v2899_v7, %v2861_v45  ;;  %v2900_v3 = vmul.f32 0.044715, %v2864_v57  ;;  %v6424_v42 = vmul.f32 0.5, %v2864_v57 }
 0xafd   : > { %v2917_v6 = vmul.f32 %v2909_v36, %v2869_v1  ;;  %v2910_v25 = vmul.f32 %v2902_v29, %v2872_v49 }
 0xafe   : > { %v2915_v39 = vmul.f32 %v2907_v46, %v2861_v45  ;;  %v2908_v4 = vmul.f32 %v2900_v3, %v2864_v57 }
 0xaff   : > { %v2925_v38 = vadd.f32 %v2917_v6, %v2869_v1  ;;  %v2918_v24 = vmul.f32 %v2910_v25, %v2872_v49  ;;  %v3989_v9 = vpop.f32.mrb[44].mxu1 }
 0xb00   : > { %v2923_v19 = vadd.f32 %v2915_v39, %v2861_v45  ;;  %v2916_v22 = vmul.f32 %v2908_v4, %v2864_v57  ;;  %v6403_v63 = vadd.f32 %v3989_v9, %v6376_v55  ;;  %v2876_v5 = vpop.f32.mrb[45].mxu1 }
 0xb01   : > { %v2933_v54 = vmul.f32 0.7978846, %v2925_v38  ;;  %v2926_v37 = vadd.f32 %v2918_v24, %v2872_v49  ;;  %v2877_v20 = vadd.f32 %v6376_v55, %v2876_v5  ;;  %v3990_v53 = vpop.f32.mrb[46].mxu1 }
 0xb02   : > { %v2931_v56 = vmul.f32 0.7978846, %v2923_v19  ;;  %v2924_v47 = vadd.f32 %v2916_v22, %v2864_v57  ;;  %v2905_v52 = vmul.f32 0.044715, %v6403_v63  ;;  %v6408_v41 = vadd.f32 %v3990_v53, %v6376_v55  ;;  %v2879_v62 = vpop.f32.mrb[47].mxu1 }
 0xb03   : > { %4508 = vtanh.f32 %v2933_v54  ;;  %v2934_v58 = vmul.f32 0.7978846, %v2926_v37  ;;  %v2903_v48 = vmul.f32 0.044715, %v2877_v20  ;;  %v2880_v17 = vadd.f32 %v6376_v55, %v2879_v62 }
 0xb04   : > { %4510 = vtanh.f32 %v2931_v56  ;;  %v2913_v23 = vmul.f32 %v2905_v52, %v6403_v63  ;;  %v2906_v60 = vmul.f32 0.044715, %v6408_v41  ;;  %v2932_v26 = vmul.f32 0.7978846, %v2924_v47 }
 0xb05   : > { %4512 = vtanh.f32 %v2934_v58  ;;  %v2911_v2 = vmul.f32 %v2903_v48, %v2877_v20  ;;  %v2904_v61 = vmul.f32 0.044715, %v2880_v17  ;;  %v6435_v3 = vmul.f32 0.5, %v2877_v20 }
 0xb06   : > { %v2921_v8 = vmul.f32 %v2913_v23, %v6403_v63  ;;  %v2914_v30 = vmul.f32 %v2906_v60, %v6408_v41  ;;  %4514 = vtanh.f32 %v2932_v26  ;;  %v6438_v39 = vmul.f32 0.5, %v2880_v17 }
 0xb07   : > { %v2919_v18 = vmul.f32 %v2911_v2, %v2877_v20  ;;  %v2912_v34 = vmul.f32 %v2904_v61, %v2880_v17  ;;  %v4009_v55 = vpop.f32.mrb[48].mxu1 }
 0xb08   : > { %v2929_v0 = vadd.f32 %v2921_v8, %v6403_v63  ;;  %v2922_v44 = vmul.f32 %v2914_v30, %v6408_v41  ;;  %v6422_v15 = vadd.f32 %v4009_v55, %v6413_v12  ;;  %v3111_v59 = vpop.f32.mrb[49].mxu1 }
 0xb09   : > { %v2927_v1 = vadd.f32 %v2919_v18, %v2877_v20  ;;  %v2920_v43 = vmul.f32 %v2912_v34, %v2880_v17  ;;  %v6427_v21 = vadd.f32 %v3111_v59, %v6413_v12  ;;  %v4010_v40 = vpop.f32.mrb[50].mxu1 }
 0xb0a   : > { %v2937_v49 = vmul.f32 0.7978846, %v2929_v0  ;;  %v2930_v45 = vadd.f32 %v2922_v44, %v6408_v41  ;;  %v3152_v51 = vmul.f32 0.044715, %v6422_v15  ;;  %v6432_v7 = vadd.f32 %v4010_v40, %v6413_v12  ;;  %v3114_v36 = vpop.f32.mrb[51].mxu1 }
 0xb0b   : > { %v2935_v29 = vmul.f32 0.7978846, %v2927_v1  ;;  %v2928_v46 = vadd.f32 %v2920_v43, %v2880_v17  ;;  %v3150_v57 = vmul.f32 0.044715, %v6427_v21  ;;  %v6444_v54 = vadd.f32 %v3114_v36, %v6413_v12 }
 0xb0c   : > { %4516 = vtanh.f32 %v2937_v49  ;;  %v2938_v6 = vmul.f32 0.7978846, %v2930_v45  ;;  %v3160_v25 = vmul.f32 %v3152_v51, %v6422_v15  ;;  %v3153_v9 = vmul.f32 0.044715, %v6432_v7 }
 0xb0d   : > { %v4509_v4 = vpop.eup %4508  ;;  %4518 = vtanh.f32 %v2935_v29  ;;  %v2936_v38 = vmul.f32 0.7978846, %v2928_v46  ;;  %v3158_v24 = vmul.f32 %v3150_v57, %v6427_v21  ;;  %v3151_v48 = vmul.f32 0.044715, %v6444_v54 }
 0xb0e   : > { %v4511_v19 = vpop.eup %4510  ;;  %v2949_v22 = vadd.f32 1.0, %v4509_v4  ;;  %4520 = vtanh.f32 %v2938_v6  ;;  %v3168_v5 = vmul.f32 %v3160_v25, %v6422_v15  ;;  %v3161_v53 = vmul.f32 %v3153_v9, %v6432_v7 }
 0xb0f   : > { %v4513_v37 = vpop.eup %4512  ;;  %4522 = vtanh.f32 %v2936_v38  ;;  %v3166_v20 = vmul.f32 %v3158_v24, %v6427_v21  ;;  %v4013_v56 = vpop.f32.mrb[52].mxu1  ;;  %v2947_v47 = vadd.f32 1.0, %v4511_v19  ;;  %v3159_v30 = vmul.f32 %v3151_v48, %v6444_v54 }
 0xb10   : > { %v6448_v52 = vmul.f32 %v2949_v22, %v2893_v14  ;;  %v2950_v62 = vadd.f32 1.0, %v4513_v37  ;;  %v3176_v58 = vadd.f32 %v3168_v5, %v6422_v15  ;;  %v3127_v17 = vpop.f32.mrb[53].mxu1  ;;  %v3169_v60 = vmul.f32 %v3161_v53, %v6432_v7  ;;  %v4515_v55 = vpop.eup %4514 }
 0xb11   : > { %v3174_v23 = vadd.f32 %v3166_v20, %v6427_v21  ;;  %v6455_v26 = vadd.f32 %v4013_v56, %v6413_v12  ;;  %v6458_v2 = vadd.f32 %v3127_v17, %v6413_v12  ;;  %v4014_v61 = vpop.f32.mrb[54].mxu1  ;;  %v2948_v6 = vadd.f32 1.0, %v4515_v55 }
 0xb12   : > { %v2958_v8 = vmul.f32 %v2950_v62, %v2894_v31  ;;  %v3184_v14 = vmul.f32 0.7978846, %v3176_v58  ;;  %v6462_v18 = vadd.f32 %v4014_v61, %v6413_v12  ;;  %v3130_v34 = vpop.f32.mrb[55].mxu1  ;;  %v3177_v44 = vadd.f32 %v3169_v60, %v6432_v7  ;;  %v4347_v58 = vld [vmem:[#allocation20 + $0x18] sm:$0xff]  }
 0xb13   : > { %v3182_v0 = vmul.f32 0.7978846, %v3174_v23  ;;  %v3156_v59 = vmul.f32 0.044715, %v6455_v26  ;;  %v3154_v1 = vmul.f32 0.044715, %v6458_v2  ;;  %v3167_v31 = vmul.f32 %v3159_v30, %v6444_v54 }
 0xb14   : > { %v2964_v43 = vpack.c.bf16 %v2958_v8, %v6448_v52  ;;  %4524 = vtanh.f32 %v3184_v14  ;;  %v3157_v40 = vmul.f32 0.044715, %v6462_v18  ;;  %v3185_v49 = vmul.f32 0.7978846, %v3177_v44 }
 0xb15   : > { %4526 = vtanh.f32 %v3182_v0  ;;  %v3164_v45 = vmul.f32 %v3156_v59, %v6455_v26  ;;  %v3162_v51 = vmul.f32 %v3154_v1, %v6458_v2  ;;  %v3175_v29 = vadd.f32 %v3167_v31, %v6444_v54 }
 0xb16   : > { %v4517_v36 = vpop.eup %4516  ;;  %v3165_v46 = vmul.f32 %v3157_v40, %v6462_v18  ;;  %v6475_v57 = vadd.f32 %v3130_v34, %v6413_v12  ;;  %4528 = vtanh.f32 %v3185_v49  ;;  %v2955_v24 = vmul.f32 %v2947_v47, %v6417_v11 }
 0xb17   : > { %v4519_v25 = vpop.eup %4518  ;;  %v3172_v4 = vmul.f32 %v3164_v45, %v6455_v26  ;;  %v3170_v38 = vmul.f32 %v3162_v51, %v6458_v2  ;;  %v3183_v19 = vmul.f32 0.7978846, %v3175_v29  ;;  %v2956_v37 = vmul.f32 %v2948_v6, %v6424_v42 }
 0xb18   : > { %v4521_v9 = vpop.eup %4520  ;;  %v3173_v22 = vmul.f32 %v3165_v46, %v6462_v18  ;;  %v3155_v5 = vmul.f32 0.044715, %v6475_v57  ;;  %v2951_v56 = vadd.f32 1.0, %v4519_v25  ;;  %v2953_v52 = vadd.f32 1.0, %v4517_v36 }
 0xb19   : > { %v4523_v20 = vpop.eup %4522  ;;  %v3180_v12 = vadd.f32 %v3172_v4, %v6455_v26  ;;  %v3178_v53 = vadd.f32 %v3170_v38, %v6458_v2  ;;  %4530 = vtanh.f32 %v3183_v19  ;;  %v2963_v47 = vpack.c.bf16 %v2956_v37, %v2955_v24 }
 0xb1a   : > { %v3181_v62 = vadd.f32 %v3173_v22, %v6462_v18  ;;  %v3163_v11 = vmul.f32 %v3155_v5, %v6475_v57  ;;  %v2952_v23 = vadd.f32 1.0, %v4523_v20  ;;  %v2897_v60 = vmul.f32 0.5, %v6403_v63 }
 0xb1b   : > { %v3188_v48 = vmul.f32 0.7978846, %v3180_v12  ;;  %v3186_v17 = vmul.f32 0.7978846, %v3178_v53  ;;  %3995 = vmatprep.mubr.msk.bf16.mxu0 %vm736_vm0, %v2963_v47  ;;  %v2898_v8 = vmul.f32 0.5, %v6408_v41  ;;  %v2954_v14 = vadd.f32 1.0, %v4521_v9 }
 0xb1c   : > { %v3189_v42 = vmul.f32 0.7978846, %v3181_v62  ;;  %v3171_v61 = vmul.f32 %v3163_v11, %v6475_v57  ;;  %3996 = vmatmul.mubr.msk.bf16.vlgmr.msra.gmra.mrb[40].mxu0 %vm736_vm0, %v2964_v43  ;;  %v2959_v30 = vmul.f32 %v2951_v56, %v6435_v3  ;;  %v2960_v34 = vmul.f32 %v2952_v23, %v6438_v39 }
 0xb1d   : > { %4532 = vtanh.f32 %v3188_v48  ;;  %4016 = vmatpush3.bf16.msra.mxu0 %v6395_v13  ;;  %v2961_v63 = vmul.f32 %v2953_v52, %v2897_v60  ;;  %v2962_v44 = vmul.f32 %v2954_v14, %v2898_v8  ;;  %v3144_v3 = vmul.f32 0.5, %v6422_v15 }
 0xb1e   : > { %v4525_v55 = vpop.eup %4524  ;;  %4534 = vtanh.f32 %v3186_v17  ;;  %v3179_v0 = vadd.f32 %v3171_v61, %v6475_v57  ;;  %v2965_v1 = vpack.c.bf16 %v2960_v34, %v2959_v30  ;;  %4017 = vmatprep.subr.bf16.mxu0 %v4347_v58  ;;  %v3145_v39 = vmul.f32 0.5, %v6432_v7 }
 0xb1f   : > { %v4527_v59 = vpop.eup %4526  ;;  %4536 = vtanh.f32 %v3189_v42  ;;  %v3200_v41 = vadd.f32 1.0, %v4525_v55  ;;  %v2966_v40 = vpack.c.bf16 %v2962_v44, %v2961_v63  ;;  %v3142_v29 = vmul.f32 0.5, %v6427_v21 }
 0xb20   : > { %v3187_v31 = vmul.f32 0.7978846, %v3179_v0  ;;  %v4529_v43 = vpop.eup %4528  ;;  %3999 = vmatprep.mubr.msk.bf16.mxu0 %vm736_vm0, %v2965_v1  ;;  %v3198_v13 = vadd.f32 1.0, %v4527_v59  ;;  %v3143_v46 = vmul.f32 0.5, %v6444_v54  ;;  %v3148_v22 = vmul.f32 0.5, %v6455_v26 }
 0xb21   : > { %v3201_v49 = vadd.f32 1.0, %v4529_v43  ;;  %4018 = vmatpush3.bf16.msra.mxu0 %v4347_v58  ;;  %v3208_v51 = vmul.f32 %v3200_v41, %v3144_v3  ;;  %v3149_v5 = vmul.f32 0.5, %v6462_v18  ;;  %v3146_v53 = vmul.f32 0.5, %v6458_v2  ;;  %v3703_v18 = vld [vmem:[#allocation22] ss:$0 sm:$0xff] }
 0xb22   : > { %4538 = vtanh.f32 %v3187_v31  ;;  %v3206_v38 = vmul.f32 %v3198_v13, %v3142_v29  ;;  %v3147_v56 = vmul.f32 0.5, %v6475_v57  ;;  %v2785_v58 = vadd.f32 %v3703_v18, %v6293_v50 }
 0xb23   : > { %v4531_v45 = vpop.eup %4530  ;;  %v3209_v36 = vmul.f32 %v3201_v49, %v3145_v39  ;;  %v2783_v2 = vadd.f32 %v3703_v18, %v6291_v28  ;;  %v2786_v23 = vadd.f32 %v3703_v18, %v6302_v16  ;;  %v2784_v61 = vadd.f32 %v3703_v18, %v6296_v10 }
 0xb24   : > { %4000 = vmatmul.mubr.msk.bf16.gmra.mrb[44].mxu0 %vm736_vm0, %v2966_v40  ;;  %v3199_v6 = vadd.f32 1.0, %v4531_v45  ;;  %v2789_v10 = vadd.f32 %v3703_v18, %v6320_v27  ;;  %v2787_v14 = vadd.f32 %v3703_v18, %v6310_v33  ;;  %v2790_v55 = vadd.f32 %v3703_v18, %v6316_v32 }
 0xb25   : > { %v3215_v25 = vpack.c.bf16 %v3209_v36, %v3208_v51  ;;  %v2788_v44 = vadd.f32 %v3703_v18, %v6312_v35 }
 0xb26   : > { %v3207_v15 = vmul.f32 %v3199_v6, %v3143_v46 }
 0xb27   : > { %v4533_v4 = vpop.eup %4532 }
 0xb28   : > { %v4535_v24 = vpop.eup %4534  ;;  %v3204_v7 = vadd.f32 1.0, %v4533_v4  ;;  %v3214_v19 = vpack.c.bf16 %v3207_v15, %v3206_v38 }
 0xb29   : > { %v4537_v9 = vpop.eup %4536  ;;  %v3202_v20 = vadd.f32 1.0, %v4535_v24 }
 0xb2a   : > { %v3205_v37 = vadd.f32 1.0, %v4537_v9  ;;  %4019 = vmatprep.mubr.msk.bf16.mxu0 %vm736_vm0, %v3214_v19  ;;  %v3212_v12 = vmul.f32 %v3204_v7, %v3148_v22 }
 0xb2b   : > { %v3210_v11 = vmul.f32 %v3202_v20, %v3146_v53 }
 0xb2c   : > { %v4539_v21 = vpop.eup %4538  ;;  %v3213_v54 = vmul.f32 %v3205_v37, %v3149_v5  ;;  %4020 = vmatmul.mubr.msk.bf16.vlgmr.msra.gmra.mrb[40].mxu0 %vm736_vm0, %v3215_v25 }
 0xb2d   : > { %v3203_v52 = vadd.f32 1.0, %v4539_v21 }
 0xb2e   : > { %v3217_v62 = vpack.c.bf16 %v3213_v54, %v3212_v12 }
 0xb2f   : > { %v3211_v26 = vmul.f32 %v3203_v52, %v3147_v56 }
 0xb31   : > { %v3216_v47 = vpack.c.bf16 %v3211_v26, %v3210_v11 }
 0xb33   : > { %4023 = vmatprep.mubr.msk.bf16.mxu0 %vm736_vm0, %v3216_v47 }
 0xb34   : > { %4024 = vmatmul.mubr.msk.bf16.gmra.mrb[44].mxu0 %vm736_vm0, %v3217_v62 }
 0xbff   : > { %v4021_v48 = vpop.f32.mrb[40].mxu0 }
 0xc00   : > { %v4027_v17 = vadd.f32 %v4021_v48, %v2785_v58  ;;  %v3280_v57 = vpop.f32.mrb[41].mxu0 }
 0xc01   : > { %v4028_v60 = vadd.f32 %v3280_v57, %v2783_v2  ;;  %v4022_v42 = vpop.f32.mrb[42].mxu0 }
 0xc02   : > { %3321 = vst.msk [vmem:[%s6515_s10 + $0x10] sm:$0xff] %vm736_vm0, %v4027_v17  ;;  %v4029_v50 = vadd.f32 %v4022_v42, %v2786_v23  ;;  %v3283_v8 = vpop.f32.mrb[43].mxu0 }
 0xc03   : > { %3319 = vst.msk [vmem:[%s6515_s10] sm:$0xff] %vm736_vm0, %v4028_v60  ;;  %v4030_v28 = vadd.f32 %v3283_v8, %v2784_v61 }
 0xc04   : > { %3322 = vst.msk [vmem:[%s6515_s10 + $0x18] sm:$0xff] %vm736_vm0, %v4029_v50 }
 0xc05   : > { %3320 = vst.msk [vmem:[%s6515_s10 + $0x8] sm:$0xff] %vm736_vm0, %v4030_v28 }
 0xc07   : > { %v4025_v16 = vpop.f32.mrb[44].mxu0 }
 0xc08   : > { %v4031_v30 = vadd.f32 %v4025_v16, %v2789_v10  ;;  %v3296_v34 = vpop.f32.mrb[45].mxu0 }
 0xc09   : > { %v4032_v0 = vadd.f32 %v3296_v34, %v2787_v14  ;;  %v4026_v63 = vpop.f32.mrb[46].mxu0 }
 0xc0a   : > { %3325 = vst.msk [vmem:[%s6515_s10 + $0x30] sm:$0xff] %vm736_vm0, %v4031_v30  ;;  %v4033_v27 = vadd.f32 %v4026_v63, %v2790_v55  ;;  %v3299_v59 = vpop.f32.mrb[47].mxu0 }
 0xc0b   : > { %3323 = vst.msk [vmem:[%s6515_s10 + $0x20] sm:$0xff] %vm736_vm0, %v4032_v0  ;;  %v4034_v33 = vadd.f32 %v3299_v59, %v2788_v44 }
 0xc0c   : > { %3326 = vst.msk [vmem:[%s6515_s10 + $0x38] sm:$0xff] %vm736_vm0, %v4033_v27 }
 0xc0d   : > { %3324 = vst.msk [vmem:[%s6515_s10 + $0x28] sm:$0xff] %vm736_vm0, %v4034_v33 }
 0xc0e   : > { %4959 = shalt.err (!%p4956_p8)
}
 0xc0f   : > { %s4960_s17 = scalar_lea.hbm %s6541_s27, 1024  ;;  %s4964_s12 = scalar_lea.hbm %s6765_s0, 8192 }
 0xc10   : > { %p4961_p13 = scmp.ne.s32.totalorder %s6541_s27, %s4960_s17  ;;  %p4965_p5 = scmp.lt.u32.totalorder %s6541_s27, %s6765_s0 }
 0xc11   : > { %p4966_p6 = scmp.lt.u32.totalorder %s4964_s12, %s4960_s17  ;;  %p4968_p12 = scmp.lt.u32.totalorder %s4960_s17, %s6541_s27 }
 0xc12   : > { %p4962_p1 = pnand %p4961_p13, %p6766_p11 }
 0xc13   : > { %p4967_p10 = por %p4966_p6, %p4965_p5 }
 0xc14   : > { %p4963_p3 = pneg %p4962_p1 }
 0xc15   : > { %p4969_p9 = por %p4968_p12, %p4967_p10 }
 0xc17   : > { %p4970_p0 = pnand %p4969_p9, %p4963_p3 }
 0xc19   : > { %4973 = shalt.err (!%p4970_p0)
}
 0xc1a   : > { %s5128_s21 = smov 128  }
 0xc1b   : > { %4093 = dma.vmem_to_hbm [thread:$0]  (%p6766_p11), %s6534_s28, 1024, %s6541_s27, %s6549_s13, %s5128_s21, %s5128_s21, %s5123_s5  }
 0xc1c PF: > { %s6767_s26 = sld [smem:[#allocation34_spill]]  ;;  %s6768_s29 = sld [smem:[#allocation45_spill]] }
 0xc1d   : > { %p4166_p2 = scmp.ge.s32.totalorder %s5100_s23, 2 }
 0xc22   : > { %s3358_s7 = sand.u32 1, %s6767_s26   ;;  %p6769_p4 = scmp.ne.s32.totalorder %s6768_s29, 0 }
 0xc23   : > { %s3359_s9 = scalar_lea.sflag [#allocation4], %s3358_s7 }
 0xc24   : > { %p4140_p7 = pnand %p4166_p2, %p6769_p4 }
 0xc26   : > { %5055 = dma.done.wait (!%p4140_p7), %s3359_s9, 1024  }
 0xc27   : > { %5057 = vsyncadd (!%p4140_p7), %s3359_s9, 4294966272  ;;  %s35_s23 = sadd.s32 1, %s5100_s23   ;;  %s6770_s16 = sld [smem:[#allocation35_spill]] }
 0xc28   : > { %p32_p8 = scmp.ge.s32.totalorder %s35_s23, 10   ;;  %s6771_s5 = sld [smem:[#allocation46_spill]] }
 0xc29   : > { %s6772_s19 = sld [smem:[#allocation38_spill]]  ;;  %s6773_s21 = sld [smem:[#allocation41_spill]] }
 0xc2a   : > { %s6774_s28 = sld [smem:[#allocation42_spill]]  ;;  %s6775_s29 = smov %s5064_s30 }
 0xc2b   : > { %s6776_s30 = smov %s5068_s15  ;;  %s6777_s15 = smov %s5515_s14 }
 0xc2c   : > { %s6778_s17 = smov %s5080_s18  ;;  %s6780_s20 = smov %s5096_s22 }
 0xc2d   :  { %34 = sbr.rel (!%p32_p8) target bundleno = 30 (0x1e), region = 187 }
 0xc2e   : > { %s6779_s18 = smov %s6771_s5 }
 0xc30   : > { %s6781_s22 = smov %s6774_s28 }
 0xc34   :  { %3364 = vsyncpa [#allocation3], 1 }
 0xc35   :  { %3366 = vsyncpa [#allocation3 + $0x1], 1 }
 0xc36   :  { %3367 = vsyncpa [#allocation6], 1 }
 0xc37   :  { %3368 = vsyncpa [#allocation9], 1 }
 0xc38   :  { %3369 = vsyncpa [#allocation15], 1 }
 0xc39   :  { %3370 = vsyncpa [#allocation18], 1 }
 0xc3a   :  { %3371 = vsyncpa [#allocation21], 1 }
 0xc3b   :  { %3372 = vsyncpa [#allocation4], 1 }
 0xc3c   :  { %3374 = vsyncpa [#allocation4 + $0x1], 1 }

</bundles_post_ra>
